<compile_context>
chip_gen: v7x
topology: tpu7x:2x2x1
jax: 0.10.0
libtpu: 0.0.40
codegen_flags: <defaults>
</compile_context>

<pallas_src>
import functools

import jax
import jax.numpy as jnp
from jax.experimental import pallas as pl
from jax.experimental.pallas import tpu as pltpu


def _conv_relu_pool(pad_ref, act, w, b, Hh, Ww, Cin, Cout):
    """One Conv2d(3, padding=1) -> ReLU -> MaxPool2d(2) block, fully in VMEM.

    pad_ref : VMEM scratch ref, shape (B, Hh+2, Ww+2, Cin); border already zero.
    act     : (B, Hh, Ww, Cin) float32 value
    w       : (9*Cin, Cout) float32 value (HWIO weights flattened as (ky,kx,ci))
    b       : (1, Cout) float32 value
    returns : (B, Hh//2, Ww//2, Cout) float32 value
    """
    B = act.shape[0]
    rows = B * Hh * Ww

    # padding=1 inside the kernel: border of pad_ref is zero (set once on the
    # first grid step); only the interior is written here.
    pad_ref[:, 1:Hh + 1, 1:Ww + 1, :] = act

    if Cin >= 16:
        # im2col: concat the 9 shifted windows along channels -> one MXU matmul
        # with K = 9*Cin (weights pushed once per layer).
        taps = [pad_ref[:, dy:dy + Hh, dx:dx + Ww, :]
                for dy in range(3) for dx in range(3)]
        patches = jnp.concatenate(taps, axis=-1)            # (B, Hh, Ww, 9*Cin)
        lhs = patches.reshape(rows, 9 * Cin)
        acc = jnp.dot(lhs, w, preferred_element_type=jnp.float32)
    else:
        # Small-Cin first layer: per-tap accumulation (VPU broadcast for Cin==1).
        acc = jnp.zeros((rows, Cout), jnp.float32)
        t = 0
        for dy in range(3):
            for dx in range(3):
                tap = pad_ref[:, dy:dy + Hh, dx:dx + Ww, :].reshape(rows, Cin)
                w_tap = w[t * Cin:(t + 1) * Cin, :]          # (Cin, Cout)
                if Cin == 1:
                    acc = acc + tap * w_tap                  # (rows,1)*(1,Cout)
                else:
                    acc = acc + jnp.dot(tap, w_tap,
                                        preferred_element_type=jnp.float32)
                t += 1

    acc = jnp.maximum(acc + b, 0.0)                          # bias + ReLU
    y = acc.reshape(B, Hh, Ww, Cout)

    # MaxPool2d(2) (floor semantics): pool rows, then columns.
    Ho, Wo = Hh // 2, Ww // 2
    y = y[:, :Ho * 2, :Wo * 2, :]
    y = jnp.max(y.reshape(B, Ho, 2, Wo * 2, Cout), axis=2)   # (B, Ho, Wo*2, Cout)
    y = jnp.max(y.reshape(B, Ho, Wo, 2, Cout), axis=3)       # (B, Ho, Wo, Cout)
    return y


def _encoder_kernel(x_ref,
                    w1_ref, b1_ref, w2_ref, b2_ref,
                    w3_ref, b3_ref, w4_ref, b4_ref,
                    o_ref,
                    pad1_ref, pad2_ref, pad3_ref, pad4_ref,
                    *, dims):
    """Fused 4-block encoder for one batch block; activations stay in VMEM."""
    H, W, C0, C = dims
    B = x_ref.shape[0]

    # Zero the padded scratch buffers once; interiors are overwritten every
    # grid step, so the zero borders persist across iterations.
    @pl.when(pl.program_id(0) == 0)
    def _():
        pad1_ref[...] = jnp.zeros(pad1_ref.shape, jnp.float32)
        pad2_ref[...] = jnp.zeros(pad2_ref.shape, jnp.float32)
        pad3_ref[...] = jnp.zeros(pad3_ref.shape, jnp.float32)
        pad4_ref[...] = jnp.zeros(pad4_ref.shape, jnp.float32)

    a = x_ref[...]                                                   # (B,H,W,C0)
    a = _conv_relu_pool(pad1_ref, a, w1_ref[...], b1_ref[...], H, W, C0, C)
    H1, W1 = H // 2, W // 2
    a = _conv_relu_pool(pad2_ref, a, w2_ref[...], b2_ref[...], H1, W1, C, C)
    H2, W2 = H1 // 2, W1 // 2
    a = _conv_relu_pool(pad3_ref, a, w3_ref[...], b3_ref[...], H2, W2, C, C)
    H3, W3 = H2 // 2, W2 // 2
    a = _conv_relu_pool(pad4_ref, a, w4_ref[...], b4_ref[...], H3, W3, C, C)
    H4, W4 = H3 // 2, W3 // 2

    # Lane-dense output block (B, H4, W4*C): write each W column at its lane
    # offset (avoids a minor-dims reshape inside the kernel).
    for wv in range(W4):
        o_ref[:, :, wv * C:(wv + 1) * C] = a[:, :, wv, :]


def _pick_batch_block(n):
    """Several images per grid step to amortize per-step overhead, but keep at
    least two grid steps when possible (both v7x TensorCores busy)."""
    for cand in (8, 4, 2):
        if n % cand == 0 and n // cand >= 2:
            return cand
    return 1


def encoder_forward(x, params):
    """x: (N, H, W, C0) float32 NHWC.  Returns (N, H//16, (W//16)*Cout)."""
    N, H, W, C0 = x.shape
    C = params[0][1].shape[0]
    H1, W1 = H // 2, W // 2
    H2, W2 = H1 // 2, W1 // 2
    H3, W3 = H2 // 2, W2 // 2
    H4, W4 = H3 // 2, W3 // 2

    B = _pick_batch_block(N)
    pad_n = (-N) % B
    if pad_n:
        x = jnp.concatenate([x, jnp.zeros((pad_n, H, W, C0), x.dtype)], axis=0)
    Np = N + pad_n

    # Flatten HWIO conv weights to (9*Cin, Cout), rows ordered (ky, kx, ci) to
    # match the kernel's im2col / per-tap ordering.  Biases -> (1, Cout).
    flat = []
    for w, b in params:
        cin, cout = w.shape[2], w.shape[3]
        flat.append(jnp.reshape(w, (9 * cin, cout)))
        flat.append(jnp.reshape(b, (1, cout)))

    kernel = functools.partial(_encoder_kernel, dims=(H, W, C0, C))
    param_specs = [pl.BlockSpec(a.shape, lambda n: (0, 0)) for a in flat]

    out = pl.pallas_call(
        kernel,
        out_shape=jax.ShapeDtypeStruct((Np, H4, W4 * C), jnp.float32),
        grid=(Np // B,),
        in_specs=[pl.BlockSpec((B, H, W, C0), lambda n: (n, 0, 0, 0))]
                 + param_specs,
        out_specs=pl.BlockSpec((B, H4, W4 * C), lambda n: (n, 0, 0)),
        scratch_shapes=[
            pltpu.VMEM((B, H + 2, W + 2, C0), jnp.float32),
            pltpu.VMEM((B, H1 + 2, W1 + 2, C), jnp.float32),
            pltpu.VMEM((B, H2 + 2, W2 + 2, C), jnp.float32),
            pltpu.VMEM((B, H3 + 2, W3 + 2, C), jnp.float32),
        ],
        compiler_params=pltpu.CompilerParams(
            dimension_semantics=("parallel",)),
    )(x, *flat)
    return out[:N]


@jax.jit
def _forward_nchw(v, params):
    """v: (N, C, H, W) float32 NCHW -> (N, features) in torch flatten order."""
    x = jnp.transpose(v, (0, 2, 3, 1))                   # NCHW -> NHWC
    feats = encoder_forward(x, params)                   # (N, H4, W4*C)
    N, H4, WC = feats.shape
    C = params[-1][1].shape[0]
    W4 = WC // C
    # Back to NCHW, then Flatten(B, -1) to match torch's channel-major flatten.
    y = feats.reshape(N, H4, W4, C).transpose(0, 3, 1, 2).reshape(N, -1)
    return y


class ImageFeatureExtractor:
    """JAX/Pallas port of the PyTorch ImageFeatureExtractor (forward pass)."""

    def __init__(self, inputImageDimension, resizedDimension=None, channels=1,
                 key=None):
        self.resizedDimension = resizedDimension or inputImageDimension
        self.inputImageDimension = inputImageDimension
        self.channels = channels
        hid_dim = 64
        z_dim = 64
        dims = [channels, hid_dim, hid_dim, hid_dim, z_dim]

        if key is None:
            key = jax.random.PRNGKey(42)
        self.params = []
        for i in range(4):
            key, k_w, k_b = jax.random.split(key, 3)
            fan_in = dims[i] * 3 * 3
            bound = 1.0 / (fan_in ** 0.5)
            # PyTorch Conv2d default init: U(-1/sqrt(fan_in), 1/sqrt(fan_in)).
            w = jax.random.uniform(k_w, (3, 3, dims[i], dims[i + 1]),
                                   jnp.float32, -bound, bound)   # HWIO
            b = jax.random.uniform(k_b, (dims[i + 1],),
                                   jnp.float32, -bound, bound)
            self.params.append((w, b))

        # Mirrors the PyTorch module exactly (which also never resizes the
        # input and uses float division here).
        outputImageDimensionality = self.resizedDimension / 2 ** 4
        self.outputDimensionality = int(
            z_dim * outputImageDimensionality * outputImageDimensionality)

    def __call__(self, v):
        """1 channel: v: BxWxW or WxW;  >1 channel: v: BxCxWxW or CxWxW."""
        v = jnp.asarray(v, jnp.float32)
        insertBatch = False
        if self.channels == 1:
            if v.ndim == 3:
                v = v[:, None, :, :]
            elif v.ndim == 2:
                v = v[None, :, :]
                insertBatch = True
            else:
                assert False
        elif v.ndim == 4:
            pass
        elif v.ndim == 3:
            insertBatch = True
        else:
            assert False
        if insertBatch:
            v = v[None]

        y = _forward_nchw(v, self.params)
        if insertBatch:
            y = y[0, :]
        return y


if __name__ == "__main__":
    key = jax.random.PRNGKey(0)
    k_in, k_param = jax.random.split(key)

    # channels=1, input v: B x W x W  (B=2, W=16)
    B, W = 2, 16
    v = jax.random.normal(k_in, (B, W, W), dtype=jnp.float32)

    model = ImageFeatureExtractor(inputImageDimension=W, channels=1, key=k_param)
    y = model(v)
    y = jax.block_until_ready(y)

    assert y.shape == (B, model.outputDimensionality), y.shape
    assert y.dtype == jnp.float32

    # Lightweight numerical check against a plain-XLA reference.
    def reference(vv):
        x = jnp.transpose(vv[:, None, :, :], (0, 2, 3, 1))   # NHWC
        for w, b in model.params:
            x = jax.lax.conv_general_dilated(
                x, w, window_strides=(1, 1), padding=((1, 1), (1, 1)),
                dimension_numbers=("NHWC", "HWIO", "NHWC"),
                precision=jax.lax.Precision.HIGHEST)
            x = jnp.maximum(x + b, 0.0)
            x = jax.lax.reduce_window(x, -jnp.inf, jax.lax.max,
                                      (1, 2, 2, 1), (1, 2, 2, 1), "VALID")
        x = jnp.transpose(x, (0, 3, 1, 2))
        return x.reshape(x.shape[0], -1)

    y_ref = jax.block_until_ready(reference(v))
    max_abs = float(jnp.max(jnp.abs(y - y_ref)))
    scale = float(jnp.max(jnp.abs(y_ref))) + 1e-6
    assert max_abs / scale < 0.1, (max_abs, scale)

    print("KERNEL_OK")
</pallas_src>

<mosaic_0001>
module attributes {stable_mosaic.version = 11 : i64} {
  func.func @_encoder_kernel(%arg0: i32, %arg1: memref<1x16x16x1xf32, #tpu.memory_space<vmem>>, %arg2: memref<9x64xf32, #tpu.memory_space<vmem>>, %arg3: memref<1x64xf32, #tpu.memory_space<vmem>>, %arg4: memref<576x64xf32, #tpu.memory_space<vmem>>, %arg5: memref<1x64xf32, #tpu.memory_space<vmem>>, %arg6: memref<576x64xf32, #tpu.memory_space<vmem>>, %arg7: memref<1x64xf32, #tpu.memory_space<vmem>>, %arg8: memref<576x64xf32, #tpu.memory_space<vmem>>, %arg9: memref<1x64xf32, #tpu.memory_space<vmem>>, %arg10: memref<1x1x64xf32, #tpu.memory_space<vmem>>, %arg11: memref<1x18x18x1xf32, #tpu.memory_space<vmem>>, %arg12: memref<1x10x10x64xf32, #tpu.memory_space<vmem>>, %arg13: memref<1x6x6x64xf32, #tpu.memory_space<vmem>>, %arg14: memref<1x4x4x64xf32, #tpu.memory_space<vmem>>) attributes {dimension_semantics = [#tpu.dimension_semantics<parallel>], iteration_bounds = array<i64: 2>, scalar_prefetch = 0 : i64, scratch_operands = 4 : i64, tpu.core_type = #tpu.core_type<tc>, window_params = [{transform_indices = @transform_0, window_bounds = array<i64: 1, 16, 16, 1>}, {pipeline_mode = #tpu.pipeline_mode<synchronous>, transform_indices = @transform_1, window_bounds = array<i64: 9, 64>}, {pipeline_mode = #tpu.pipeline_mode<synchronous>, transform_indices = @transform_2, window_bounds = array<i64: 1, 64>}, {pipeline_mode = #tpu.pipeline_mode<synchronous>, transform_indices = @transform_3, window_bounds = array<i64: 576, 64>}, {pipeline_mode = #tpu.pipeline_mode<synchronous>, transform_indices = @transform_4, window_bounds = array<i64: 1, 64>}, {pipeline_mode = #tpu.pipeline_mode<synchronous>, transform_indices = @transform_5, window_bounds = array<i64: 576, 64>}, {pipeline_mode = #tpu.pipeline_mode<synchronous>, transform_indices = @transform_6, window_bounds = array<i64: 1, 64>}, {pipeline_mode = #tpu.pipeline_mode<synchronous>, transform_indices = @transform_7, window_bounds = array<i64: 576, 64>}, {pipeline_mode = #tpu.pipeline_mode<synchronous>, transform_indices = @transform_8, window_bounds = array<i64: 1, 64>}, {transform_indices = @transform_9, window_bounds = array<i64: 1, 1, 64>}]} {
    %c0_i32 = arith.constant 0 : i32
    %0 = arith.cmpi eq, %arg0, %c0_i32 : i32
    %1 = arith.extui %0 : i1 to i32
    %c0_i32_0 = arith.constant 0 : i32
    %2 = arith.cmpi ne, %1, %c0_i32_0 : i32
    scf.if %2 {
      %cst_196 = arith.constant 0.000000e+00 : f32
      %154 = vector.broadcast %cst_196 : f32 to vector<1x18x18x1xf32>
      %c0_197 = arith.constant 0 : index
      %c0_198 = arith.constant 0 : index
      %c0_199 = arith.constant 0 : index
      %c0_200 = arith.constant 0 : index
      %155 = vector.load %arg11[%c0_197, %c0_198, %c0_199, %c0_200] : memref<1x18x18x1xf32, #tpu.memory_space<vmem>>, vector<1x18x18x1xf32>
      tpu.vector_store %arg11[%c0_197, %c0_198, %c0_199, %c0_200], %154 {strides = array<i32>} : memref<1x18x18x1xf32, #tpu.memory_space<vmem>>, vector<1x18x18x1xf32>,
      %cst_201 = arith.constant 0.000000e+00 : f32
      %156 = vector.broadcast %cst_201 : f32 to vector<1x10x10x64xf32>
      %c0_202 = arith.constant 0 : index
      %c0_203 = arith.constant 0 : index
      %c0_204 = arith.constant 0 : index
      %c0_205 = arith.constant 0 : index
      %157 = vector.load %arg12[%c0_202, %c0_203, %c0_204, %c0_205] : memref<1x10x10x64xf32, #tpu.memory_space<vmem>>, vector<1x10x10x64xf32>
      tpu.vector_store %arg12[%c0_202, %c0_203, %c0_204, %c0_205], %156 {strides = array<i32>} : memref<1x10x10x64xf32, #tpu.memory_space<vmem>>, vector<1x10x10x64xf32>,
      %cst_206 = arith.constant 0.000000e+00 : f32
      %158 = vector.broadcast %cst_206 : f32 to vector<1x6x6x64xf32>
      %c0_207 = arith.constant 0 : index
      %c0_208 = arith.constant 0 : index
      %c0_209 = arith.constant 0 : index
      %c0_210 = arith.constant 0 : index
      %159 = vector.load %arg13[%c0_207, %c0_208, %c0_209, %c0_210] : memref<1x6x6x64xf32, #tpu.memory_space<vmem>>, vector<1x6x6x64xf32>
      tpu.vector_store %arg13[%c0_207, %c0_208, %c0_209, %c0_210], %158 {strides = array<i32>} : memref<1x6x6x64xf32, #tpu.memory_space<vmem>>, vector<1x6x6x64xf32>,
      %cst_211 = arith.constant 0.000000e+00 : f32
      %160 = vector.broadcast %cst_211 : f32 to vector<1x4x4x64xf32>
      %c0_212 = arith.constant 0 : index
      %c0_213 = arith.constant 0 : index
      %c0_214 = arith.constant 0 : index
      %c0_215 = arith.constant 0 : index
      %161 = vector.load %arg14[%c0_212, %c0_213, %c0_214, %c0_215] : memref<1x4x4x64xf32, #tpu.memory_space<vmem>>, vector<1x4x4x64xf32>
      tpu.vector_store %arg14[%c0_212, %c0_213, %c0_214, %c0_215], %160 {strides = array<i32>} : memref<1x4x4x64xf32, #tpu.memory_space<vmem>>, vector<1x4x4x64xf32>,
    } else {
    }
    %c0 = arith.constant 0 : index
    %c0_1 = arith.constant 0 : index
    %c0_2 = arith.constant 0 : index
    %c0_3 = arith.constant 0 : index
    %3 = vector.load %arg1[%c0, %c0_1, %c0_2, %c0_3] : memref<1x16x16x1xf32, #tpu.memory_space<vmem>>, vector<1x16x16x1xf32>
    %c0_4 = arith.constant 0 : index
    %c0_5 = arith.constant 0 : index
    %4 = vector.load %arg2[%c0_4, %c0_5] : memref<9x64xf32, #tpu.memory_space<vmem>>, vector<9x64xf32>
    %c0_6 = arith.constant 0 : index
    %c0_7 = arith.constant 0 : index
    %5 = vector.load %arg3[%c0_6, %c0_7] : memref<1x64xf32, #tpu.memory_space<vmem>>, vector<1x64xf32>
    %c0_8 = arith.constant 0 : index
    %c1 = arith.constant 1 : index
    %c1_9 = arith.constant 1 : index
    %c0_10 = arith.constant 0 : index
    %6 = vector.load %arg11[%c0_8, %c1, %c1_9, %c0_10] : memref<1x18x18x1xf32, #tpu.memory_space<vmem>>, vector<1x16x16x1xf32>
    tpu.vector_store %arg11[%c0_8, %c1, %c1_9, %c0_10], %3 {strides = array<i32>} : memref<1x18x18x1xf32, #tpu.memory_space<vmem>>, vector<1x16x16x1xf32>,
    %cst = arith.constant 0.000000e+00 : f32
    %7 = vector.broadcast %cst : f32 to vector<256x64xf32>
    %c0_11 = arith.constant 0 : index
    %c0_12 = arith.constant 0 : index
    %c0_13 = arith.constant 0 : index
    %c0_14 = arith.constant 0 : index
    %8 = vector.load %arg11[%c0_11, %c0_12, %c0_13, %c0_14] : memref<1x18x18x1xf32, #tpu.memory_space<vmem>>, vector<1x16x16x1xf32>
    %9 = vector.shape_cast %8 : vector<1x16x16x1xf32> to vector<256x1xf32>
    %10 = vector.extract_strided_slice %4 {offsets = [0, 0], sizes = [1, 64], strides = [1, 1]} : vector<9x64xf32> to vector<1x64xf32>
    %11 = vector.broadcast %9 : vector<256x1xf32> to vector<256x64xf32>
    %12 = vector.broadcast %10 : vector<1x64xf32> to vector<256x64xf32>
    %13 = arith.mulf %11, %12 : vector<256x64xf32>
    %14 = arith.addf %7, %13 : vector<256x64xf32>
    %c0_15 = arith.constant 0 : index
    %c0_16 = arith.constant 0 : index
    %c1_17 = arith.constant 1 : index
    %c0_18 = arith.constant 0 : index
    %15 = vector.load %arg11[%c0_15, %c0_16, %c1_17, %c0_18] : memref<1x18x18x1xf32, #tpu.memory_space<vmem>>, vector<1x16x16x1xf32>
    %16 = vector.shape_cast %15 : vector<1x16x16x1xf32> to vector<256x1xf32>
    %17 = vector.extract_strided_slice %4 {offsets = [1, 0], sizes = [1, 64], strides = [1, 1]} : vector<9x64xf32> to vector<1x64xf32>
    %18 = vector.broadcast %16 : vector<256x1xf32> to vector<256x64xf32>
    %19 = vector.broadcast %17 : vector<1x64xf32> to vector<256x64xf32>
    %20 = arith.mulf %18, %19 : vector<256x64xf32>
    %21 = arith.addf %14, %20 : vector<256x64xf32>
    %c0_19 = arith.constant 0 : index
    %c0_20 = arith.constant 0 : index
    %c2 = arith.constant 2 : index
    %c0_21 = arith.constant 0 : index
    %22 = vector.load %arg11[%c0_19, %c0_20, %c2, %c0_21] : memref<1x18x18x1xf32, #tpu.memory_space<vmem>>, vector<1x16x16x1xf32>
    %23 = vector.shape_cast %22 : vector<1x16x16x1xf32> to vector<256x1xf32>
    %24 = vector.extract_strided_slice %4 {offsets = [2, 0], sizes = [1, 64], strides = [1, 1]} : vector<9x64xf32> to vector<1x64xf32>
    %25 = vector.broadcast %23 : vector<256x1xf32> to vector<256x64xf32>
    %26 = vector.broadcast %24 : vector<1x64xf32> to vector<256x64xf32>
    %27 = arith.mulf %25, %26 : vector<256x64xf32>
    %28 = arith.addf %21, %27 : vector<256x64xf32>
    %c0_22 = arith.constant 0 : index
    %c1_23 = arith.constant 1 : index
    %c0_24 = arith.constant 0 : index
    %c0_25 = arith.constant 0 : index
    %29 = vector.load %arg11[%c0_22, %c1_23, %c0_24, %c0_25] : memref<1x18x18x1xf32, #tpu.memory_space<vmem>>, vector<1x16x16x1xf32>
    %30 = vector.shape_cast %29 : vector<1x16x16x1xf32> to vector<256x1xf32>
    %31 = vector.extract_strided_slice %4 {offsets = [3, 0], sizes = [1, 64], strides = [1, 1]} : vector<9x64xf32> to vector<1x64xf32>
    %32 = vector.broadcast %30 : vector<256x1xf32> to vector<256x64xf32>
    %33 = vector.broadcast %31 : vector<1x64xf32> to vector<256x64xf32>
    %34 = arith.mulf %32, %33 : vector<256x64xf32>
    %35 = arith.addf %28, %34 : vector<256x64xf32>
    %c0_26 = arith.constant 0 : index
    %c1_27 = arith.constant 1 : index
    %c1_28 = arith.constant 1 : index
    %c0_29 = arith.constant 0 : index
    %36 = vector.load %arg11[%c0_26, %c1_27, %c1_28, %c0_29] : memref<1x18x18x1xf32, #tpu.memory_space<vmem>>, vector<1x16x16x1xf32>
    %37 = vector.shape_cast %36 : vector<1x16x16x1xf32> to vector<256x1xf32>
    %38 = vector.extract_strided_slice %4 {offsets = [4, 0], sizes = [1, 64], strides = [1, 1]} : vector<9x64xf32> to vector<1x64xf32>
    %39 = vector.broadcast %37 : vector<256x1xf32> to vector<256x64xf32>
    %40 = vector.broadcast %38 : vector<1x64xf32> to vector<256x64xf32>
    %41 = arith.mulf %39, %40 : vector<256x64xf32>
    %42 = arith.addf %35, %41 : vector<256x64xf32>
    %c0_30 = arith.constant 0 : index
    %c1_31 = arith.constant 1 : index
    %c2_32 = arith.constant 2 : index
    %c0_33 = arith.constant 0 : index
    %43 = vector.load %arg11[%c0_30, %c1_31, %c2_32, %c0_33] : memref<1x18x18x1xf32, #tpu.memory_space<vmem>>, vector<1x16x16x1xf32>
    %44 = vector.shape_cast %43 : vector<1x16x16x1xf32> to vector<256x1xf32>
    %45 = vector.extract_strided_slice %4 {offsets = [5, 0], sizes = [1, 64], strides = [1, 1]} : vector<9x64xf32> to vector<1x64xf32>
    %46 = vector.broadcast %44 : vector<256x1xf32> to vector<256x64xf32>
    %47 = vector.broadcast %45 : vector<1x64xf32> to vector<256x64xf32>
    %48 = arith.mulf %46, %47 : vector<256x64xf32>
    %49 = arith.addf %42, %48 : vector<256x64xf32>
    %c0_34 = arith.constant 0 : index
    %c2_35 = arith.constant 2 : index
    %c0_36 = arith.constant 0 : index
    %c0_37 = arith.constant 0 : index
    %50 = vector.load %arg11[%c0_34, %c2_35, %c0_36, %c0_37] : memref<1x18x18x1xf32, #tpu.memory_space<vmem>>, vector<1x16x16x1xf32>
    %51 = vector.shape_cast %50 : vector<1x16x16x1xf32> to vector<256x1xf32>
    %52 = vector.extract_strided_slice %4 {offsets = [6, 0], sizes = [1, 64], strides = [1, 1]} : vector<9x64xf32> to vector<1x64xf32>
    %53 = vector.broadcast %51 : vector<256x1xf32> to vector<256x64xf32>
    %54 = vector.broadcast %52 : vector<1x64xf32> to vector<256x64xf32>
    %55 = arith.mulf %53, %54 : vector<256x64xf32>
    %56 = arith.addf %49, %55 : vector<256x64xf32>
    %c0_38 = arith.constant 0 : index
    %c2_39 = arith.constant 2 : index
    %c1_40 = arith.constant 1 : index
    %c0_41 = arith.constant 0 : index
    %57 = vector.load %arg11[%c0_38, %c2_39, %c1_40, %c0_41] : memref<1x18x18x1xf32, #tpu.memory_space<vmem>>, vector<1x16x16x1xf32>
    %58 = vector.shape_cast %57 : vector<1x16x16x1xf32> to vector<256x1xf32>
    %59 = vector.extract_strided_slice %4 {offsets = [7, 0], sizes = [1, 64], strides = [1, 1]} : vector<9x64xf32> to vector<1x64xf32>
    %60 = vector.broadcast %58 : vector<256x1xf32> to vector<256x64xf32>
    %61 = vector.broadcast %59 : vector<1x64xf32> to vector<256x64xf32>
    %62 = arith.mulf %60, %61 : vector<256x64xf32>
    %63 = arith.addf %56, %62 : vector<256x64xf32>
    %c0_42 = arith.constant 0 : index
    %c2_43 = arith.constant 2 : index
    %c2_44 = arith.constant 2 : index
    %c0_45 = arith.constant 0 : index
    %64 = vector.load %arg11[%c0_42, %c2_43, %c2_44, %c0_45] : memref<1x18x18x1xf32, #tpu.memory_space<vmem>>, vector<1x16x16x1xf32>
    %65 = vector.shape_cast %64 : vector<1x16x16x1xf32> to vector<256x1xf32>
    %66 = vector.extract_strided_slice %4 {offsets = [8, 0], sizes = [1, 64], strides = [1, 1]} : vector<9x64xf32> to vector<1x64xf32>
    %67 = vector.broadcast %65 : vector<256x1xf32> to vector<256x64xf32>
    %68 = vector.broadcast %66 : vector<1x64xf32> to vector<256x64xf32>
    %69 = arith.mulf %67, %68 : vector<256x64xf32>
    %70 = arith.addf %63, %69 : vector<256x64xf32>
    %71 = vector.broadcast %5 : vector<1x64xf32> to vector<256x64xf32>
    %72 = arith.addf %70, %71 : vector<256x64xf32>
    %cst_46 = arith.constant 0.000000e+00 : f32
    %73 = vector.broadcast %cst_46 : f32 to vector<256x64xf32>
    %74 = arith.maximumf %72, %73 : vector<256x64xf32>
    %75 = vector.shape_cast %74 : vector<256x64xf32> to vector<1x16x16x64xf32>
    %76 = vector.shape_cast %75 : vector<1x16x16x64xf32> to vector<1x8x2x16x64xf32>
    %cst_47 = arith.constant dense<0xFF800000> : vector<1x8x16x64xf32>
    %77 = vector.multi_reduction <maximumf>, %76, %cst_47 [2] : vector<1x8x2x16x64xf32> to vector<1x8x16x64xf32>
    %78 = vector.shape_cast %77 : vector<1x8x16x64xf32> to vector<1x8x8x2x64xf32>
    %cst_48 = arith.constant dense<0xFF800000> : vector<1x8x8x64xf32>
    %79 = vector.multi_reduction <maximumf>, %78, %cst_48 [3] : vector<1x8x8x2x64xf32> to vector<1x8x8x64xf32>
    %c0_49 = arith.constant 0 : index
    %c0_50 = arith.constant 0 : index
    %80 = vector.load %arg4[%c0_49, %c0_50] : memref<576x64xf32, #tpu.memory_space<vmem>>, vector<576x64xf32>
    %c0_51 = arith.constant 0 : index
    %c0_52 = arith.constant 0 : index
    %81 = vector.load %arg5[%c0_51, %c0_52] : memref<1x64xf32, #tpu.memory_space<vmem>>, vector<1x64xf32>
    %c0_53 = arith.constant 0 : index
    %c1_54 = arith.constant 1 : index
    %c1_55 = arith.constant 1 : index
    %c0_56 = arith.constant 0 : index
    %82 = vector.load %arg12[%c0_53, %c1_54, %c1_55, %c0_56] : memref<1x10x10x64xf32, #tpu.memory_space<vmem>>, vector<1x8x8x64xf32>
    tpu.vector_store %arg12[%c0_53, %c1_54, %c1_55, %c0_56], %79 {strides = array<i32>} : memref<1x10x10x64xf32, #tpu.memory_space<vmem>>, vector<1x8x8x64xf32>,
    %c0_57 = arith.constant 0 : index
    %c0_58 = arith.constant 0 : index
    %c0_59 = arith.constant 0 : index
    %c0_60 = arith.constant 0 : index
    %83 = vector.load %arg12[%c0_57, %c0_58, %c0_59, %c0_60] : memref<1x10x10x64xf32, #tpu.memory_space<vmem>>, vector<1x8x8x64xf32>
    %c0_61 = arith.constant 0 : index
    %c0_62 = arith.constant 0 : index
    %c1_63 = arith.constant 1 : index
    %c0_64 = arith.constant 0 : index
    %84 = vector.load %arg12[%c0_61, %c0_62, %c1_63, %c0_64] : memref<1x10x10x64xf32, #tpu.memory_space<vmem>>, vector<1x8x8x64xf32>
    %c0_65 = arith.constant 0 : index
    %c0_66 = arith.constant 0 : index
    %c2_67 = arith.constant 2 : index
    %c0_68 = arith.constant 0 : index
    %85 = vector.load %arg12[%c0_65, %c0_66, %c2_67, %c0_68] : memref<1x10x10x64xf32, #tpu.memory_space<vmem>>, vector<1x8x8x64xf32>
    %c0_69 = arith.constant 0 : index
    %c1_70 = arith.constant 1 : index
    %c0_71 = arith.constant 0 : index
    %c0_72 = arith.constant 0 : index
    %86 = vector.load %arg12[%c0_69, %c1_70, %c0_71, %c0_72] : memref<1x10x10x64xf32, #tpu.memory_space<vmem>>, vector<1x8x8x64xf32>
    %c0_73 = arith.constant 0 : index
    %c1_74 = arith.constant 1 : index
    %c1_75 = arith.constant 1 : index
    %c0_76 = arith.constant 0 : index
    %87 = vector.load %arg12[%c0_73, %c1_74, %c1_75, %c0_76] : memref<1x10x10x64xf32, #tpu.memory_space<vmem>>, vector<1x8x8x64xf32>
    %c0_77 = arith.constant 0 : index
    %c1_78 = arith.constant 1 : index
    %c2_79 = arith.constant 2 : index
    %c0_80 = arith.constant 0 : index
    %88 = vector.load %arg12[%c0_77, %c1_78, %c2_79, %c0_80] : memref<1x10x10x64xf32, #tpu.memory_space<vmem>>, vector<1x8x8x64xf32>
    %c0_81 = arith.constant 0 : index
    %c2_82 = arith.constant 2 : index
    %c0_83 = arith.constant 0 : index
    %c0_84 = arith.constant 0 : index
    %89 = vector.load %arg12[%c0_81, %c2_82, %c0_83, %c0_84] : memref<1x10x10x64xf32, #tpu.memory_space<vmem>>, vector<1x8x8x64xf32>
    %c0_85 = arith.constant 0 : index
    %c2_86 = arith.constant 2 : index
    %c1_87 = arith.constant 1 : index
    %c0_88 = arith.constant 0 : index
    %90 = vector.load %arg12[%c0_85, %c2_86, %c1_87, %c0_88] : memref<1x10x10x64xf32, #tpu.memory_space<vmem>>, vector<1x8x8x64xf32>
    %c0_89 = arith.constant 0 : index
    %c2_90 = arith.constant 2 : index
    %c2_91 = arith.constant 2 : index
    %c0_92 = arith.constant 0 : index
    %91 = vector.load %arg12[%c0_89, %c2_90, %c2_91, %c0_92] : memref<1x10x10x64xf32, #tpu.memory_space<vmem>>, vector<1x8x8x64xf32>
    %92 = tpu.concatenate %83, %84, %85, %86, %87, %88, %89, %90, %91 in 3 : vector<1x8x8x64xf32>, vector<1x8x8x64xf32>, vector<1x8x8x64xf32>, vector<1x8x8x64xf32>, vector<1x8x8x64xf32>, vector<1x8x8x64xf32>, vector<1x8x8x64xf32>, vector<1x8x8x64xf32>, vector<1x8x8x64xf32> -> vector<1x8x8x576xf32>
    %93 = vector.shape_cast %92 : vector<1x8x8x576xf32> to vector<64x576xf32>
    %cst_93 = arith.constant dense<0.000000e+00> : vector<64x64xf32>
    %94 = tpu.matmul %93, %80, %cst_93 {dimension_numbers = #tpu.dot_dimension_numbers<[1], [0], [0], [1], [0, 0, 1, 1], [], []>} : vector<64x576xf32>, vector<576x64xf32>, vector<64x64xf32> -> vector<64x64xf32>
    %95 = vector.broadcast %81 : vector<1x64xf32> to vector<64x64xf32>
    %96 = arith.addf %94, %95 : vector<64x64xf32>
    %cst_94 = arith.constant 0.000000e+00 : f32
    %97 = vector.broadcast %cst_94 : f32 to vector<64x64xf32>
    %98 = arith.maximumf %96, %97 : vector<64x64xf32>
    %99 = vector.shape_cast %98 : vector<64x64xf32> to vector<1x8x8x64xf32>
    %100 = vector.shape_cast %99 : vector<1x8x8x64xf32> to vector<1x4x2x8x64xf32>
    %cst_95 = arith.constant dense<0xFF800000> : vector<1x4x8x64xf32>
    %101 = vector.multi_reduction <maximumf>, %100, %cst_95 [2] : vector<1x4x2x8x64xf32> to vector<1x4x8x64xf32>
    %102 = vector.shape_cast %101 : vector<1x4x8x64xf32> to vector<1x4x4x2x64xf32>
    %cst_96 = arith.constant dense<0xFF800000> : vector<1x4x4x64xf32>
    %103 = vector.multi_reduction <maximumf>, %102, %cst_96 [3] : vector<1x4x4x2x64xf32> to vector<1x4x4x64xf32>
    %c0_97 = arith.constant 0 : index
    %c0_98 = arith.constant 0 : index
    %104 = vector.load %arg6[%c0_97, %c0_98] : memref<576x64xf32, #tpu.memory_space<vmem>>, vector<576x64xf32>
    %c0_99 = arith.constant 0 : index
    %c0_100 = arith.constant 0 : index
    %105 = vector.load %arg7[%c0_99, %c0_100] : memref<1x64xf32, #tpu.memory_space<vmem>>, vector<1x64xf32>
    %c0_101 = arith.constant 0 : index
    %c1_102 = arith.constant 1 : index
    %c1_103 = arith.constant 1 : index
    %c0_104 = arith.constant 0 : index
    %106 = vector.load %arg13[%c0_101, %c1_102, %c1_103, %c0_104] : memref<1x6x6x64xf32, #tpu.memory_space<vmem>>, vector<1x4x4x64xf32>
    tpu.vector_store %arg13[%c0_101, %c1_102, %c1_103, %c0_104], %103 {strides = array<i32>} : memref<1x6x6x64xf32, #tpu.memory_space<vmem>>, vector<1x4x4x64xf32>,
    %c0_105 = arith.constant 0 : index
    %c0_106 = arith.constant 0 : index
    %c0_107 = arith.constant 0 : index
    %c0_108 = arith.constant 0 : index
    %107 = vector.load %arg13[%c0_105, %c0_106, %c0_107, %c0_108] : memref<1x6x6x64xf32, #tpu.memory_space<vmem>>, vector<1x4x4x64xf32>
    %c0_109 = arith.constant 0 : index
    %c0_110 = arith.constant 0 : index
    %c1_111 = arith.constant 1 : index
    %c0_112 = arith.constant 0 : index
    %108 = vector.load %arg13[%c0_109, %c0_110, %c1_111, %c0_112] : memref<1x6x6x64xf32, #tpu.memory_space<vmem>>, vector<1x4x4x64xf32>
    %c0_113 = arith.constant 0 : index
    %c0_114 = arith.constant 0 : index
    %c2_115 = arith.constant 2 : index
    %c0_116 = arith.constant 0 : index
    %109 = vector.load %arg13[%c0_113, %c0_114, %c2_115, %c0_116] : memref<1x6x6x64xf32, #tpu.memory_space<vmem>>, vector<1x4x4x64xf32>
    %c0_117 = arith.constant 0 : index
    %c1_118 = arith.constant 1 : index
    %c0_119 = arith.constant 0 : index
    %c0_120 = arith.constant 0 : index
    %110 = vector.load %arg13[%c0_117, %c1_118, %c0_119, %c0_120] : memref<1x6x6x64xf32, #tpu.memory_space<vmem>>, vector<1x4x4x64xf32>
    %c0_121 = arith.constant 0 : index
    %c1_122 = arith.constant 1 : index
    %c1_123 = arith.constant 1 : index
    %c0_124 = arith.constant 0 : index
    %111 = vector.load %arg13[%c0_121, %c1_122, %c1_123, %c0_124] : memref<1x6x6x64xf32, #tpu.memory_space<vmem>>, vector<1x4x4x64xf32>
    %c0_125 = arith.constant 0 : index
    %c1_126 = arith.constant 1 : index
    %c2_127 = arith.constant 2 : index
    %c0_128 = arith.constant 0 : index
    %112 = vector.load %arg13[%c0_125, %c1_126, %c2_127, %c0_128] : memref<1x6x6x64xf32, #tpu.memory_space<vmem>>, vector<1x4x4x64xf32>
    %c0_129 = arith.constant 0 : index
    %c2_130 = arith.constant 2 : index
    %c0_131 = arith.constant 0 : index
    %c0_132 = arith.constant 0 : index
    %113 = vector.load %arg13[%c0_129, %c2_130, %c0_131, %c0_132] : memref<1x6x6x64xf32, #tpu.memory_space<vmem>>, vector<1x4x4x64xf32>
    %c0_133 = arith.constant 0 : index
    %c2_134 = arith.constant 2 : index
    %c1_135 = arith.constant 1 : index
    %c0_136 = arith.constant 0 : index
    %114 = vector.load %arg13[%c0_133, %c2_134, %c1_135, %c0_136] : memref<1x6x6x64xf32, #tpu.memory_space<vmem>>, vector<1x4x4x64xf32>
    %c0_137 = arith.constant 0 : index
    %c2_138 = arith.constant 2 : index
    %c2_139 = arith.constant 2 : index
    %c0_140 = arith.constant 0 : index
    %115 = vector.load %arg13[%c0_137, %c2_138, %c2_139, %c0_140] : memref<1x6x6x64xf32, #tpu.memory_space<vmem>>, vector<1x4x4x64xf32>
    %116 = tpu.concatenate %107, %108, %109, %110, %111, %112, %113, %114, %115 in 3 : vector<1x4x4x64xf32>, vector<1x4x4x64xf32>, vector<1x4x4x64xf32>, vector<1x4x4x64xf32>, vector<1x4x4x64xf32>, vector<1x4x4x64xf32>, vector<1x4x4x64xf32>, vector<1x4x4x64xf32>, vector<1x4x4x64xf32> -> vector<1x4x4x576xf32>
    %117 = vector.shape_cast %116 : vector<1x4x4x576xf32> to vector<16x576xf32>
    %cst_141 = arith.constant dense<0.000000e+00> : vector<16x64xf32>
    %118 = tpu.matmul %117, %104, %cst_141 {dimension_numbers = #tpu.dot_dimension_numbers<[1], [0], [0], [1], [0, 0, 1, 1], [], []>} : vector<16x576xf32>, vector<576x64xf32>, vector<16x64xf32> -> vector<16x64xf32>
    %119 = vector.broadcast %105 : vector<1x64xf32> to vector<16x64xf32>
    %120 = arith.addf %118, %119 : vector<16x64xf32>
    %cst_142 = arith.constant 0.000000e+00 : f32
    %121 = vector.broadcast %cst_142 : f32 to vector<16x64xf32>
    %122 = arith.maximumf %120, %121 : vector<16x64xf32>
    %123 = vector.shape_cast %122 : vector<16x64xf32> to vector<1x4x4x64xf32>
    %124 = vector.shape_cast %123 : vector<1x4x4x64xf32> to vector<1x2x2x4x64xf32>
    %cst_143 = arith.constant dense<0xFF800000> : vector<1x2x4x64xf32>
    %125 = vector.multi_reduction <maximumf>, %124, %cst_143 [2] : vector<1x2x2x4x64xf32> to vector<1x2x4x64xf32>
    %126 = vector.shape_cast %125 : vector<1x2x4x64xf32> to vector<1x2x2x2x64xf32>
    %cst_144 = arith.constant dense<0xFF800000> : vector<1x2x2x64xf32>
    %127 = vector.multi_reduction <maximumf>, %126, %cst_144 [3] : vector<1x2x2x2x64xf32> to vector<1x2x2x64xf32>
    %c0_145 = arith.constant 0 : index
    %c0_146 = arith.constant 0 : index
    %128 = vector.load %arg8[%c0_145, %c0_146] : memref<576x64xf32, #tpu.memory_space<vmem>>, vector<576x64xf32>
    %c0_147 = arith.constant 0 : index
    %c0_148 = arith.constant 0 : index
    %129 = vector.load %arg9[%c0_147, %c0_148] : memref<1x64xf32, #tpu.memory_space<vmem>>, vector<1x64xf32>
    %c0_149 = arith.constant 0 : index
    %c1_150 = arith.constant 1 : index
    %c1_151 = arith.constant 1 : index
    %c0_152 = arith.constant 0 : index
    %130 = vector.load %arg14[%c0_149, %c1_150, %c1_151, %c0_152] : memref<1x4x4x64xf32, #tpu.memory_space<vmem>>, vector<1x2x2x64xf32>
    tpu.vector_store %arg14[%c0_149, %c1_150, %c1_151, %c0_152], %127 {strides = array<i32>} : memref<1x4x4x64xf32, #tpu.memory_space<vmem>>, vector<1x2x2x64xf32>,
    %c0_153 = arith.constant 0 : index
    %c0_154 = arith.constant 0 : index
    %c0_155 = arith.constant 0 : index
    %c0_156 = arith.constant 0 : index
    %131 = vector.load %arg14[%c0_153, %c0_154, %c0_155, %c0_156] : memref<1x4x4x64xf32, #tpu.memory_space<vmem>>, vector<1x2x2x64xf32>
    %c0_157 = arith.constant 0 : index
    %c0_158 = arith.constant 0 : index
    %c1_159 = arith.constant 1 : index
    %c0_160 = arith.constant 0 : index
    %132 = vector.load %arg14[%c0_157, %c0_158, %c1_159, %c0_160] : memref<1x4x4x64xf32, #tpu.memory_space<vmem>>, vector<1x2x2x64xf32>
    %c0_161 = arith.constant 0 : index
    %c0_162 = arith.constant 0 : index
    %c2_163 = arith.constant 2 : index
    %c0_164 = arith.constant 0 : index
    %133 = vector.load %arg14[%c0_161, %c0_162, %c2_163, %c0_164] : memref<1x4x4x64xf32, #tpu.memory_space<vmem>>, vector<1x2x2x64xf32>
    %c0_165 = arith.constant 0 : index
    %c1_166 = arith.constant 1 : index
    %c0_167 = arith.constant 0 : index
    %c0_168 = arith.constant 0 : index
    %134 = vector.load %arg14[%c0_165, %c1_166, %c0_167, %c0_168] : memref<1x4x4x64xf32, #tpu.memory_space<vmem>>, vector<1x2x2x64xf32>
    %c0_169 = arith.constant 0 : index
    %c1_170 = arith.constant 1 : index
    %c1_171 = arith.constant 1 : index
    %c0_172 = arith.constant 0 : index
    %135 = vector.load %arg14[%c0_169, %c1_170, %c1_171, %c0_172] : memref<1x4x4x64xf32, #tpu.memory_space<vmem>>, vector<1x2x2x64xf32>
    %c0_173 = arith.constant 0 : index
    %c1_174 = arith.constant 1 : index
    %c2_175 = arith.constant 2 : index
    %c0_176 = arith.constant 0 : index
    %136 = vector.load %arg14[%c0_173, %c1_174, %c2_175, %c0_176] : memref<1x4x4x64xf32, #tpu.memory_space<vmem>>, vector<1x2x2x64xf32>
    %c0_177 = arith.constant 0 : index
    %c2_178 = arith.constant 2 : index
    %c0_179 = arith.constant 0 : index
    %c0_180 = arith.constant 0 : index
    %137 = vector.load %arg14[%c0_177, %c2_178, %c0_179, %c0_180] : memref<1x4x4x64xf32, #tpu.memory_space<vmem>>, vector<1x2x2x64xf32>
    %c0_181 = arith.constant 0 : index
    %c2_182 = arith.constant 2 : index
    %c1_183 = arith.constant 1 : index
    %c0_184 = arith.constant 0 : index
    %138 = vector.load %arg14[%c0_181, %c2_182, %c1_183, %c0_184] : memref<1x4x4x64xf32, #tpu.memory_space<vmem>>, vector<1x2x2x64xf32>
    %c0_185 = arith.constant 0 : index
    %c2_186 = arith.constant 2 : index
    %c2_187 = arith.constant 2 : index
    %c0_188 = arith.constant 0 : index
    %139 = vector.load %arg14[%c0_185, %c2_186, %c2_187, %c0_188] : memref<1x4x4x64xf32, #tpu.memory_space<vmem>>, vector<1x2x2x64xf32>
    %140 = tpu.concatenate %131, %132, %133, %134, %135, %136, %137, %138, %139 in 3 : vector<1x2x2x64xf32>, vector<1x2x2x64xf32>, vector<1x2x2x64xf32>, vector<1x2x2x64xf32>, vector<1x2x2x64xf32>, vector<1x2x2x64xf32>, vector<1x2x2x64xf32>, vector<1x2x2x64xf32>, vector<1x2x2x64xf32> -> vector<1x2x2x576xf32>
    %141 = vector.shape_cast %140 : vector<1x2x2x576xf32> to vector<4x576xf32>
    %cst_189 = arith.constant dense<0.000000e+00> : vector<4x64xf32>
    %142 = tpu.matmul %141, %128, %cst_189 {dimension_numbers = #tpu.dot_dimension_numbers<[1], [0], [0], [1], [0, 0, 1, 1], [], []>} : vector<4x576xf32>, vector<576x64xf32>, vector<4x64xf32> -> vector<4x64xf32>
    %143 = vector.broadcast %129 : vector<1x64xf32> to vector<4x64xf32>
    %144 = arith.addf %142, %143 : vector<4x64xf32>
    %cst_190 = arith.constant 0.000000e+00 : f32
    %145 = vector.broadcast %cst_190 : f32 to vector<4x64xf32>
    %146 = arith.maximumf %144, %145 : vector<4x64xf32>
    %147 = vector.shape_cast %146 : vector<4x64xf32> to vector<1x2x2x64xf32>
    %148 = vector.shape_cast %147 : vector<1x2x2x64xf32> to vector<1x1x2x2x64xf32>
    %cst_191 = arith.constant dense<0xFF800000> : vector<1x1x2x64xf32>
    %149 = vector.multi_reduction <maximumf>, %148, %cst_191 [2] : vector<1x1x2x2x64xf32> to vector<1x1x2x64xf32>
    %150 = vector.shape_cast %149 : vector<1x1x2x64xf32> to vector<1x1x1x2x64xf32>
    %cst_192 = arith.constant dense<0xFF800000> : vector<1x1x1x64xf32>
    %151 = vector.multi_reduction <maximumf>, %150, %cst_192 [3] : vector<1x1x1x2x64xf32> to vector<1x1x1x64xf32>
    %152 = vector.shape_cast %151 : vector<1x1x1x64xf32> to vector<1x1x64xf32>
    %c0_193 = arith.constant 0 : index
    %c0_194 = arith.constant 0 : index
    %c0_195 = arith.constant 0 : index
    %153 = vector.load %arg10[%c0_193, %c0_194, %c0_195] : memref<1x1x64xf32, #tpu.memory_space<vmem>>, vector<1x1x64xf32>
    tpu.vector_store %arg10[%c0_193, %c0_194, %c0_195], %152 {strides = array<i32>} : memref<1x1x64xf32, #tpu.memory_space<vmem>>, vector<1x1x64xf32>,
    return
  }
  func.func @transform_0(%arg0: i32) -> (i32, i32, i32, i32) {
    %c0_i32 = arith.constant 0 : i32
    %c0_i32_0 = arith.constant 0 : i32
    %c0_i32_1 = arith.constant 0 : i32
    %c0_i32_2 = arith.constant 0 : i32
    return %arg0, %c0_i32, %c0_i32_0, %c0_i32_1 : i32, i32, i32, i32
  }
  func.func @transform_1(%arg0: i32) -> (i32, i32) {
    %c0_i32 = arith.constant 0 : i32
    %c0_i32_0 = arith.constant 0 : i32
    %c0_i32_1 = arith.constant 0 : i32
    return %c0_i32, %c0_i32_0 : i32, i32
  }
  func.func @transform_2(%arg0: i32) -> (i32, i32) {
    %c0_i32 = arith.constant 0 : i32
    %c0_i32_0 = arith.constant 0 : i32
    %c0_i32_1 = arith.constant 0 : i32
    return %c0_i32, %c0_i32_0 : i32, i32
  }
  func.func @transform_3(%arg0: i32) -> (i32, i32) {
    %c0_i32 = arith.constant 0 : i32
    %c0_i32_0 = arith.constant 0 : i32
    %c0_i32_1 = arith.constant 0 : i32
    return %c0_i32, %c0_i32_0 : i32, i32
  }
  func.func @transform_4(%arg0: i32) -> (i32, i32) {
    %c0_i32 = arith.constant 0 : i32
    %c0_i32_0 = arith.constant 0 : i32
    %c0_i32_1 = arith.constant 0 : i32
    return %c0_i32, %c0_i32_0 : i32, i32
  }
  func.func @transform_5(%arg0: i32) -> (i32, i32) {
    %c0_i32 = arith.constant 0 : i32
    %c0_i32_0 = arith.constant 0 : i32
    %c0_i32_1 = arith.constant 0 : i32
    return %c0_i32, %c0_i32_0 : i32, i32
  }
  func.func @transform_6(%arg0: i32) -> (i32, i32) {
    %c0_i32 = arith.constant 0 : i32
    %c0_i32_0 = arith.constant 0 : i32
    %c0_i32_1 = arith.constant 0 : i32
    return %c0_i32, %c0_i32_0 : i32, i32
  }
  func.func @transform_7(%arg0: i32) -> (i32, i32) {
    %c0_i32 = arith.constant 0 : i32
    %c0_i32_0 = arith.constant 0 : i32
    %c0_i32_1 = arith.constant 0 : i32
    return %c0_i32, %c0_i32_0 : i32, i32
  }
  func.func @transform_8(%arg0: i32) -> (i32, i32) {
    %c0_i32 = arith.constant 0 : i32
    %c0_i32_0 = arith.constant 0 : i32
    %c0_i32_1 = arith.constant 0 : i32
    return %c0_i32, %c0_i32_0 : i32, i32
  }
  func.func @transform_9(%arg0: i32) -> (i32, i32, i32) {
    %c0_i32 = arith.constant 0 : i32
    %c0_i32_0 = arith.constant 0 : i32
    %c0_i32_1 = arith.constant 0 : i32
    return %arg0, %c0_i32, %c0_i32_0 : i32, i32, i32
  }
}

</mosaic_0001>

<bundles_post_ra>
// kernel: _forward_nchw.1
= control target key start
LH: loop header
LB: loop body
LE: loop exit
PB: predicated region body
PF: predicated region fallthrough
CT: control target
= control target key end

     0   :  { %14 = vsyncpa [#allocation7], 0  ;;  %s9791_s0 = inlined_call_operand.vmem [shape: f32[2,16,16,1], index: 0, kind: input, shape index: {}]   ;;  %s9792_s1 = inlined_call_operand.vmem [shape: f32[9,64], index: 1, kind: input, shape index: {}]   ;;  %s9793_s2 = inlined_call_operand.vmem [shape: f32[1,64], index: 2, kind: input, shape index: {}]   ;;  %s9794_s3 = inlined_call_operand.vmem [shape: f32[576,64], index: 3, kind: input, shape index: {}]   ;;  %s9795_s4 = inlined_call_operand.vmem [shape: f32[1,64], index: 4, kind: input, shape index: {}]   ;;  %s9796_s5 = inlined_call_operand.hbm [shape: f32[576,64], index: 5, kind: input, shape index: {}]   ;;  %s9797_s6 = inlined_call_operand.vmem [shape: f32[1,64], index: 6, kind: input, shape index: {}]   ;;  %s9798_s7 = inlined_call_operand.hbm [shape: f32[576,64], index: 7, kind: input, shape index: {}]   ;;  %s9799_s8 = inlined_call_operand.vmem [shape: f32[1,64], index: 8, kind: input, shape index: {}]   ;;  %s9800_s9 = inlined_call_operand.hbm [shape: f32[2,1,64], index: 9, kind: output, shape index: {}]  }
   0x1   :  { %15 = vsyncpa [#allocation10], 0 }
   0x2   :  { %16 = vsyncpa [#allocation8], 0 }
   0x3   :  { %18 = vsyncpa [#allocation8 + $0x1], 0  ;;  %s6923_s30 = smov 0   ;;  %s6925_s10 = smov 0  }
   0x4   :  { %s6927_s11 = smov 0   ;;  %s6929_s12 = smov 0  }
   0x5 LB: > { %9817 = sst [smem:[#allocation15_spill]] %s6855_s11  ;;  %s6944_s13 = sadd.s32 4294967295, %s6859_s12   ;;  %s6859_s12 = sphi %s6929_s12, %s10153_s12   ;;  %s6855_s11 = sphi %s6927_s11, %s10155_s11   ;;  %s6851_s10 = sphi %s6925_s10, %s10157_s10   ;;  %s6847_s30 = sphi %s6923_s30, %s10156_s30  }
   0x6   : > { %s5935_s14 = sadd.s32 4294967294, %s6859_s12   ;;  %s6948_s15 = sadd.s32 1, %s6859_s12  }
   0x7   : > { %9818 = sst [smem:[#allocation16_spill]] %s6948_s15  ;;  %s225_s16 = sadd.s32 1, %s6855_s11 }
   0x8   : > { %s222_s17 = ssub.s32 %s6859_s12, %s6948_s15  ;;  %p235_p0 = scmp.ne.s32.totalorder %s6855_s11, %s6851_s10 }
   0x9   : > { %p223_p1 = scmp.eq.s32.totalorder %s222_s17, 0  ;;  %p236_p2 = scmp.eq.s32.totalorder %s6944_s13, 1 }
   0xa   : > { %p241_p3 = scmp.ne.s32.totalorder %s6851_s10, %s6847_s30  ;;  %p242_p4 = scmp.eq.s32.totalorder %s5935_s14, 1 }
   0xb   : > { %s6959_s18 = scalar_select %p223_p1, %s6855_s11, %s225_s16  }
   0xc   : > { %p6961_p5 = por %p236_p2, %p235_p0  ;;  %p6965_p6 = por %p242_p4, %p241_p3 }
   0xd   : > { %9819 = sst [smem:[#allocation17_spill]] %s6959_s18  ;;  %p5936_p7 = scmp.ge.s32.totalorder %s6859_s12, 1 }
   0xe   : > { %s9820_s19 = scalar_select %p6961_p5, 1, 0 }
   0xf   : > { %s9821_s20 = scalar_select %p6965_p6, 1, 0 }
  0x10   : > { %p249_p8 = scmp.lt.s32.totalorder %s6859_s12, 3  ;;  %p9801_p10 = scmp.eq.s32.totalorder %s6944_s13, 0 }
  0x11   : > { %s6861_s22 = smov [#allocation6]   ;;  %s6862_s25 = smov [#allocation9]  }
  0x12   : > { %p6973_p11 = pnand %p5936_p7, %p249_p8  ;;  %s273_s23 = sshll.u32 %s6861_s22, 4  ;;  %s274_s23 = int_to_ptr.vmem [resolvable:$true] %s273_s23 }
  0x13   : > { %s289_s26 = sshll.u32 %s6862_s25, 4  ;;  %s6733_s29 = scalar_lea.hbm %s9796_s5, 9216  ;;  %s6985_s26 = int_to_ptr.vmem [resolvable:$true] %s289_s26 }
  0x14   : > { %s9822_s21 = scalar_select %p6973_p11, 1, 0 }
  0x15   : > { %p6583_p12 = pneg %p6973_p11  ;;  %p6734_p0 = scmp.ne.s32.totalorder %s9796_s5, %s6733_s29 }
  0x16   : > { %p6740_p4 = scmp.lt.u32.totalorder %s6733_s29, %s9796_s5 }
  0x17   : > { %p6981_p13 = pnand %p9801_p10, %p6583_p12 }
  0x19   : > { %p6735_p1 = pneg %p6981_p13 }
  0x1b   : > { %p6736_p2 = pnand %p6735_p1, %p6734_p0 }
  0x1d   : > { %p6737_p3 = pneg %p6736_p2 }
  0x1f   : > { %p6742_p7 = pnand %p6740_p4, %p6737_p3 }
  0x21   : > { %6745 = shalt.err (!%p6742_p7)
}
  0x22   : > { %s6746_s25 = scalar_lea.vmem %s274_s23, 9216  ;;  %p6754_p10 = scmp.lt.s32.totalorder %s274_s23, %s274_s23 }
  0x23   : > { %p6747_p8 = scmp.ne.s32.totalorder %s274_s23, %s6746_s25  ;;  %p6755_p6 = scmp.lt.s32.totalorder %s6746_s25, %s6746_s25 }
  0x25   : > { %p6749_p12 = pnand %p6747_p8, %p6735_p1  ;;  %p6756_p5 = por %p6755_p6, %p6754_p10 }
  0x27   : > { %p6750_p9 = pneg %p6749_p12 }
  0x29   : > { %p6757_p11 = pnand %p6756_p5, %p6750_p9 }
  0x2b   : > { %6760 = shalt.err (!%p6757_p11)
}
  0x2c   : > { %s6863_s27 = smov 128   ;;  %s6864_s28 = smov 8  }
  0x2d   : > { %6586 = dma.hbm_to_vmem [thread:$0]  (!%p6981_p13), %s9796_s5, 9216, %s274_s23, [#allocation7], %s6863_s27, %s6863_s27, %s6864_s28  }
  0x2e   : > { %s6761_s22 = scalar_lea.hbm %s9798_s7, 9216 }
  0x2f   : > { %p6762_p0 = scmp.ne.s32.totalorder %s9798_s7, %s6761_s22  ;;  %p6768_p9 = scmp.lt.u32.totalorder %s6761_s22, %s9798_s7 }
  0x31   : > { %p6764_p5 = pnand %p6762_p0, %p6735_p1 }
  0x33   : > { %p6765_p6 = pneg %p6764_p5 }
  0x35   : > { %p6770_p10 = pnand %p6768_p9, %p6765_p6 }
  0x37   : > { %6773 = shalt.err (!%p6770_p10)
}
  0x38   : > { %s6774_s23 = scalar_lea.vmem %s6985_s26, 9216  ;;  %p6782_p4 = scmp.lt.s32.totalorder %s6985_s26, %s6985_s26 }
  0x39   : > { %p6775_p11 = scmp.ne.s32.totalorder %s6985_s26, %s6774_s23  ;;  %p6783_p7 = scmp.lt.s32.totalorder %s6774_s23, %s6774_s23 }
  0x3b   : > { %p6777_p2 = pnand %p6775_p11, %p6735_p1  ;;  %p6784_p8 = por %p6783_p7, %p6782_p4 }
  0x3d   : > { %p6778_p3 = pneg %p6777_p2 }
  0x3f   : > { %p6785_p12 = pnand %p6784_p8, %p6778_p3 }
  0x41   : > { %6788 = shalt.err (!%p6785_p12)
}
  0x42   : > { %6589 = dma.hbm_to_vmem [thread:$0]  (!%p6981_p13), %s9798_s7, 9216, %s6985_s26, [#allocation10], %s6863_s27, %s6863_s27, %s6864_s28  }
  0x43   : > { %p9824_p0 = scmp.ne.s32.totalorder %s9822_s21, 0 }
  0x45   : > { %316 = sbr.rel (%p9824_p0) target bundleno = 2077 (0x81d), region = 56 }
  0x4c   : > { %p9825_p5 = scmp.eq.s32.totalorder %s6944_s13, 0 }
  0x4e   : > { %6834 = dma.done.wait (%p9825_p5), [#allocation7], 9216   ;;  %p9826_p1 = pmov %p9825_p5 }
  0x50   : > { %6836 = vsyncadd (%p9826_p1), [#allocation7], 4294958080  ;;  %p9827_p6 = pmov %p9826_p1 }
  0x51   : > { %p9828_p9 = pmov %p9826_p1 }
  0x52   : > { %6838 = dma.done.wait (%p9827_p6), [#allocation10], 9216  }
  0x53   : > { %6840 = vsyncadd (%p9828_p9), [#allocation10], 4294958080  ;;  %s353_s18 = sand.u32 1, %s6851_s10   ;;  %p355_p13 = scmp.lt.s32.totalorder %s6944_s13, 1 }
  0x54   : > { %s7054_s29 = scalar_lea.vmem [#allocation11], %s353_s18  ;;  %p9829_p10 = scmp.ne.s32.totalorder %s6944_s13, 0 }
  0x55   : > { %s356_s21 = scalar_select %p355_p13, %s6944_s13, 1 }
  0x56   : > { %363 = sbr.rel (%p9829_p10) target bundleno = 129 (0x81), region = 68  ;;  %vm364_vm0 = vcmask (!%p9829_p10), 7168   ;;  %vm367_vm1 = vcmask (!%p9829_p10), 1024   ;;  %vm420_vm2 = vcmask (!%p9829_p10), 523264   ;;  %v6865_v0 = vmov (!%p9829_p10), 0.0  }
  0x57   : > { %s5977_s24 = sshll.u32 %s356_s21, 8  ;;  %365 = vst.msk [vmem:[#allocation2] sm:$0xff] (!%p9829_p10), %vm364_vm0, %v6865_v0  ;;  %366 = vst.msk [vmem:[#allocation2 + $0x8] sm:$0xff] (!%p9829_p10), %vm364_vm0, %v6865_v0  ;;  %vm422_vm3 = vcmask (!%p9829_p10), 517120   ;;  %vm442_vm4 = vcmask (!%p9829_p10), 521216   ;;  %vm449_vm5 = vcmask (!%p9829_p10), 519168  }
  0x58   : > { %s7050_s28 = scalar_lea.vmem %s9791_s0, %s5977_s24  ;;  %369 = vst.msk [vmem:[#allocation2 + $0x18] sm:$0xff] (!%p9829_p10), %vm364_vm0, %v6865_v0  ;;  %370 = vst.msk [vmem:[#allocation2 + $0x20] sm:$0xff] (!%p9829_p10), %vm364_vm0, %v6865_v0 }
  0x59   : > { %372 = vst.msk [vmem:[#allocation2 + $0x30] sm:$0xff] (!%p9829_p10), %vm364_vm0, %v6865_v0  ;;  %373 = vst.msk [vmem:[#allocation2 + $0x38] sm:$0xff] (!%p9829_p10), %vm364_vm0, %v6865_v0 }
  0x5a   : > { %375 = vst.msk [vmem:[#allocation2 + $0x48] sm:$0xff] (!%p9829_p10), %vm364_vm0, %v6865_v0  ;;  %376 = vst.msk [vmem:[#allocation2 + $0x50] sm:$0xff] (!%p9829_p10), %vm364_vm0, %v6865_v0 }
  0x5b   : > { %378 = vst.msk [vmem:[#allocation2 + $0x60] sm:$0xff] (!%p9829_p10), %vm364_vm0, %v6865_v0  ;;  %379 = vst.msk [vmem:[#allocation2 + $0x68] sm:$0xff] (!%p9829_p10), %vm364_vm0, %v6865_v0 }
  0x5c   : > { %381 = vst.msk [vmem:[#allocation2 + $0x78] sm:$0xff] (!%p9829_p10), %vm364_vm0, %v6865_v0  ;;  %382 = vst.msk [vmem:[#allocation2 + $0x80] sm:$0xff] (!%p9829_p10), %vm364_vm0, %v6865_v0 }
  0x5d   : > { %384 = vst.msk [vmem:[#allocation2 + $0x90] sm:$0xff] %vm364_vm0, %v6865_v0  ;;  %385 = vst.msk [vmem:[#allocation2 + $0x98] sm:$0xff] %vm364_vm0, %v6865_v0 }
  0x5e   : > { %387 = vst.msk [vmem:[#allocation2 + $0xa8] sm:$0xff] %vm364_vm0, %v6865_v0  ;;  %388 = vst.msk [vmem:[#allocation2 + $0xb0] sm:$0xff] %vm364_vm0, %v6865_v0 }
  0x5f   : > { %390 = vst.msk [vmem:[#allocation2 + $0xc0] sm:$0xff] %vm364_vm0, %v6865_v0  ;;  %391 = vst.msk [vmem:[#allocation2 + $0xc8] sm:$0xff] %vm364_vm0, %v6865_v0 }
  0x60   : > { %393 = vst.msk [vmem:[#allocation2 + $0xd8] sm:$0xff] %vm364_vm0, %v6865_v0  ;;  %394 = vst.msk [vmem:[#allocation2 + $0xe0] sm:$0xff] %vm364_vm0, %v6865_v0 }
  0x61   : > { %396 = vst.msk [vmem:[#allocation2 + $0xf0] sm:$0xff] %vm364_vm0, %v6865_v0  ;;  %397 = vst.msk [vmem:[#allocation2 + $0xf8] sm:$0xff] %vm364_vm0, %v6865_v0 }
  0x62   : > { %399 = vst.msk [vmem:[#allocation2 + $0x108] sm:$0xff] %vm364_vm0, %v6865_v0  ;;  %400 = vst.msk [vmem:[#allocation2 + $0x110] sm:$0xff] %vm364_vm0, %v6865_v0 }
  0x63   : > { %402 = vst.msk [vmem:[#allocation2 + $0x120] sm:$0xff] %vm364_vm0, %v6865_v0  ;;  %403 = vst.msk [vmem:[#allocation2 + $0x128] sm:$0xff] %vm364_vm0, %v6865_v0 }
  0x64   : > { %405 = vst.msk [vmem:[#allocation2 + $0x138] sm:$0xff] %vm364_vm0, %v6865_v0  ;;  %406 = vst.msk [vmem:[#allocation2 + $0x140] sm:$0xff] %vm364_vm0, %v6865_v0 }
  0x65   : > { %408 = vst.msk [vmem:[#allocation2 + $0x150] sm:$0xff] %vm364_vm0, %v6865_v0  ;;  %409 = vst.msk [vmem:[#allocation2 + $0x158] sm:$0xff] %vm364_vm0, %v6865_v0 }
  0x66   : > { %411 = vst.msk [vmem:[#allocation2 + $0x168] sm:$0xff] %vm364_vm0, %v6865_v0  ;;  %412 = vst.msk [vmem:[#allocation2 + $0x170] sm:$0xff] %vm364_vm0, %v6865_v0 }
  0x67   : > { %414 = vst.msk [vmem:[#allocation2 + $0x180] sm:$0xff] %vm364_vm0, %v6865_v0  ;;  %415 = vst.msk [vmem:[#allocation2 + $0x188] sm:$0xff] %vm364_vm0, %v6865_v0 }
  0x68   : > { %417 = vst.msk [vmem:[#allocation2 + $0x198] sm:$0xff] %vm364_vm0, %v6865_v0  ;;  %418 = vst.msk [vmem:[#allocation2 + $0x1a0] sm:$0xff] %vm364_vm0, %v6865_v0 }
  0x69   : > { %368 = vst.msk [vmem:[#allocation2 + $0x10] sm:$0x3] %vm367_vm1, %v6865_v0  ;;  %371 = vst.msk [vmem:[#allocation2 + $0x28] sm:$0x3] %vm367_vm1, %v6865_v0 }
  0x6a   : > { %374 = vst.msk [vmem:[#allocation2 + $0x40] sm:$0x3] %vm367_vm1, %v6865_v0  ;;  %377 = vst.msk [vmem:[#allocation2 + $0x58] sm:$0x3] %vm367_vm1, %v6865_v0 }
  0x6b   : > { %380 = vst.msk [vmem:[#allocation2 + $0x70] sm:$0x3] %vm367_vm1, %v6865_v0  ;;  %383 = vst.msk [vmem:[#allocation2 + $0x88] sm:$0x3] %vm367_vm1, %v6865_v0 }
  0x6c   : > { %386 = vst.msk [vmem:[#allocation2 + $0xa0] sm:$0x3] %vm367_vm1, %v6865_v0  ;;  %389 = vst.msk [vmem:[#allocation2 + $0xb8] sm:$0x3] %vm367_vm1, %v6865_v0 }
  0x6d   : > { %392 = vst.msk [vmem:[#allocation2 + $0xd0] sm:$0x3] %vm367_vm1, %v6865_v0  ;;  %395 = vst.msk [vmem:[#allocation2 + $0xe8] sm:$0x3] %vm367_vm1, %v6865_v0 }
  0x6e   : > { %398 = vst.msk [vmem:[#allocation2 + $0x100] sm:$0x3] %vm367_vm1, %v6865_v0  ;;  %401 = vst.msk [vmem:[#allocation2 + $0x118] sm:$0x3] %vm367_vm1, %v6865_v0 }
  0x6f   : > { %404 = vst.msk [vmem:[#allocation2 + $0x130] sm:$0x3] %vm367_vm1, %v6865_v0  ;;  %407 = vst.msk [vmem:[#allocation2 + $0x148] sm:$0x3] %vm367_vm1, %v6865_v0 }
  0x70   : > { %410 = vst.msk [vmem:[#allocation2 + $0x160] sm:$0x3] %vm367_vm1, %v6865_v0  ;;  %413 = vst.msk [vmem:[#allocation2 + $0x178] sm:$0x3] %vm367_vm1, %v6865_v0 }
  0x71   : > { %416 = vst.msk [vmem:[#allocation2 + $0x190] sm:$0x3] %vm367_vm1, %v6865_v0  ;;  %419 = vst.msk [vmem:[#allocation2 + $0x1a8] sm:$0x3] %vm367_vm1, %v6865_v0 }
  0x72   : > { %421 = vst.msk [vmem:[#allocation3] sm:$0xff] %vm420_vm2, %v6865_v0  ;;  %424 = vst.msk [vmem:[#allocation3 + $0x10] sm:$0xff] %vm420_vm2, %v6865_v0 }
  0x73   : > { %426 = vst.msk [vmem:[#allocation3 + $0x20] sm:$0xff] %vm420_vm2, %v6865_v0  ;;  %428 = vst.msk [vmem:[#allocation3 + $0x30] sm:$0xff] %vm420_vm2, %v6865_v0 }
  0x74   : > { %430 = vst.msk [vmem:[#allocation3 + $0x40] sm:$0xff] %vm420_vm2, %v6865_v0  ;;  %432 = vst.msk [vmem:[#allocation3 + $0x50] sm:$0xff] %vm420_vm2, %v6865_v0 }
  0x75   : > { %434 = vst.msk [vmem:[#allocation3 + $0x60] sm:$0xff] %vm420_vm2, %v6865_v0  ;;  %436 = vst.msk [vmem:[#allocation3 + $0x70] sm:$0xff] %vm420_vm2, %v6865_v0 }
  0x76   : > { %438 = vst.msk [vmem:[#allocation3 + $0x80] sm:$0xff] %vm420_vm2, %v6865_v0  ;;  %440 = vst.msk [vmem:[#allocation3 + $0x90] sm:$0xff] %vm420_vm2, %v6865_v0 }
  0x77   : > { %423 = vst.msk [vmem:[#allocation3 + $0x8] sm:$0x3] %vm422_vm3, %v6865_v0  ;;  %425 = vst.msk [vmem:[#allocation3 + $0x18] sm:$0x3] %vm422_vm3, %v6865_v0 }
  0x78   : > { %427 = vst.msk [vmem:[#allocation3 + $0x28] sm:$0x3] %vm422_vm3, %v6865_v0  ;;  %429 = vst.msk [vmem:[#allocation3 + $0x38] sm:$0x3] %vm422_vm3, %v6865_v0 }
  0x79   : > { %431 = vst.msk [vmem:[#allocation3 + $0x48] sm:$0x3] %vm422_vm3, %v6865_v0  ;;  %433 = vst.msk [vmem:[#allocation3 + $0x58] sm:$0x3] %vm422_vm3, %v6865_v0 }
  0x7a   : > { %435 = vst.msk [vmem:[#allocation3 + $0x68] sm:$0x3] %vm422_vm3, %v6865_v0  ;;  %437 = vst.msk [vmem:[#allocation3 + $0x78] sm:$0x3] %vm422_vm3, %v6865_v0 }
  0x7b   : > { %439 = vst.msk [vmem:[#allocation3 + $0x88] sm:$0x3] %vm422_vm3, %v6865_v0  ;;  %441 = vst.msk [vmem:[#allocation3 + $0x98] sm:$0x3] %vm422_vm3, %v6865_v0 }
  0x7c   : > { %443 = vst.msk [vmem:[#allocation4] sm:$0x3f] %vm442_vm4, %v6865_v0  ;;  %444 = vst.msk [vmem:[#allocation4 + $0x8] sm:$0x3f] %vm442_vm4, %v6865_v0 }
  0x7d   : > { %445 = vst.msk [vmem:[#allocation4 + $0x10] sm:$0x3f] %vm442_vm4, %v6865_v0  ;;  %446 = vst.msk [vmem:[#allocation4 + $0x18] sm:$0x3f] %vm442_vm4, %v6865_v0 }
  0x7e   : > { %447 = vst.msk [vmem:[#allocation4 + $0x20] sm:$0x3f] %vm442_vm4, %v6865_v0  ;;  %448 = vst.msk [vmem:[#allocation4 + $0x28] sm:$0x3f] %vm442_vm4, %v6865_v0 }
  0x7f   : > { %450 = vst.msk [vmem:[#allocation5] sm:$0xf] %vm449_vm5, %v6865_v0  ;;  %451 = vst.msk [vmem:[#allocation5 + $0x4] sm:$0xf] %vm449_vm5, %v6865_v0 }
  0x80   : > { %452 = vst.msk [vmem:[#allocation5 + $0x8] sm:$0xf] %vm449_vm5, %v6865_v0  ;;  %453 = vst.msk [vmem:[#allocation5 + $0xc] sm:$0xf] %vm449_vm5, %v6865_v0 }
  0x81 PF: > { %v454_v2 = vld [vmem:[%s7050_s28] sm:$0xff]  ;;  %vm490_vm6 = vcmask 7168   ;;  %v6866_v3 = vmov 0   ;;  %v456_v5 = vld [vmem:[%s7050_s28 + $0x10] sm:$0xff]  ;;  %v455_v6 = vld [vmem:[%s7050_s28 + $0x8] sm:$0xff]  ;;  %vm2934_vm7 = vcmask 523264  }
  0x82   : > { %v523_v1 = vld [vmem:[#allocation2] sm:$0xff]  ;;  %6642 = vset.pattern.permute.xlu0 %v6866_v3  ;;  %v524_v4 = vld [vmem:[#allocation2 + $0x8] sm:$0xff]  ;;  %6643 = vset.pattern.permute.xlu1 %v6866_v3  ;;  %491 = vst.msk [vmem:[#allocation2 + $0x19] sm:$0xff] %vm490_vm6, %v454_v2  ;;  %493 = vst.msk [vmem:[#allocation2 + $0x31] sm:$0xff] %vm490_vm6, %v456_v5  ;;  %vm3335_vm8 = vcmask 517120   ;;  %vm3921_vm9 = vcmask 1041409  }
  0x83   : > { %v458_v7 = vld [vmem:[%s7050_s28 + $0x20] sm:$0xff]  ;;  %557 = vperm.xlu0 %6642, %v523_v1   ;;  %492 = vst.msk [vmem:[#allocation2 + $0x21] sm:$0xff] %vm490_vm6, %v455_v6  ;;  %v457_v8 = vld [vmem:[%s7050_s28 + $0x18] sm:$0xff]  ;;  %v460_v9 = vld [vmem:[%s7050_s28 + $0x30] sm:$0xff]  ;;  %vm3923_vm10 = vcmask 1042434   ;;  %vm3925_vm11 = vcmask 1043459  }
  0x84   : > { %495 = vst.msk [vmem:[#allocation2 + $0x49] sm:$0xff] %vm490_vm6, %v458_v7  ;;  %v459_v10 = vld [vmem:[%s7050_s28 + $0x28] sm:$0xff]  ;;  %494 = vst.msk [vmem:[#allocation2 + $0x39] sm:$0xff] %vm490_vm6, %v457_v8  ;;  %v462_v11 = vld [vmem:[%s7050_s28 + $0x40] sm:$0xff]  ;;  %vm3927_vm12 = vcmask 1044484   ;;  %vm3929_vm13 = vcmask 1045509  }
  0x85   : > { %497 = vst.msk [vmem:[#allocation2 + $0x61] sm:$0xff] %vm490_vm6, %v460_v9  ;;  %496 = vst.msk [vmem:[#allocation2 + $0x51] sm:$0xff] %vm490_vm6, %v459_v10  ;;  %v461_v12 = vld [vmem:[%s7050_s28 + $0x38] sm:$0xff]  ;;  %v464_v13 = vld [vmem:[%s7050_s28 + $0x50] sm:$0xff]  ;;  %vm3931_vm14 = vcmask 1046534   ;;  %vm3933_vm15 = vcmask 1047559  }
  0x86   : > { %499 = vst.msk [vmem:[#allocation2 + $0x79] sm:$0xff] %vm490_vm6, %v462_v11  ;;  %498 = vst.msk [vmem:[#allocation2 + $0x69] sm:$0xff] %vm490_vm6, %v461_v12  ;;  %v463_v14 = vld [vmem:[%s7050_s28 + $0x48] sm:$0xff]  ;;  %v466_v15 = vld [vmem:[%s7050_s28 + $0x60] sm:$0xff]  ;;  %s6868_s24 = smov 64   ;;  %vm4905_vm0 = vcmask 519168  }
  0x87   : > { %501 = vst.msk [vmem:[#allocation2 + $0x91] sm:$0xff] %vm490_vm6, %v464_v13  ;;  %v465_v16 = vld [vmem:[%s7050_s28 + $0x58] sm:$0xff]  ;;  %500 = vst.msk [vmem:[#allocation2 + $0x81] sm:$0xff] %vm490_vm6, %v463_v14  ;;  %v468_v17 = vld [vmem:[%s7050_s28 + $0x70] sm:$0xff]  ;;  %562 = vperm.xlu0 %6642, %v524_v4   ;;  %vm6870_vm1 = vmmov 0   ;;  %s5974_s17 = sshll.u32 %s6944_s13, 4 }
  0x88   : > { %503 = vst.msk [vmem:[#allocation2 + $0xa9] sm:$0xff] %vm490_vm6, %v466_v15  ;;  %502 = vst.msk [vmem:[#allocation2 + $0x99] sm:$0xff] %vm490_vm6, %v465_v16  ;;  %v467_v18 = vld [vmem:[%s7050_s28 + $0x68] sm:$0xff]  ;;  %v470_v19 = vld [vmem:[%s7050_s28 + $0x80] sm:$0xff]  ;;  %s5858_s22 = sshll.u32 %s7054_s29, 4  ;;  %vm5843_vm2 = vcmask 516096   ;;  %s9746_s11 = scalar_lea.hbm %s9800_s9, %s5974_s17  ;;  %s9748_s22 = int_to_ptr.vmem [resolvable:$true] %s5858_s22 }
  0x89   : > { %505 = vst.msk [vmem:[#allocation2 + $0xc1] sm:$0xff] %vm490_vm6, %v468_v17  ;;  %504 = vst.msk [vmem:[#allocation2 + $0xb1] sm:$0xff] %vm490_vm6, %v467_v18  ;;  %v469_v20 = vld [vmem:[%s7050_s28 + $0x78] sm:$0xff]  ;;  %v472_v21 = vld [vmem:[%s7050_s28 + $0x90] sm:$0xff]  ;;  %s5846_s15 = scalar_lea.sflag [#allocation8], %s353_s18  ;;  %s6789_s21 = scalar_lea.vmem %s9748_s22, 16 }
  0x8a   : > { %507 = vst.msk [vmem:[#allocation2 + $0xd9] sm:$0xff] %vm490_vm6, %v470_v19  ;;  %v471_v22 = vld [vmem:[%s7050_s28 + $0x88] sm:$0xff]  ;;  %506 = vst.msk [vmem:[#allocation2 + $0xc9] sm:$0xff] %vm490_vm6, %v469_v20  ;;  %v474_v23 = vld [vmem:[%s7050_s28 + $0xa0] sm:$0xff]  ;;  %p6790_p11 = scmp.ne.s32.totalorder %s9748_s22, %s6789_s21  ;;  %p10151_p2 = scmp.ne.s32.totalorder %s9820_s19, 0 }
  0x8b   : > { %509 = vst.msk [vmem:[#allocation2 + $0xf1] sm:$0xff] %vm490_vm6, %v472_v21  ;;  %508 = vst.msk [vmem:[#allocation2 + $0xe1] sm:$0xff] %vm490_vm6, %v471_v22  ;;  %v473_v24 = vld [vmem:[%s7050_s28 + $0x98] sm:$0xff]  ;;  %v476_v25 = vld [vmem:[%s7050_s28 + $0xb0] sm:$0xff]  ;;  %s6872_s13 = smov [#allocation11]  }
  0x8c   : > { %v7257_v26 = vld [vmem:[#allocation2 + $0x18] sm:$0xff]  ;;  %511 = vst.msk [vmem:[#allocation2 + $0x109] sm:$0xff] %vm490_vm6, %v474_v23  ;;  %510 = vst.msk [vmem:[#allocation2 + $0xf9] sm:$0xff] %vm490_vm6, %v473_v24  ;;  %v475_v27 = vld [vmem:[%s7050_s28 + $0xa8] sm:$0xff]  ;;  %p6791_p3 = pnand %p6790_p11, %p10151_p2  ;;  %s6793_s26 = sshll.u32 %s6872_s13, 4  ;;  %s6794_s26 = int_to_ptr.vmem [resolvable:$false] %s6793_s26 }
  0x8d   : > { %513 = vst.msk [vmem:[#allocation2 + $0x121] sm:$0xff] %vm490_vm6, %v476_v25  ;;  %v478_v28 = vld [vmem:[%s7050_s28 + $0xc0] sm:$0xff]  ;;  %567 = vperm.xlu1 %6643, %v7257_v26   ;;  %v7265_v29 = vld [vmem:[#allocation2 + $0x30] sm:$0xff]  ;;  %512 = vst.msk [vmem:[#allocation2 + $0x111] sm:$0xff] %vm490_vm6, %v475_v27  ;;  %s6795_s27 = scalar_lea.vmem %s6794_s26, 32  ;;  %p6796_p7 = scmp.lt.s32.totalorder %s9748_s22, %s6794_s26 }
  0x8e   : > { %515 = vst.msk [vmem:[#allocation2 + $0x139] sm:$0xff] %vm490_vm6, %v478_v28  ;;  %577 = vperm.xlu0 %6642, %v7265_v29   ;;  %v7270_v30 = vld [vmem:[#allocation2 + $0x20] sm:$0xff]  ;;  %v7272_v31 = vld [vmem:[#allocation2 + $0x48] sm:$0xff]  ;;  %v7276_v32 = vld [vmem:[#allocation2 + $0x38] sm:$0xff]  ;;  %p6792_p4 = pneg %p6791_p3  ;;  %p6797_p8 = scmp.lt.s32.totalorder %s6795_s27, %s6789_s21 }
  0x8f   : > { %v7278_v33 = vld [vmem:[#allocation2 + $0x60] sm:$0xff]  ;;  %v477_v34 = vld [vmem:[%s7050_s28 + $0xb8] sm:$0xff]  ;;  %v480_v35 = vld [vmem:[%s7050_s28 + $0xd0] sm:$0xff] }
  0x90   : > { %514 = vst.msk [vmem:[#allocation2 + $0x129] sm:$0xff] %vm490_vm6, %v477_v34  ;;  %v479_v36 = vld [vmem:[%s7050_s28 + $0xc8] sm:$0xff]  ;;  %v482_v37 = vld [vmem:[%s7050_s28 + $0xe0] sm:$0xff]  ;;  %v7287_v38 = vld [vmem:[#allocation2 + $0x50] sm:$0xff]  ;;  %p6798_p12 = por %p6797_p8, %p6796_p7 }
  0x91   : > { %572 = vperm.xlu1 %6643, %v7270_v30   ;;  %517 = vst.msk [vmem:[#allocation2 + $0x151] sm:$0xff] %vm490_vm6, %v480_v35  ;;  %516 = vst.msk [vmem:[#allocation2 + $0x141] sm:$0xff] %vm490_vm6, %v479_v36  ;;  %v481_v39 = vld [vmem:[%s7050_s28 + $0xd8] sm:$0xff]  ;;  %v483_v40 = vld [vmem:[%s7050_s28 + $0xe8] sm:$0xff] }
  0x92   : > { %587 = vperm.xlu0 %6642, %v7272_v31   ;;  %519 = vst.msk [vmem:[#allocation2 + $0x169] sm:$0xff] %vm490_vm6, %v482_v37  ;;  %v7294_v41 = vld [vmem:[#allocation2 + $0x78] sm:$0xff]  ;;  %518 = vst.msk [vmem:[#allocation2 + $0x159] sm:$0xff] %vm490_vm6, %v481_v39  ;;  %v7300_v42 = vld [vmem:[#allocation2 + $0x68] sm:$0xff]  ;;  %p6799_p0 = pnand %p6798_p12, %p6792_p4 }
  0x93   : > { %520 = vst.msk [vmem:[#allocation2 + $0x171] sm:$0xff] %vm490_vm6, %v483_v40  ;;  %v7302_v43 = vld [vmem:[#allocation2 + $0x90] sm:$0xff]  ;;  %v7306_v44 = vld [vmem:[#allocation2 + $0x80] sm:$0xff]  ;;  %v7308_v45 = vld [vmem:[#allocation2 + $0xa8] sm:$0xff] }
  0x94   : > { %v7312_v46 = vld [vmem:[#allocation2 + $0x98] sm:$0xff]  ;;  %v7314_v47 = vld [vmem:[#allocation2 + $0xc0] sm:$0xff]  ;;  %v7318_v48 = vld [vmem:[#allocation2 + $0xb0] sm:$0xff] }
  0x95   : > { %582 = vperm.xlu1 %6643, %v7276_v32   ;;  %v7320_v49 = vld [vmem:[#allocation2 + $0xd8] sm:$0xff]  ;;  %v7324_v50 = vld [vmem:[#allocation2 + $0xc8] sm:$0xff]  ;;  %v7326_v51 = vld [vmem:[#allocation2 + $0xf0] sm:$0xff] }
  0x96   : > { %597 = vperm.xlu0 %6642, %v7278_v33   ;;  %v542_v52 = vld [vmem:[#allocation2 + $0xe0] sm:$0xff]  ;;  %v545_v53 = vld [vmem:[#allocation2 + $0x108] sm:$0xff]  ;;  %v544_v54 = vld [vmem:[#allocation2 + $0xf8] sm:$0xff] }
  0x97   : > { %v547_v55 = vld [vmem:[#allocation2 + $0x120] sm:$0xff]  ;;  %v546_v56 = vld [vmem:[#allocation2 + $0x110] sm:$0xff]  ;;  %v549_v57 = vld [vmem:[#allocation2 + $0x138] sm:$0xff] }
  0x98   : > { %v548_v58 = vld [vmem:[#allocation2 + $0x128] sm:$0xff]  ;;  %v551_v59 = vld [vmem:[#allocation2 + $0x150] sm:$0xff]  ;;  %v550_v60 = vld [vmem:[#allocation2 + $0x140] sm:$0xff] }
  0x99   : > { %592 = vperm.xlu1 %6643, %v7287_v38   ;;  %v553_v61 = vld [vmem:[#allocation2 + $0x168] sm:$0xff]  ;;  %v552_v62 = vld [vmem:[#allocation2 + $0x158] sm:$0xff] }
  0x9a   : > { %607 = vperm.xlu0 %6642, %v7294_v41   ;;  %v783_v63 = vld [vmem:[#allocation2 + $0x1] sm:$0xff]  ;;  %v554_v0 = vld [vmem:[#allocation2 + $0x170] sm:$0xff]  ;;  %v785_v1 = vld [vmem:[#allocation2 + $0x19] sm:$0xff] }
  0x9b   : > { %v784_v2 = vld [vmem:[#allocation2 + $0x9] sm:$0xff]  ;;  %v7330_v3 = vld [vmem:[#allocation2 + $0x31] sm:$0xff]  ;;  %v786_v4 = vld [vmem:[#allocation2 + $0x21] sm:$0xff] }
  0x9c   : > { %v7333_v5 = vld [vmem:[#allocation2 + $0x49] sm:$0xff]  ;;  %v7336_v6 = vld [vmem:[#allocation2 + $0x39] sm:$0xff]  ;;  %v7348_v13 = vld [vmem:[#allocation2 + $0x61] sm:$0xff] }
  0x9d   : > { %602 = vperm.xlu1 %6643, %v7300_v42   ;;  %v1045_v7 = vld [vmem:[#allocation2 + $0x1a] sm:$0xff]  ;;  %v1043_v8 = vld [vmem:[#allocation2 + $0x2] sm:$0xff]  ;;  %v1044_v10 = vld [vmem:[#allocation2 + $0xa] sm:$0xff] }
  0x9e   : > { %617 = vperm.xlu0 %6642, %v7302_v43   ;;  %v1046_v9 = vld [vmem:[#allocation2 + $0x22] sm:$0xff]  ;;  %v7341_v11 = vld [vmem:[#allocation2 + $0x4a] sm:$0xff]  ;;  %v7344_v12 = vld [vmem:[#allocation2 + $0x32] sm:$0xff] }
  0x9f   : > { %v7351_v14 = vld [vmem:[#allocation2 + $0x51] sm:$0xff]  ;;  %v7355_v15 = vld [vmem:[#allocation2 + $0x79] sm:$0xff]  ;;  %v7364_v17 = vld [vmem:[#allocation2 + $0x62] sm:$0xff] }
  0xa0   : > { %v7360_v16 = vld [vmem:[#allocation2 + $0x3a] sm:$0xff]  ;;  %v7368_v18 = vld [vmem:[#allocation2 + $0x52] sm:$0xff]  ;;  %v7381_v22 = vld [vmem:[#allocation2 + $0x69] sm:$0xff] }
  0xa1   : > { %612 = vperm.xlu1 %6643, %v7306_v44   ;;  %v7371_v19 = vld [vmem:[#allocation2 + $0x7a] sm:$0xff]  ;;  %v7389_v25 = vld [vmem:[#allocation2 + $0x91] sm:$0xff]  ;;  %v7405_v34 = vld [vmem:[#allocation2 + $0xa9] sm:$0xff] }
  0xa2   : > { %627 = vperm.xlu0 %6642, %v7308_v45   ;;  %v7397_v28 = vld [vmem:[#allocation2 + $0x81] sm:$0xff] }
  0xa5   : > { %622 = vperm.xlu1 %6643, %v7312_v46  }
  0xa6   : > { %637 = vperm.xlu0 %6642, %v7314_v47  }
  0xa9   : > { %632 = vperm.xlu1 %6643, %v7318_v48  }
  0xaa   : > { %647 = vperm.xlu0 %6642, %v7320_v49  }
  0xad   : > { %642 = vperm.xlu1 %6643, %v7324_v50  }
  0xae   : > { %657 = vperm.xlu0 %6642, %v7326_v51  }
  0xb1   : > { %652 = vperm.xlu1 %6643, %v542_v52  }
  0xb2   : > { %667 = vperm.xlu0 %6642, %v545_v53  }
  0xb5   : > { %662 = vperm.xlu1 %6643, %v544_v54   ;;  %v7430_v54 = vld [vmem:[#allocation2 + $0x6a] sm:$0xff] }
  0xb6   : > { %677 = vperm.xlu0 %6642, %v547_v55  }
  0xb9   : > { %672 = vperm.xlu1 %6643, %v546_v56  }
  0xba   : > { %687 = vperm.xlu0 %6642, %v549_v57   ;;  %v7438_v57 = vld [vmem:[#allocation2 + $0x92] sm:$0xff] }
  0xbd   : > { %682 = vperm.xlu1 %6643, %v548_v58  }
  0xbe   : > { %697 = vperm.xlu0 %6642, %v551_v59  }
  0xc1   : > { %692 = vperm.xlu1 %6643, %v550_v60   ;;  %v7446_v60 = vld [vmem:[#allocation2 + $0x82] sm:$0xff] }
  0xc2   : > { %707 = vperm.xlu0 %6642, %v553_v61  }
  0xc5   : > { %702 = vperm.xlu1 %6643, %v552_v62  }
  0xc6   : > { %817 = vperm.xlu0 %6642, %v783_v63   ;;  %v7454_v63 = vld [vmem:[#allocation2 + $0xaa] sm:$0xff] }
  0xc9   : > { %712 = vperm.xlu1 %6643, %v554_v0  }
  0xca   : > { %827 = vperm.xlu0 %6642, %v785_v1  }
  0xcd   : > { %822 = vperm.xlu1 %6643, %v784_v2  }
  0xce   : > { %837 = vperm.xlu0 %6642, %v7330_v3  }
  0xd1   : > { %832 = vperm.xlu1 %6643, %v786_v4  }
  0xd2   : > { %847 = vperm.xlu0 %6642, %v7333_v5  }
  0xd5   : > { %842 = vperm.xlu1 %6643, %v7336_v6  }
  0xd6   : > { %1087 = vperm.xlu0 %6642, %v1045_v7  }
  0xd9   : > { %1077 = vperm.xlu1 %6643, %v1043_v8  }
  0xda   : > { %1347 = vperm.xlu0 %6642, %v7265_v29  }
  0xdd   : > { %1337 = vperm.xlu1 %6643, %v7257_v26  }
  0xde   : > { %1092 = vperm.xlu0 %6642, %v1046_v9  }
  0xe1   : > { %1082 = vperm.xlu1 %6643, %v1044_v10  }
  0xe2   : > { %1107 = vperm.xlu0 %6642, %v7341_v11  }
  0xe5   : > { %1097 = vperm.xlu1 %6643, %v7344_v12  }
  0xe6   : > { %1607 = vperm.xlu0 %6642, %v7330_v3  }
  0xe9   : > { %1597 = vperm.xlu1 %6643, %v785_v1  }
  0xea   : > { %857 = vperm.xlu0 %6642, %v7348_v13  }
  0xed   : > { %852 = vperm.xlu1 %6643, %v7351_v14  }
  0xee   : > { %1342 = vperm.xlu0 %6642, %v7270_v30  }
  0xf1   : > { %867 = vperm.xlu1 %6643, %v7355_v15  }
  0xf2   : > { %1357 = vperm.xlu0 %6642, %v7272_v31  }
  0xf5   : > { %1352 = vperm.xlu1 %6643, %v7276_v32  }
  0xf6   : > { %1857 = vperm.xlu0 %6642, %v1045_v7  }
  0xf9   : > { %1367 = vperm.xlu1 %6643, %v7278_v33  }
  0xfa   : > { %1102 = vperm.xlu0 %6642, %v7360_v16  }
  0xfd   : > { %1867 = vperm.xlu1 %6643, %v7344_v12  }
  0xfe   : > { %1117 = vperm.xlu0 %6642, %v7364_v17  }
 0x101   : > { %1112 = vperm.xlu1 %6643, %v7368_v18  }
 0x102   : > { %1602 = vperm.xlu0 %6642, %v786_v4   ;;  %v7373_v20 = vpop.permute.xlu0 %557 }
 0x105   : > { %1127 = vperm.xlu1 %6643, %v7371_v19  }
 0x106   : > { %1617 = vperm.xlu0 %6642, %v7333_v5   ;;  %v7377_v21 = vpop.permute.xlu0 %562 }
 0x109   : > { %1612 = vperm.xlu1 %6643, %v7336_v6  }
 0x10a   : > { %2118 = vperm.xlu0 %6642, %v7265_v29  }
 0x10c   : > { %v7383_v23 = vpop.permute.xlu1 %567 }
 0x10d   : > { %v7385_v24 = vpop.permute.xlu0 %577  ;;  %1627 = vperm.xlu1 %6643, %v7348_v13  }
 0x10e   : > { %9830 = vst [vmem:[#allocation18_spill] sm:$0xff] %v7385_v24  ;;  %862 = vperm.xlu0 %6642, %v7381_v22  }
 0x110   : > { %v7391_v26 = vpop.permute.xlu1 %572 }
 0x111   : > { %v7393_v27 = vpop.permute.xlu0 %587  ;;  %2128 = vperm.xlu1 %6643, %v7272_v31  }
 0x112   : > { %9831 = vst [vmem:[#allocation19_spill] sm:$0xff] %v7393_v27  ;;  %877 = vperm.xlu0 %6642, %v7389_v25  }
 0x114   : > { %v7399_v29 = vpop.permute.xlu1 %582 }
 0x115   : > { %9832 = vst [vmem:[#allocation20_spill] sm:$0xff] %v7399_v29  ;;  %v7401_v30 = vpop.permute.xlu0 %597  ;;  %872 = vperm.xlu1 %6643, %v7397_v28  }
 0x116   : > { %9833 = vst [vmem:[#allocation21_spill] sm:$0xff] %v7401_v30  ;;  %1362 = vperm.xlu0 %6642, %v7287_v38  }
 0x118   : > { %v7407_v35 = vpop.permute.xlu1 %592 }
 0x119   : > { %9834 = vst [vmem:[#allocation22_spill] sm:$0xff] %v7407_v35  ;;  %v7409_v36 = vpop.permute.xlu0 %607  ;;  %887 = vperm.xlu1 %6643, %v7405_v34  }
 0x11a   : > { %9835 = vst [vmem:[#allocation23_spill] sm:$0xff] %v7409_v36  ;;  %1377 = vperm.xlu0 %6642, %v7294_v41  }
 0x11c   : > { %v7413_v31 = vpop.permute.xlu1 %602 }
 0x11d   : > { %9836 = vst [vmem:[#allocation24_spill] sm:$0xff] %v7413_v31  ;;  %v7415_v37 = vpop.permute.xlu0 %617  ;;  %1372 = vperm.xlu1 %6643, %v7300_v42  }
 0x11e   : > { %9837 = vst [vmem:[#allocation25_spill] sm:$0xff] %v7415_v37  ;;  %1862 = vperm.xlu0 %6642, %v1046_v9   ;;  %v7480_v9 = vld [vmem:[#allocation2 + $0x99] sm:$0xff] }
 0x120   : > { %v7418_v39 = vpop.permute.xlu1 %612 }
 0x121   : > { %9838 = vst [vmem:[#allocation26_spill] sm:$0xff] %v7418_v39  ;;  %v7420_v40 = vpop.permute.xlu0 %627  ;;  %1387 = vperm.xlu1 %6643, %v7302_v43  }
 0x122   : > { %9839 = vst [vmem:[#allocation27_spill] sm:$0xff] %v7420_v40  ;;  %1877 = vperm.xlu0 %6642, %v7341_v11  }
 0x124   : > { %v7424_v52 = vpop.permute.xlu1 %622 }
 0x125   : > { %9840 = vst [vmem:[#allocation28_spill] sm:$0xff] %v7424_v52  ;;  %v7426_v53 = vpop.permute.xlu0 %637  ;;  %1872 = vperm.xlu1 %6643, %v7360_v16  }
 0x126   : > { %9841 = vst [vmem:[#allocation29_spill] sm:$0xff] %v7426_v53  ;;  %2378 = vperm.xlu0 %6642, %v7330_v3  }
 0x128   : > { %v7432_v55 = vpop.permute.xlu1 %632 }
 0x129   : > { %9842 = vst [vmem:[#allocation30_spill] sm:$0xff] %v7432_v55  ;;  %v7434_v56 = vpop.permute.xlu0 %647  ;;  %1887 = vperm.xlu1 %6643, %v7364_v17  }
 0x12a   : > { %9843 = vst [vmem:[#allocation31_spill] sm:$0xff] %v7434_v56  ;;  %1122 = vperm.xlu0 %6642, %v7430_v54  }
 0x12c   : > { %v7440_v58 = vpop.permute.xlu1 %642 }
 0x12d   : > { %9844 = vst [vmem:[#allocation32_spill] sm:$0xff] %v7440_v58  ;;  %v7442_v59 = vpop.permute.xlu0 %657  ;;  %2388 = vperm.xlu1 %6643, %v7333_v5   ;;  %v7544_v58 = vld [vmem:[#allocation2 + $0xc2] sm:$0xff] }
 0x12e   : > { %9845 = vst [vmem:[#allocation33_spill] sm:$0xff] %v7442_v59  ;;  %1137 = vperm.xlu0 %6642, %v7438_v57   ;;  %9863 = vst [vmem:[#allocation51_spill] sm:$0xff] %v7544_v58 }
 0x130   : > { %v7448_v61 = vpop.permute.xlu1 %652 }
 0x131   : > { %9846 = vst [vmem:[#allocation34_spill] sm:$0xff] %v7448_v61  ;;  %v7450_v62 = vpop.permute.xlu0 %667  ;;  %1132 = vperm.xlu1 %6643, %v7446_v60   ;;  %v7536_v61 = vld [vmem:[#allocation2 + $0x9a] sm:$0xff] }
 0x132   : > { %9847 = vst [vmem:[#allocation35_spill] sm:$0xff] %v7450_v62  ;;  %1622 = vperm.xlu0 %6642, %v7351_v14  }
 0x134   : > { %v7456_v0 = vpop.permute.xlu1 %662 }
 0x135   : > { %9848 = vst [vmem:[#allocation36_spill] sm:$0xff] %v7456_v0  ;;  %v7458_v1 = vpop.permute.xlu0 %677  ;;  %1147 = vperm.xlu1 %6643, %v7454_v63  }
 0x136   : > { %9849 = vst [vmem:[#allocation37_spill] sm:$0xff] %v7458_v1  ;;  %1637 = vperm.xlu0 %6642, %v7355_v15  }
 0x138   : > { %v7462_v2 = vpop.permute.xlu1 %672 }
 0x139   : > { %9850 = vst [vmem:[#allocation38_spill] sm:$0xff] %v7462_v2  ;;  %v7464_v3 = vpop.permute.xlu0 %687  ;;  %1632 = vperm.xlu1 %6643, %v7381_v22  }
 0x13a   : > { %9851 = vst [vmem:[#allocation39_spill] sm:$0xff] %v7464_v3  ;;  %2123 = vperm.xlu0 %6642, %v7276_v32  }
 0x13c   : > { %v7468_v4 = vpop.permute.xlu1 %682 }
 0x13d   : > { %9852 = vst [vmem:[#allocation40_spill] sm:$0xff] %v7468_v4  ;;  %v7470_v5 = vpop.permute.xlu0 %697  ;;  %1647 = vperm.xlu1 %6643, %v7389_v25  }
 0x13e   : > { %9853 = vst [vmem:[#allocation41_spill] sm:$0xff] %v7470_v5  ;;  %2138 = vperm.xlu0 %6642, %v7278_v33   ;;  %v7488_v5 = vld [vmem:[#allocation2 + $0xc1] sm:$0xff] }
 0x140   : > { %v7474_v7 = vpop.permute.xlu1 %692 }
 0x141   : > { %9854 = vst [vmem:[#allocation42_spill] sm:$0xff] %v7474_v7  ;;  %v7476_v8 = vpop.permute.xlu0 %707  ;;  %2133 = vperm.xlu1 %6643, %v7287_v38   ;;  %v7496_v38 = vld [vmem:[#allocation2 + $0xb1] sm:$0xff] }
 0x142   : > { %9855 = vst [vmem:[#allocation43_spill] sm:$0xff] %v7476_v8  ;;  %2638 = vperm.xlu0 %6642, %v7344_v12  }
 0x144   : > { %v7482_v10 = vpop.permute.xlu1 %702 }
 0x145   : > { %9856 = vst [vmem:[#allocation44_spill] sm:$0xff] %v7482_v10  ;;  %v7484_v32 = vpop.permute.xlu0 %817  ;;  %2148 = vperm.xlu1 %6643, %v7294_v41   ;;  %v7504_v41 = vld [vmem:[#allocation2 + $0xd9] sm:$0xff] }
 0x146   : > { %882 = vperm.xlu0 %6642, %v7480_v9  }
 0x148   : > { %v7490_v33 = vpop.permute.xlu1 %712 }
 0x149   : > { %9857 = vst [vmem:[#allocation45_spill] sm:$0xff] %v7490_v33  ;;  %v7492_v7 = vpop.permute.xlu0 %827  ;;  %2648 = vperm.xlu1 %6643, %v7341_v11  }
 0x14a   : > { %897 = vperm.xlu0 %6642, %v7488_v5  }
 0x14c   : > { %v7498_v12 = vpop.permute.xlu1 %822 }
 0x14d   : > { %v7500_v10 = vpop.permute.xlu0 %837  ;;  %892 = vperm.xlu1 %6643, %v7496_v38  }
 0x14e   : > { %9858 = vst [vmem:[#allocation46_spill] sm:$0xff] %v7500_v10  ;;  %1382 = vperm.xlu0 %6642, %v7306_v44  }
 0x150   : > { %v7506_v8 = vpop.permute.xlu1 %832 }
 0x151   : > { %v7508_v33 = vpop.permute.xlu0 %847  ;;  %907 = vperm.xlu1 %6643, %v7504_v41  }
 0x152   : > { %9859 = vst [vmem:[#allocation47_spill] sm:$0xff] %v7508_v33  ;;  %1397 = vperm.xlu0 %6642, %v7308_v45  }
 0x154   : > { %v7512_v11 = vpop.permute.xlu1 %842 }
 0x155   : > { %9860 = vst [vmem:[#allocation48_spill] sm:$0xff] %v7512_v11  ;;  %v7514_v4 = vpop.permute.xlu0 %1087  ;;  %1392 = vperm.xlu1 %6643, %v7312_v46  }
 0x156   : > { %1882 = vperm.xlu0 %6642, %v7368_v18  }
 0x158   : > { %v7518_v3 = vpop.permute.xlu1 %1077 }
 0x159   : > { %v7520_v2 = vpop.permute.xlu0 %1347  ;;  %1407 = vperm.xlu1 %6643, %v7314_v47  }
 0x15a   : > { %1897 = vperm.xlu0 %6642, %v7371_v19  }
 0x15c   : > { %v7524_v1 = vpop.permute.xlu1 %1337 }
 0x15d   : > { %v7526_v0 = vpop.permute.xlu0 %1092  ;;  %1892 = vperm.xlu1 %6643, %v7430_v54  }
 0x15e   : > { %2383 = vperm.xlu0 %6642, %v7336_v6  }
 0x160   : > { %v7530_v62 = vpop.permute.xlu1 %1082 }
 0x161   : > { %v7532_v46 = vpop.permute.xlu0 %1107  ;;  %1907 = vperm.xlu1 %6643, %v7438_v57  }
 0x162   : > { %9861 = vst [vmem:[#allocation49_spill] sm:$0xff] %v7532_v46  ;;  %2398 = vperm.xlu0 %6642, %v7348_v13   ;;  %v7552_v13 = vld [vmem:[#allocation2 + $0xb2] sm:$0xff] }
 0x164   : > { %v7538_v47 = vpop.permute.xlu1 %1097 }
 0x165   : > { %9862 = vst [vmem:[#allocation50_spill] sm:$0xff] %v7538_v47  ;;  %v7540_v59 = vpop.permute.xlu0 %1607  ;;  %2393 = vperm.xlu1 %6643, %v7351_v14   ;;  %v7560_v14 = vld [vmem:[#allocation2 + $0xda] sm:$0xff] }
 0x166   : > { %1142 = vperm.xlu0 %6642, %v7536_v61  }
 0x168   : > { %v7546_v6 = vpop.permute.xlu1 %1597 }
 0x169   : > { %v7548_v56 = vpop.permute.xlu0 %857  ;;  %2408 = vperm.xlu1 %6643, %v7355_v15  }
 0x16a   : > { %9864 = vst [vmem:[#allocation52_spill] sm:$0xff] %v7548_v56  ;;  %1157 = vperm.xlu0 %6642, %v7544_v58  }
 0x16c   : > { %v7554_v55 = vpop.permute.xlu1 %852 }
 0x16d   : > { %9865 = vst [vmem:[#allocation53_spill] sm:$0xff] %v7554_v55  ;;  %v7556_v53 = vpop.permute.xlu0 %1342  ;;  %1152 = vperm.xlu1 %6643, %v7552_v13  }
 0x16e   : > { %1642 = vperm.xlu0 %6642, %v7397_v28  }
 0x170   : > { %v7562_v52 = vpop.permute.xlu1 %867 }
 0x171   : > { %9866 = vst [vmem:[#allocation54_spill] sm:$0xff] %v7562_v52  ;;  %v7564_v40 = vpop.permute.xlu0 %1357  ;;  %1167 = vperm.xlu1 %6643, %v7560_v14  }
 0x172   : > { %9867 = vst [vmem:[#allocation55_spill] sm:$0xff] %v7564_v40  ;;  %1657 = vperm.xlu0 %6642, %v7405_v34  }
 0x174   : > { %v7568_v15 = vpop.permute.xlu1 %1352 }
 0x175   : > { %v7570_v37 = vpop.permute.xlu0 %1857  ;;  %1652 = vperm.xlu1 %6643, %v7480_v9  }
 0x176   : > { %2143 = vperm.xlu0 %6642, %v7300_v42   ;;  %v800_v42 = vld [vmem:[#allocation2 + $0xc9] sm:$0xff] }
 0x178   : > { %v7574_v39 = vpop.permute.xlu1 %1367 }
 0x179   : > { %9868 = vst [vmem:[#allocation56_spill] sm:$0xff] %v7574_v39  ;;  %v7576_v31 = vpop.permute.xlu0 %1102  ;;  %1667 = vperm.xlu1 %6643, %v7488_v5  }
 0x17a   : > { %9869 = vst [vmem:[#allocation57_spill] sm:$0xff] %v7576_v31  ;;  %2158 = vperm.xlu0 %6642, %v7302_v43  }
 0x17c   : > { %v7580_v36 = vpop.permute.xlu1 %1867 }
 0x17d   : > { %v7582_v52 = vpop.permute.xlu0 %1117  ;;  %2153 = vperm.xlu1 %6643, %v7306_v44  }
 0x17e   : > { %9870 = vst [vmem:[#allocation58_spill] sm:$0xff] %v7582_v52  ;;  %2643 = vperm.xlu0 %6642, %v7360_v16   ;;  %v803_v52 = vld [vmem:[#allocation2 + $0xf1] sm:$0xff] }
 0x180   : > { %v7586_v30 = vpop.permute.xlu1 %1112 }
 0x181   : > { %9871 = vst [vmem:[#allocation59_spill] sm:$0xff] %v7586_v30  ;;  %v7588_v56 = vpop.permute.xlu0 %1602  ;;  %2168 = vperm.xlu1 %6643, %v7308_v45   ;;  %v7602_v30 = vld [vmem:[#allocation2 + $0xe1] sm:$0xff] }
 0x182   : > { %2658 = vperm.xlu0 %6642, %v7364_v17  }
 0x184   : > { %v7592_v35 = vpop.permute.xlu1 %1127 }
 0x185   : > { %9872 = vst [vmem:[#allocation60_spill] sm:$0xff] %v7592_v35  ;;  %v7594_v43 = vpop.permute.xlu0 %1617  ;;  %2653 = vperm.xlu1 %6643, %v7368_v18   ;;  %v7610_v18 = vld [vmem:[#allocation2 + $0x109] sm:$0xff] }
 0x186   : > { %9873 = vst [vmem:[#allocation61_spill] sm:$0xff] %v7594_v43  ;;  %902 = vperm.xlu0 %6642, %v800_v42   ;;  %v715_v43 = vlaneseq }
 0x188   : > { %v7597_v44 = vpop.permute.xlu1 %1612 }
 0x189   : > { %v7599_v16 = vpop.permute.xlu0 %2118  ;;  %2668 = vperm.xlu1 %6643, %v7371_v19  }
 0x18a   : > { %917 = vperm.xlu0 %6642, %v803_v52  }
 0x18c   : > { %v7604_v45 = vpop.permute.xlu1 %1627 }
 0x18d   : > { %9874 = vst [vmem:[#allocation62_spill] sm:$0xff] %v7604_v45  ;;  %v7606_v17 = vpop.permute.xlu0 %862  ;;  %912 = vperm.xlu1 %6643, %v7602_v30  }
 0x18e   : > { %9875 = vst [vmem:[#allocation63_spill] sm:$0xff] %v7606_v17  ;;  %1402 = vperm.xlu0 %6642, %v7318_v48  }
 0x190   : > { %v7612_v35 = vpop.permute.xlu1 %2128 }
 0x191   : > { %v7614_v55 = vpop.permute.xlu0 %877  ;;  %927 = vperm.xlu1 %6643, %v7610_v18  }
 0x192   : > { %9876 = vst [vmem:[#allocation64_spill] sm:$0xff] %v7614_v55  ;;  %1417 = vperm.xlu0 %6642, %v7320_v49  }
 0x194   : > { %v7618_v19 = vpop.permute.xlu1 %872 }
 0x195   : > { %9877 = vst [vmem:[#allocation65_spill] sm:$0xff] %v7618_v19  ;;  %v7620_v31 = vpop.permute.xlu0 %1362  ;;  %1412 = vperm.xlu1 %6643, %v7324_v50  }
 0x196   : > { %9878 = vst [vmem:[#allocation66_spill] sm:$0xff] %v7620_v31  ;;  %1902 = vperm.xlu0 %6642, %v7446_v60  }
 0x198   : > { %v7624_v17 = vpop.permute.xlu1 %887 }
 0x199   : > { %9879 = vst [vmem:[#allocation67_spill] sm:$0xff] %v7624_v17  ;;  %v7626_v48 = vpop.permute.xlu0 %1377  ;;  %1427 = vperm.xlu1 %6643, %v7326_v51   ;;  %v7642_v17 = vld [vmem:[#allocation2 + $0xca] sm:$0xff] }
 0x19a   : > { %9880 = vst [vmem:[#allocation68_spill] sm:$0xff] %v7626_v48  ;;  %1917 = vperm.xlu0 %6642, %v7454_v63   ;;  %v7650_v48 = vld [vmem:[#allocation2 + $0xf2] sm:$0xff] }
 0x19c   : > { %v7630_v55 = vpop.permute.xlu1 %1372 }
 0x19d   : > { %9881 = vst [vmem:[#allocation69_spill] sm:$0xff] %v7630_v55  ;;  %v7632_v29 = vpop.permute.xlu0 %1862  ;;  %1912 = vperm.xlu1 %6643, %v7536_v61  }
 0x19e   : > { %2403 = vperm.xlu0 %6642, %v7381_v22  }
 0x1a0   : > { %v7636_v49 = vpop.permute.xlu1 %1387 }
 0x1a1   : > { %9882 = vst [vmem:[#allocation70_spill] sm:$0xff] %v7636_v49  ;;  %v7638_v50 = vpop.permute.xlu0 %1877  ;;  %1927 = vperm.xlu1 %6643, %v7544_v58  }
 0x1a2   : > { %9883 = vst [vmem:[#allocation71_spill] sm:$0xff] %v7638_v50  ;;  %2418 = vperm.xlu0 %6642, %v7389_v25   ;;  %v7658_v25 = vld [vmem:[#allocation2 + $0xe2] sm:$0xff] }
 0x1a3   : > { %9886 = vst [vmem:[#allocation74_spill] sm:$0xff] %v7658_v25 }
 0x1a4   : > { %v7644_v51 = vpop.permute.xlu1 %1872 }
 0x1a5   : > { %v7646_v19 = vpop.permute.xlu0 %2378  ;;  %2413 = vperm.xlu1 %6643, %v7397_v28   ;;  %v7666_v28 = vld [vmem:[#allocation2 + $0x10a] sm:$0xff] }
 0x1a6   : > { %1162 = vperm.xlu0 %6642, %v7642_v17   ;;  %9888 = vst [vmem:[#allocation76_spill] sm:$0xff] %v7666_v28 }
 0x1a8   : > { %v7652_v22 = vpop.permute.xlu1 %1887 }
 0x1a9   : > { %9884 = vst [vmem:[#allocation72_spill] sm:$0xff] %v7652_v22  ;;  %v7654_v49 = vpop.permute.xlu0 %1122  ;;  %2428 = vperm.xlu1 %6643, %v7405_v34   ;;  %v2093_v34 = vld [vmem:[#allocation2 + $0x98] sm:$0xff] }
 0x1aa   : > { %9885 = vst [vmem:[#allocation73_spill] sm:$0xff] %v7654_v49  ;;  %1177 = vperm.xlu0 %6642, %v7650_v48  }
 0x1ac   : > { %v7660_v55 = vpop.permute.xlu1 %2388 }
 0x1ad   : > { %v7662_v31 = vpop.permute.xlu0 %1137  ;;  %1172 = vperm.xlu1 %6643, %v7658_v25  }
 0x1ae   : > { %9887 = vst [vmem:[#allocation75_spill] sm:$0xff] %v7662_v31  ;;  %1662 = vperm.xlu0 %6642, %v7496_v38   ;;  %v2096_v31 = vld [vmem:[#allocation2 + $0xc0] sm:$0xff] }
 0x1b0   : > { %v7668_v11 = vpop.permute.xlu1 %1132 }
 0x1b1   : > { %9889 = vst [vmem:[#allocation77_spill] sm:$0xff] %v7668_v11  ;;  %v7670_v50 = vpop.permute.xlu0 %1622  ;;  %1187 = vperm.xlu1 %6643, %v7666_v28   ;;  %v2095_v11 = vld [vmem:[#allocation2 + $0xb0] sm:$0xff] }
 0x1b2   : > { %9890 = vst [vmem:[#allocation78_spill] sm:$0xff] %v7670_v50  ;;  %1677 = vperm.xlu0 %6642, %v7504_v41  }
 0x1b4   : > { %v7674_v49 = vpop.permute.xlu1 %1147 }
 0x1b5   : > { %9891 = vst [vmem:[#allocation79_spill] sm:$0xff] %v7674_v49  ;;  %v7676_v22 = vpop.permute.xlu0 %1637  ;;  %1672 = vperm.xlu1 %6643, %v800_v42   ;;  %v2098_v49 = vld [vmem:[#allocation2 + $0xd8] sm:$0xff] }
 0x1b6   : > { %9892 = vst [vmem:[#allocation80_spill] sm:$0xff] %v7676_v22  ;;  %2163 = vperm.xlu0 %6642, %v2093_v34   ;;  %v7692_v34 = vld [vmem:[#allocation2 + $0xf9] sm:$0xff] }
 0x1b8   : > { %v7678_v25 = vpop.permute.xlu1 %1632 }
 0x1b9   : > { %9893 = vst [vmem:[#allocation81_spill] sm:$0xff] %v7678_v25  ;;  %v7680_v45 = vpop.permute.xlu0 %2123  ;;  %1687 = vperm.xlu1 %6643, %v803_v52  }
 0x1ba   : > { %2178 = vperm.xlu0 %6642, %v2096_v31   ;;  %v7694_v31 = vshrl.u32 %v715_v43, 7  ;;  %v486_v43 = vld [vmem:[%s9792_s1] sm:$0xff] }
 0x1bc   : > { %v7682_v50 = vpop.permute.xlu1 %1647  ;;  %v1757_v47 = vsub.s32 4, %v7694_v31  ;;  %v2278_v24 = vsub.s32 6, %v7694_v31 }
 0x1bd   : > { %9894 = vst [vmem:[#allocation82_spill] sm:$0xff] %v7682_v50  ;;  %v7684_v28 = vpop.permute.xlu0 %2138  ;;  %2173 = vperm.xlu1 %6643, %v2095_v11   ;;  %v717_v11 = vsub.s32 0, %v7694_v31 }
 0x1be   : > { %9895 = vst [vmem:[#allocation83_spill] sm:$0xff] %v7684_v28  ;;  %2663 = vperm.xlu0 %6642, %v7430_v54   ;;  %v7702_v54 = vld [vmem:[#allocation2 + $0x121] sm:$0xff] }
 0x1bf   : > { %v7721_v39 = vrot.slane %v486_v43, %v717_v11  ;;  %v7738_v11 = vld [vmem:[#allocation2 + $0x139] sm:$0xff] }
 0x1c0   : > { %v7687_v22 = vpop.permute.xlu1 %2133  ;;  %9903 = vst [vmem:[#allocation91_spill] sm:$0xff] %v7738_v11 }
 0x1c1   : > { %9896 = vst [vmem:[#allocation84_spill] sm:$0xff] %v7687_v22  ;;  %v7689_v42 = vpop.permute.xlu0 %2638  ;;  %2188 = vperm.xlu1 %6643, %v2098_v49   ;;  %v977_v49 = vsub.s32 1, %v7694_v31  ;;  %v719_v58 = vmul.f32 %v7721_v39, %v7373_v20 }
 0x1c2   : > { %2678 = vperm.xlu0 %6642, %v7438_v57   ;;  %v1237_v57 = vsub.s32 2, %v7694_v31 }
 0x1c3   : > { %v7723_v40 = vrot.slane %v486_v43, %v977_v49  ;;  %v2017_v49 = vsub.s32 5, %v7694_v31 }
 0x1c4   : > { %v7696_v52 = vpop.permute.xlu1 %2148  ;;  %v7725_v46 = vrot.slane %v486_v43, %v1237_v57  ;;  %v7741_v57 = vld [vmem:[#allocation2 + $0x108] sm:$0xff] }
 0x1c5   : > { %9897 = vst [vmem:[#allocation85_spill] sm:$0xff] %v7696_v52  ;;  %v7698_v50 = vpop.permute.xlu0 %882  ;;  %2673 = vperm.xlu1 %6643, %v7446_v60   ;;  %v1497_v60 = vsub.s32 3, %v7694_v31  ;;  %v7719_v52 = vld [vmem:[#allocation2 + $0xe0] sm:$0xff]  ;;  %9904 = vst [vmem:[#allocation92_spill] sm:$0xff] %v7741_v57 }
 0x1c6   : > { %9898 = vst [vmem:[#allocation86_spill] sm:$0xff] %v7698_v50  ;;  %922 = vperm.xlu0 %6642, %v7692_v34   ;;  %v7717_v50 = vld [vmem:[#allocation2 + $0x111] sm:$0xff] }
 0x1c7   : > { %9900 = vst [vmem:[#allocation88_spill] sm:$0xff] %v7717_v50  ;;  %v7735_v33 = vrot.slane %v486_v43, %v1497_v60 }
 0x1c8   : > { %v7707_v25 = vpop.permute.xlu1 %2648 }
 0x1c9   : > { %v7712_v28 = vpop.permute.xlu0 %897  ;;  %2688 = vperm.xlu1 %6643, %v7454_v63   ;;  %v981_v63 = vmul.f32 %v7723_v40, %v7492_v7  ;;  %v7749_v7 = vrot.slane %v486_v43, %v1757_v47  ;;  %v7764_v47 = vld [vmem:[#allocation2 + $0xf8] sm:$0xff]  ;;  %v1499_v20 = vmul.f32 %v7735_v33, %v7524_v1  ;;  %v7785_v1 = vld [vmem:[#allocation2 + $0x120] sm:$0xff] }
 0x1ca   : > { %9899 = vst [vmem:[#allocation87_spill] sm:$0xff] %v7712_v28  ;;  %937 = vperm.xlu0 %6642, %v7702_v54  }
 0x1cc   : > { %v7728_v27 = vpop.permute.xlu1 %892 }
 0x1cd   : > { %9901 = vst [vmem:[#allocation89_spill] sm:$0xff] %v7728_v27  ;;  %v7730_v28 = vpop.permute.xlu0 %1382  ;;  %932 = vperm.xlu1 %6643, %v7717_v50   ;;  %v721_v27 = vmul.f32 %v7721_v39, %v7383_v23  ;;  %v1241_v50 = vmul.f32 %v7725_v46, %v7514_v4  ;;  %v1501_v4 = vmul.f32 %v7735_v33, %v7520_v2 }
 0x1ce   : > { %9902 = vst [vmem:[#allocation90_spill] sm:$0xff] %v7730_v28  ;;  %1422 = vperm.xlu0 %6642, %v7719_v52   ;;  %v979_v28 = vmul.f32 %v7723_v40, %v7484_v32  ;;  %v1239_v32 = vmul.f32 %v7725_v46, %v7518_v3  ;;  %v7775_v2 = vrot.slane %v486_v43, %v2278_v24  ;;  %v484_v24 = vld [vmem:[%s7050_s28 + $0xf0] sm:$0xff] }
 0x1cf   : > { %v1013_v23 = vadd.f32 %v981_v63, %v721_v27  ;;  %v1761_v27 = vmul.f32 %v7749_v7, %v7540_v59  ;;  %521 = vst.msk [vmem:[#allocation2 + $0x181] sm:$0xff] %vm490_vm6, %v484_v24  ;;  %v7833_v24 = vld [vmem:[#allocation2 + $0xfa] sm:$0xff] }
 0x1d0   : > { %v7751_v60 = vpop.permute.xlu1 %907 }
 0x1d1   : > { %9905 = vst [vmem:[#allocation93_spill] sm:$0xff] %v7751_v60  ;;  %v7754_v10 = vpop.permute.xlu0 %1397  ;;  %947 = vperm.xlu1 %6643, %v7738_v11   ;;  %v7766_v60 = vrot.slane %v486_v43, %v2017_v49  ;;  %v1011_v11 = vadd.f32 %v979_v28, %v719_v58  ;;  %v1273_v22 = vadd.f32 %v1241_v50, %v1013_v23 }
 0x1d2   : > { %9906 = vst [vmem:[#allocation94_spill] sm:$0xff] %v7754_v10  ;;  %1437 = vperm.xlu0 %6642, %v7741_v57   ;;  %v2538_v10 = vsub.s32 7, %v7694_v31  ;;  %v1759_v58 = vmul.f32 %v7749_v7, %v7546_v6 }
 0x1d3   : > { %v1271_v49 = vadd.f32 %v1239_v32, %v1011_v11  ;;  %v1533_v57 = vadd.f32 %v1501_v4, %v1273_v22  ;;  %v2021_v50 = vmul.f32 %v7766_v60, %v7580_v36  ;;  %v2282_v22 = vmul.f32 %v7775_v2, %v7612_v35  ;;  %v7808_v35 = vld [vmem:[%s9792_s1 + $0x8] ss:$0 sm:$0xff] }
 0x1d4   : > { %v7773_v3 = vpop.permute.xlu1 %1392  ;;  %v7787_v59 = vrot.slane %v486_v43, %v2538_v10  ;;  %v2280_v43 = vmul.f32 %v7775_v2, %v7599_v16 }
 0x1d5   : > { %9907 = vst [vmem:[#allocation95_spill] sm:$0xff] %v7773_v3  ;;  %v7777_v63 = vpop.permute.xlu0 %1882  ;;  %1432 = vperm.xlu1 %6643, %v7764_v47   ;;  %v1531_v28 = vadd.f32 %v1499_v20, %v1271_v49  ;;  %v1793_v23 = vadd.f32 %v1761_v27, %v1533_v57  ;;  %v2019_v3 = vmul.f32 %v7766_v60, %v7570_v37 }
 0x1d6   : > { %1922 = vperm.xlu0 %6642, %v7552_v13   ;;  %v2542_v57 = vmul.f32 %v7787_v59, %v7660_v55  ;;  %v2540_v4 = vmul.f32 %v7787_v59, %v7646_v19  ;;  %v2802_v20 = vmul.f32 %v7808_v35, %v7707_v25  ;;  %v2800_v49 = vmul.f32 %v7808_v35, %v7689_v42 }
 0x1d7   : > { %v1791_v6 = vadd.f32 %v1759_v58, %v1531_v28  ;;  %v2053_v10 = vadd.f32 %v2021_v50, %v1793_v23 }
 0x1d8   : > { %v7794_v11 = vpop.permute.xlu1 %1407 }
 0x1d9   : > { %9908 = vst [vmem:[#allocation96_spill] sm:$0xff] %v7794_v11  ;;  %v7797_v36 = vpop.permute.xlu0 %1897  ;;  %1447 = vperm.xlu1 %6643, %v7785_v1   ;;  %v2051_v37 = vadd.f32 %v2019_v3, %v1791_v6  ;;  %v2314_v32 = vadd.f32 %v2282_v22, %v2053_v10  ;;  %v7843_v22 = vld [vmem:[#allocation2 + $0x122] sm:$0xff] }
 0x1da   : > { %1937 = vperm.xlu0 %6642, %v7560_v14  }
 0x1db   : > { %v2312_v55 = vadd.f32 %v2280_v43, %v2051_v37  ;;  %v2574_v14 = vadd.f32 %v2542_v57, %v2314_v32  ;;  %v7851_v37 = vld [vmem:[#allocation2 + $0x112] sm:$0xff] }
 0x1dc   : > { %v7814_v27 = vpop.permute.xlu1 %1892 }
 0x1dd   : > { %v7816_v16 = vpop.permute.xlu0 %2383  ;;  %1932 = vperm.xlu1 %6643, %v7642_v17   ;;  %v2572_v3 = vadd.f32 %v2540_v4, %v2312_v55  ;;  %v2834_v58 = vadd.f32 %v2802_v20, %v2574_v14  ;;  %v7831_v17 = vld [vmem:[%s9793_s2] ss:$0 sm:$0xff]  ;;  %v980_v14 = vmul.f32 %v7723_v40, %v7498_v12  ;;  %v1500_v12 = vmul.f32 %v7735_v33, %v7556_v53 }
 0x1de   : > { %2423 = vperm.xlu0 %6642, %v7480_v9   ;;  %v722_v53 = vmul.f32 %v7721_v39, %v7391_v26  ;;  %v2281_v26 = vmul.f32 %v7775_v2, %v7680_v45 }
 0x1df   : > { %v2832_v25 = vadd.f32 %v2800_v49, %v2572_v3  ;;  %v2872_v9 = vadd.f32 %v7831_v17, %v2834_v58 }
 0x1e0   : > { %v7822_v50 = vpop.permute.xlu1 %1907 }
 0x1e1   : > { %v7824_v19 = vpop.permute.xlu0 %2398  ;;  %1947 = vperm.xlu1 %6643, %v7650_v48   ;;  %v2870_v48 = vadd.f32 %v7831_v17, %v2832_v25  ;;  %v2904_v6 = vmax.f32 %v2872_v9, 0.0  ;;  %v720_v25 = vmul.f32 %v7721_v39, %v7377_v21  ;;  %v1240_v9 = vmul.f32 %v7725_v46, %v7530_v62 }
 0x1e2   : > { %2438 = vperm.xlu0 %6642, %v7488_v5   ;;  %v6867_v5 = vmov 1983009808   ;;  %v1760_v62 = vmul.f32 %v7749_v7, %v7588_v56  ;;  %v1502_v56 = vmul.f32 %v7735_v33, %v7568_v15 }
 0x1e3   : > { %v3001_v23 = vunpack.c.l.s4 %v6867_v5  ;;  %v2902_v57 = vmax.f32 %v2870_v48, 0.0  ;;  %v2936_v32 = vsel %vm2934_vm7, %v2904_v6, -inf  ;;  %v2097_v5 = vld [vmem:[#allocation2 + $0xc8] sm:$0xff] }
 0x1e4   : > { %v7836_v42 = vpop.permute.xlu1 %2393 }
 0x1e5   : > { %v7838_v28 = vpop.permute.xlu0 %1142  ;;  %2433 = vperm.xlu1 %6643, %v7496_v38   ;;  %v3002_v38 = vunpack.c.0.s8 %v3001_v23  ;;  %v2935_v55 = vsel %vm2934_vm7, %v2902_v57, -inf  ;;  %v982_v23 = vmul.f32 %v7723_v40, %v7506_v8  ;;  %v2020_v8 = vmul.f32 %v7766_v60, %v7632_v29 }
 0x1e6   : > { %9909 = vst [vmem:[#allocation97_spill] sm:$0xff] %v7838_v28  ;;  %1182 = vperm.xlu0 %6642, %v7833_v24   ;;  %v2937_v3 = vmax.f32 %v2935_v55, %v2936_v32  ;;  %v1762_v29 = vmul.f32 %v7749_v7, %v7597_v44 }
 0x1e7   : > { %v7866_v49 = vsub.s32 %v3002_v38, %v7694_v31 }
 0x1e8   : > { %v7845_v10 = vpop.permute.xlu1 %2408  ;;  %v2999_v57 = vcombine.high %v2937_v3, %v2937_v3 }
 0x1e9   : > { %v7847_v43 = vpop.permute.xlu0 %1157  ;;  %2448 = vperm.xlu1 %6643, %v7504_v41   ;;  %v7861_v41 = vld [vmem:[#allocation2 + $0x13a] sm:$0xff]  ;;  %9913 = vst [vmem:[#allocation101_spill] sm:$0xff] %v7866_v49  ;;  %v3006_v31 = vrot.slane %v2937_v3, %v7866_v49 }
 0x1ea   : > { %9910 = vst [vmem:[#allocation98_spill] sm:$0xff] %v7847_v43  ;;  %1197 = vperm.xlu0 %6642, %v7843_v22  }
 0x1eb   : > { %v3014_v55 = vcombine.high %v3006_v31, %v3006_v31 }
 0x1ec   : > { %v7854_v4 = vpop.permute.xlu1 %1152 }
 0x1ed   : > { %9911 = vst [vmem:[#allocation99_spill] sm:$0xff] %v7854_v4  ;;  %v7856_v20 = vpop.permute.xlu0 %1642  ;;  %1192 = vperm.xlu1 %6643, %v7851_v37   ;;  %v3343_v15 = vsel %vm3335_vm8, %v3014_v55, -inf }
 0x1ee   : > { %9912 = vst [vmem:[#allocation100_spill] sm:$0xff] %v7856_v20  ;;  %1682 = vperm.xlu0 %6642, %v7602_v30   ;;  %v1012_v30 = vadd.f32 %v980_v14, %v720_v25  ;;  %v2100_v14 = vld [vmem:[#allocation2 + $0xf0] sm:$0xff]  ;;  %v1014_v25 = vadd.f32 %v982_v23, %v722_v53 }
 0x1f0   : > { %v7868_v58 = vpop.permute.xlu1 %1167  ;;  %v1272_v6 = vadd.f32 %v1240_v9, %v1012_v30  ;;  %v3013_v9 = vrot.slane %v2999_v57, %v7866_v49 }
 0x1f1   : > { %9914 = vst [vmem:[#allocation102_spill] sm:$0xff] %v7868_v58  ;;  %v7874_v48 = vpop.permute.xlu0 %1657  ;;  %1207 = vperm.xlu1 %6643, %v7861_v41   ;;  %v9929_v58 = vld [vmem:[#allocation55_spill] sm:$0xff] }
 0x1f2   : > { %9915 = vst [vmem:[#allocation103_spill] sm:$0xff] %v7874_v48  ;;  %1697 = vperm.xlu0 %6642, %v7610_v18   ;;  %v1242_v18 = vmul.f32 %v7725_v46, %v7526_v0  ;;  %v1532_v32 = vadd.f32 %v1500_v12, %v1272_v6  ;;  %v2022_v6 = vmul.f32 %v7766_v60, %v7644_v51  ;;  %v3350_v57 = vsel %vm3335_vm8, %v3013_v9, -inf }
 0x1f3   : > { %v3015_v44 = vcombine.high %v3013_v9, %v3013_v9  ;;  %v9919_v9 = vld [vmem:[#allocation92_spill] sm:$0xff] }
 0x1f4   : > { %v7883_v21 = vpop.permute.xlu1 %1652  ;;  %v1274_v30 = vadd.f32 %v1242_v18, %v1014_v25  ;;  %v3344_v18 = vrot.slane %v3343_v15, 4  ;;  %v3351_v25 = vrot.slane %v3350_v57, 4 }
 0x1f5   : > { %9916 = vst [vmem:[#allocation104_spill] sm:$0xff] %v7883_v21  ;;  %v7887_v38 = vpop.permute.xlu0 %2143  ;;  %1692 = vperm.xlu1 %6643, %v7692_v34   ;;  %v1792_v34 = vadd.f32 %v1760_v62, %v1532_v32 }
 0x1f6   : > { %2183 = vperm.xlu0 %6642, %v2097_v5   ;;  %v2541_v5 = vmul.f32 %v7787_v59, %v7816_v16  ;;  %v1534_v23 = vadd.f32 %v1502_v56, %v1274_v30  ;;  %v3345_v30 = vmax.f32 %v3343_v15, %v3344_v18 }
 0x1f7   : > { %v2052_v12 = vadd.f32 %v2020_v8, %v1792_v34  ;;  %v9918_v8 = vld [vmem:[#allocation84_spill] sm:$0xff]  ;;  %v2543_v34 = vmul.f32 %v7787_v59, %v7836_v42 }
 0x1f8   : > { %v7898_v3 = vpop.permute.xlu1 %1667  ;;  %v1794_v16 = vadd.f32 %v1762_v29, %v1534_v23  ;;  %v2283_v55 = vmul.f32 %v7775_v2, %v9918_v8  ;;  %v9920_v29 = vld [vmem:[#allocation51_spill] sm:$0xff]  ;;  %v3346_v15 = vrot.slane %v3345_v30, 2 }
 0x1f9   : > { %9917 = vst [vmem:[#allocation105_spill] sm:$0xff] %v7898_v3  ;;  %v7903_v0 = vpop.permute.xlu0 %2158  ;;  %1707 = vperm.xlu1 %6643, %v7702_v54   ;;  %v2313_v62 = vadd.f32 %v2281_v26, %v2052_v12  ;;  %v3336_v54 = vsel %vm3335_vm8, %v3006_v31, -inf }
 0x1fa   : > { %2198 = vperm.xlu0 %6642, %v2100_v14   ;;  %v3337_v51 = vrot.slane %v3336_v54, 4  ;;  %v2054_v31 = vadd.f32 %v2022_v6, %v1794_v16 }
 0x1fb   : > { %v2573_v14 = vadd.f32 %v2541_v5, %v2313_v62  ;;  %v7931_v5 = vld [vmem:[#allocation2 + $0x129] sm:$0xff]  ;;  %v3352_v62 = vmax.f32 %v3350_v57, %v3351_v25  ;;  %v9922_v57 = vld [vmem:[#allocation46_spill] sm:$0xff] }
 0x1fc   : > { %v7911_v45 = vpop.permute.xlu1 %2153  ;;  %v2315_v12 = vadd.f32 %v2283_v55, %v2054_v31  ;;  %v3338_v23 = vmax.f32 %v3336_v54, %v3337_v51  ;;  %v7939_v55 = vld [vmem:[#allocation2 + $0x151] sm:$0xff] }
 0x1fd   : > { %v2644_v53 = vpop.permute.xlu0 %2643  ;;  %2193 = vperm.xlu1 %6643, %v7719_v52   ;;  %v485_v54 = vld [vmem:[%s7050_s28 + $0xf8] sm:$0xff]  ;;  %v3353_v31 = vrot.slane %v3352_v62, 2 }
 0x1fe   : > { %v2801_v32 = vmul.f32 %v7808_v35, %v2644_v53  ;;  %2683 = vperm.xlu0 %6642, %v7536_v61   ;;  %v3357_v61 = vsel %vm3335_vm8, %v3015_v44, -inf  ;;  %v2575_v16 = vadd.f32 %v2543_v34, %v2315_v12  ;;  %v2618_v44 = vld [vmem:[#allocation2 + $0xda] sm:$0xff]  ;;  %v3339_v51 = vrot.slane %v3338_v23, 2  ;;  %522 = vst.msk [vmem:[#allocation2 + $0x189] sm:$0xff] %vm490_vm6, %v485_v54 }
 0x1ff   : > { %v3358_v53 = vrot.slane %v3357_v61, 4  ;;  %v9926_v54 = vld [vmem:[#allocation19_spill] sm:$0xff]  ;;  %v3354_v4 = vmax.f32 %v3352_v62, %v3353_v31  ;;  %v9933_v31 = vld [vmem:[#allocation61_spill] sm:$0xff] }
 0x200   : > { %v7922_v56 = vpop.permute.xlu1 %2168  ;;  %v2833_v52 = vadd.f32 %v2801_v32, %v2573_v14  ;;  %v983_v14 = vmul.f32 %v7723_v40, %v9922_v57  ;;  %v7955_v57 = vld [vmem:[#allocation2 + $0x141] sm:$0xff] }
 0x201   : > { %v7926_v26 = vpop.permute.xlu0 %2658  ;;  %2208 = vperm.xlu1 %6643, %v9919_v9   ;;  %v3359_v34 = vmax.f32 %v3357_v61, %v3358_v53  ;;  %v725_v61 = vmul.f32 %v7721_v39, %v9926_v54  ;;  %v9927_v53 = vld [vmem:[#allocation50_spill] sm:$0xff] }
 0x202   : > { %2698 = vperm.xlu0 %6642, %v9920_v29   ;;  %v2871_v42 = vadd.f32 %v7831_v17, %v2833_v52  ;;  %v9924_v29 = vld [vmem:[#allocation18_spill] sm:$0xff] }
 0x203   : > { %v723_v12 = vmul.f32 %v7721_v39, %v9924_v29  ;;  %v3360_v43 = vrot.slane %v3359_v34, 2 }
 0x204   : > { %v2654_v6 = vpop.permute.xlu1 %2653  ;;  %v2903_v52 = vmax.f32 %v2871_v42, 0.0  ;;  %v1243_v42 = vmul.f32 %v7725_v46, %v9927_v53 }
 0x205   : > { %v2803_v32 = vmul.f32 %v7808_v35, %v2654_v6  ;;  %v7935_v8 = vpop.permute.xlu0 %902  ;;  %2693 = vperm.xlu1 %6643, %v7552_v13   ;;  %v9925_v6 = vld [vmem:[#allocation47_spill] sm:$0xff]  ;;  %v3361_v3 = vmax.f32 %v3359_v34, %v3360_v43 }
 0x206   : > { %9921 = vst [vmem:[#allocation84_spill] sm:$0xff] %v7935_v8  ;;  %942 = vperm.xlu0 %6642, %v7931_v5   ;;  %v9928_v8 = vld [vmem:[#allocation49_spill] sm:$0xff]  ;;  %v2938_v54 = vsel %vm2934_vm7, %v2903_v52, -inf  ;;  %v1763_v52 = vmul.f32 %v7749_v7, %v9933_v31 }
 0x207   : > { %v2835_v18 = vadd.f32 %v2803_v32, %v2575_v16  ;;  %v985_v16 = vmul.f32 %v7723_v40, %v9925_v6  ;;  %v3347_v32 = vmax.f32 %v3345_v30, %v3346_v15  ;;  %v1245_v29 = vmul.f32 %v7725_v46, %v9928_v8 }
 0x208   : > { %v7944_v25 = vpop.permute.xlu1 %2668  ;;  %v1503_v30 = vmul.f32 %v7735_v33, %v9929_v58  ;;  %v3340_v15 = vmax.f32 %v3338_v23, %v3339_v51  ;;  %v7975_v58 = vld [vmem:[#allocation2 + $0x169] sm:$0xff] }
 0x209   : > { %v2873_v13 = vadd.f32 %v7831_v17, %v2835_v18  ;;  %v7948_v9 = vpop.permute.xlu0 %917  ;;  %2708 = vperm.xlu1 %6643, %v2618_v44   ;;  %v1015_v44 = vadd.f32 %v983_v14, %v723_v12  ;;  %v1017_v14 = vadd.f32 %v985_v16, %v725_v61  ;;  %v9932_v51 = vld [vmem:[#allocation56_spill] sm:$0xff]  ;;  %v7981_v12 = vld [vmem:[#allocation2 + $0x138] sm:$0xff] }
 0x20a   : > { %9923 = vst [vmem:[#allocation92_spill] sm:$0xff] %v7948_v9  ;;  %957 = vperm.xlu0 %6642, %v7939_v55   ;;  %v7961_v9 = vld [vmem:[#allocation2 + $0x110] sm:$0xff]  ;;  %v1505_v62 = vmul.f32 %v7735_v33, %v9932_v51 }
 0x20b   : > { %v2905_v18 = vmax.f32 %v2873_v13, 0.0  ;;  %v3348_v13 = vrot.slane %v3347_v32, 1  ;;  %v1275_v23 = vadd.f32 %v1243_v42, %v1015_v44  ;;  %v3355_v44 = vrot.slane %v3354_v4, 1 }
 0x20c   : > { %v7967_v6 = vpop.permute.xlu1 %912 }
 0x20d   : > { %9930 = vst [vmem:[#allocation51_spill] sm:$0xff] %v7967_v6  ;;  %v2939_v28 = vsel %vm2934_vm7, %v2905_v18, -inf  ;;  %v7971_v53 = vpop.permute.xlu0 %1402  ;;  %952 = vperm.xlu1 %6643, %v7955_v57   ;;  %v1277_v18 = vadd.f32 %v1245_v29, %v1017_v14  ;;  %v9935_v6 = vld [vmem:[#allocation62_spill] sm:$0xff]  ;;  %v3349_v31 = vmax.f32 %v3347_v32, %v3348_v13 }
 0x20e   : > { %9931 = vst [vmem:[#allocation46_spill] sm:$0xff] %v7971_v53  ;;  %v2940_v8 = vmax.f32 %v2938_v54, %v2939_v28  ;;  %1442 = vperm.xlu0 %6642, %v7961_v9   ;;  %v3341_v53 = vrot.slane %v3340_v15, 1  ;;  %v1535_v54 = vadd.f32 %v1503_v30, %v1275_v23  ;;  %v1765_v42 = vmul.f32 %v7749_v7, %v9935_v6 }
 0x20f   : > { %v1537_v30 = vadd.f32 %v1505_v62, %v1277_v18  ;;  %v3362_v18 = vrot.slane %v3361_v3, 1 }
 0x210   : > { %v3016_v16 = vcombine.high %v2940_v8, %v2940_v8  ;;  %v3023_v61 = vrot.slane %v2940_v8, %v7866_v49  ;;  %v7984_v28 = vpop.permute.xlu1 %927  ;;  %v7994_v8 = vld [vmem:[#allocation2 + $0x128] sm:$0xff]  ;;  %v1795_v23 = vadd.f32 %v1763_v52, %v1535_v54  ;;  %v3342_v34 = vmax.f32 %v3340_v15, %v3341_v53 }
 0x211   : > { %9934 = vst [vmem:[#allocation18_spill] sm:$0xff] %v7984_v28  ;;  %v7988_v51 = vpop.permute.xlu0 %1417  ;;  %967 = vperm.xlu1 %6643, %v7975_v58   ;;  %9937 = vst [vmem:[#allocation19_spill] sm:$0xff] %v7994_v8  ;;  %v9938_v28 = vld [vmem:[#allocation72_spill] sm:$0xff]  ;;  %v3356_v52 = vmax.f32 %v3354_v4, %v3355_v44 }
 0x212   : > { %9936 = vst [vmem:[#allocation47_spill] sm:$0xff] %v7988_v51  ;;  %v3030_v48 = vrot.slane %v3016_v16, %v7866_v49  ;;  %v3031_v29 = vcombine.high %v3023_v61, %v3023_v61  ;;  %v3364_v14 = vsel %vm3335_vm8, %v3023_v61, -inf  ;;  %1457 = vperm.xlu0 %6642, %v7981_v12   ;;  %v2025_v6 = vmul.f32 %v7766_v60, %v9938_v28  ;;  %v9941_v28 = vld [vmem:[#allocation74_spill] sm:$0xff] }
 0x213   : > { %v3365_v43 = vrot.slane %v3364_v14, 4  ;;  %v1797_v61 = vadd.f32 %v1765_v42, %v1537_v30  ;;  %v3922_v15 = vsel %vm3921_vm9, %v3349_v31, %v3342_v34  ;;  %v9942_v30 = vld [vmem:[#allocation71_spill] sm:$0xff] }
 0x214   : > { %v3032_v51 = vcombine.high %v3030_v48, %v3030_v48  ;;  %v3371_v32 = vsel %vm3335_vm8, %v3031_v29, -inf  ;;  %v3378_v13 = vsel %vm3335_vm8, %v3030_v48, -inf  ;;  %v8000_v16 = vpop.permute.xlu1 %1412  ;;  %v8008_v48 = vld [vmem:[#allocation2 + $0x150] sm:$0xff] }
 0x215   : > { %9939 = vst [vmem:[#allocation50_spill] sm:$0xff] %v8000_v16  ;;  %v3366_v11 = vmax.f32 %v3364_v14, %v3365_v43  ;;  %v3372_v21 = vrot.slane %v3371_v32, 4  ;;  %v3379_v20 = vrot.slane %v3378_v13, 4  ;;  %v8002_v62 = vpop.permute.xlu0 %1902  ;;  %1452 = vperm.xlu1 %6643, %v7994_v8   ;;  %v2023_v43 = vmul.f32 %v7766_v60, %v9942_v30 }
 0x216   : > { %9940 = vst [vmem:[#allocation49_spill] sm:$0xff] %v8002_v62  ;;  %v3385_v53 = vsel %vm3335_vm8, %v3032_v51, -inf  ;;  %1942 = vperm.xlu0 %6642, %v9941_v28   ;;  %v2057_v16 = vadd.f32 %v2025_v6, %v1797_v61  ;;  %v9943_v62 = vld [vmem:[#allocation85_spill] sm:$0xff]  ;;  %v3924_v6 = vsel %vm3923_vm10, %v3356_v52, %v3922_v15  ;;  %v9947_v61 = vld [vmem:[#allocation76_spill] sm:$0xff] }
 0x217   : > { %v3367_v54 = vrot.slane %v3366_v11, 2  ;;  %v3373_v42 = vmax.f32 %v3371_v32, %v3372_v21  ;;  %v3380_v29 = vmax.f32 %v3378_v13, %v3379_v20  ;;  %v3386_v14 = vrot.slane %v3385_v53, 4  ;;  %v9946_v20 = vld [vmem:[#allocation83_spill] sm:$0xff] }
 0x218   : > { %v2286_v4 = vmul.f32 %v7775_v2, %v9943_v62  ;;  %v8014_v44 = vpop.permute.xlu1 %1427  ;;  %v2284_v21 = vmul.f32 %v7775_v2, %v9946_v20  ;;  %v3363_v32 = vmax.f32 %v3361_v3, %v3362_v18  ;;  %v2546_v13 = vmul.f32 %v7787_v59, %v7845_v10 }
 0x219   : > { %9944 = vst [vmem:[#allocation55_spill] sm:$0xff] %v8014_v44  ;;  %v3368_v31 = vmax.f32 %v3366_v11, %v3367_v54  ;;  %v3374_v51 = vrot.slane %v3373_v42, 2  ;;  %v3381_v34 = vrot.slane %v3380_v29, 2  ;;  %v3387_v28 = vmax.f32 %v3385_v53, %v3386_v14  ;;  %v8016_v8 = vpop.permute.xlu0 %1917  ;;  %1467 = vperm.xlu1 %6643, %v8008_v48   ;;  %v2357_v53 = vld [vmem:[#allocation2 + $0xc9] sm:$0xff] }
 0x21a   : > { %9945 = vst [vmem:[#allocation56_spill] sm:$0xff] %v8016_v8  ;;  %1957 = vperm.xlu0 %6642, %v9947_v61   ;;  %v2055_v14 = vadd.f32 %v2023_v43, %v1795_v23  ;;  %v2318_v44 = vadd.f32 %v2286_v4, %v2057_v16  ;;  %v2544_v8 = vmul.f32 %v7787_v59, %v7824_v19 }
 0x21b   : > { %v3369_v62 = vrot.slane %v3368_v31, 1  ;;  %v3375_v11 = vmax.f32 %v3373_v42, %v3374_v51  ;;  %v3382_v54 = vmax.f32 %v3380_v29, %v3381_v34  ;;  %v3388_v30 = vrot.slane %v3387_v28, 2 }
 0x21c   : > { %v2806_v3 = vmul.f32 %v7808_v35, %v7944_v25  ;;  %v8029_v18 = vpop.permute.xlu1 %1912  ;;  %v2316_v42 = vadd.f32 %v2284_v21, %v2055_v14  ;;  %v2578_v29 = vadd.f32 %v2546_v13, %v2318_v44  ;;  %v2804_v23 = vmul.f32 %v7808_v35, %v7926_v26 }
 0x21d   : > { %v3370_v52 = vmax.f32 %v3368_v31, %v3369_v62  ;;  %v3376_v15 = vrot.slane %v3375_v11, 1  ;;  %v3383_v10 = vrot.slane %v3382_v54, 1  ;;  %v3389_v20 = vmax.f32 %v3387_v28, %v3388_v30  ;;  %v8031_v61 = vpop.permute.xlu0 %2403  ;;  %1952 = vperm.xlu1 %6643, %v7833_v24   ;;  %v2360_v31 = vld [vmem:[#allocation2 + $0xf1] sm:$0xff]  ;;  %v2362_v30 = vld [vmem:[#allocation2 + $0x109] sm:$0xff] }
 0x21e   : > { %v3926_v19 = vsel %vm3925_vm11, %v3363_v32, %v3924_v6  ;;  %2443 = vperm.xlu0 %6642, %v2357_v53   ;;  %v2576_v51 = vadd.f32 %v2544_v8, %v2316_v42  ;;  %v2838_v34 = vadd.f32 %v2806_v3, %v2578_v29  ;;  %v2359_v6 = vld [vmem:[#allocation2 + $0xe1] sm:$0xff]  ;;  %v8046_v62 = vld [vmem:[#allocation2 + $0x12a] sm:$0xff]  ;;  %v8056_v53 = vld [vmem:[#allocation2 + $0x152] sm:$0xff] }
 0x21f   : > { %v3377_v16 = vmax.f32 %v3375_v11, %v3376_v15  ;;  %v3384_v25 = vmax.f32 %v3382_v54, %v3383_v10  ;;  %v3390_v43 = vrot.slane %v3389_v20, 1  ;;  %v3928_v4 = vsel %vm3927_vm12, %v3370_v52, %v3926_v19  ;;  %v8063_v10 = vld [vmem:[#allocation2 + $0x142] sm:$0xff] }
 0x220   : > { %v8038_v28 = vpop.permute.xlu1 %1927  ;;  %v2836_v26 = vadd.f32 %v2804_v23, %v2576_v51  ;;  %v2876_v8 = vadd.f32 %v7831_v17, %v2838_v34  ;;  %v9952_v19 = vld [vmem:[#allocation88_spill] sm:$0xff] }
 0x221   : > { %v3391_v24 = vmax.f32 %v3389_v20, %v3390_v43  ;;  %v3930_v44 = vsel %vm3929_vm13, %v3377_v16, %v3928_v4  ;;  %v8041_v21 = vpop.permute.xlu0 %2418  ;;  %1967 = vperm.xlu1 %6643, %v7843_v22   ;;  %v8073_v16 = vld [vmem:[#allocation2 + $0x16a] sm:$0xff]  ;;  %v9955_v51 = vld [vmem:[#allocation20_spill] sm:$0xff] }
 0x222   : > { %v3932_v32 = vsel %vm3931_vm14, %v3384_v25, %v3930_v44  ;;  %2458 = vperm.xlu0 %6642, %v2360_v31   ;;  %v2874_v22 = vadd.f32 %v7831_v17, %v2836_v26  ;;  %v2908_v14 = vmax.f32 %v2876_v8, 0.0  ;;  %v9953_v25 = vld [vmem:[#allocation48_spill] sm:$0xff]  ;;  %v724_v34 = vmul.f32 %v7721_v39, %v9955_v51 }
 0x223   : > { %v3934_v13 = vsel %vm3933_vm15, %v3391_v24, %v3932_v32  ;;  %v984_v43 = vmul.f32 %v7723_v40, %v9953_v25  ;;  %v9956_v24 = vld [vmem:[#allocation57_spill] sm:$0xff]  ;;  %v9958_v32 = vld [vmem:[#allocation91_spill] sm:$0xff] }
 0x224   : > { %3993 = vst.msk [vmem:[#allocation3 + $0x11] sm:$0xff] %vm2934_vm7, %v3934_v13  ;;  %v8050_v11 = vpop.permute.xlu1 %2413  ;;  %v2906_v15 = vmax.f32 %v2874_v22, 0.0  ;;  %v2942_v20 = vsel %vm2934_vm7, %v2908_v14, -inf  ;;  %v1244_v44 = vmul.f32 %v7725_v46, %v9956_v24  ;;  %v9959_v13 = vld [vmem:[#allocation66_spill] sm:$0xff]  ;;  %v9964_v24 = vld [vmem:[#allocation59_spill] sm:$0xff] }
 0x225   : > { %v8052_v54 = vpop.permute.xlu0 %1162  ;;  %2453 = vperm.xlu1 %6643, %v2359_v6   ;;  %v1016_v6 = vadd.f32 %v984_v43, %v724_v34  ;;  %v1504_v8 = vmul.f32 %v7735_v33, %v9959_v13  ;;  %v9963_v43 = vld [vmem:[#allocation22_spill] sm:$0xff] }
 0x226   : > { %9948 = vst [vmem:[#allocation61_spill] sm:$0xff] %v8052_v54  ;;  %1202 = vperm.xlu0 %6642, %v8046_v62   ;;  %v2941_v23 = vsel %vm2934_vm7, %v2906_v15, -inf  ;;  %v726_v34 = vmul.f32 %v7721_v39, %v9963_v43  ;;  %v2285_v43 = vmul.f32 %v7775_v2, %v7887_v38 }
 0x227   : > { %v2943_v4 = vmax.f32 %v2941_v23, %v2942_v20  ;;  %v1276_v20 = vadd.f32 %v1244_v44, %v1016_v6  ;;  %v9962_v23 = vld [vmem:[#allocation78_spill] sm:$0xff]  ;;  %v2024_v44 = vmul.f32 %v7766_v60, %v7777_v63  ;;  %v9968_v63 = vld [vmem:[#allocation81_spill] sm:$0xff] }
 0x228   : > { %v8058_v3 = vpop.permute.xlu1 %2428 }
 0x229   : > { %v8060_v52 = vpop.permute.xlu0 %1177  ;;  %2468 = vperm.xlu1 %6643, %v2362_v30   ;;  %v3040_v22 = vrot.slane %v2943_v4, %v7866_v49  ;;  %v9960_v30 = vld [vmem:[#allocation53_spill] sm:$0xff]  ;;  %v3033_v25 = vcombine.high %v2943_v4, %v2943_v4  ;;  %v1536_v13 = vadd.f32 %v1504_v8, %v1276_v20  ;;  %v1766_v8 = vmul.f32 %v7749_v7, %v9968_v63 }
 0x22a   : > { %9949 = vst [vmem:[#allocation62_spill] sm:$0xff] %v8060_v52  ;;  %1217 = vperm.xlu0 %6642, %v8056_v53   ;;  %v986_v14 = vmul.f32 %v7723_v40, %v9960_v30 }
 0x22b   : > { %v3048_v6 = vcombine.high %v3040_v22, %v3040_v22 }
 0x22c   : > { %v8066_v42 = vpop.permute.xlu1 %1172  ;;  %v1018_v30 = vadd.f32 %v986_v14, %v726_v34  ;;  %v2617_v34 = vld [vmem:[#allocation2 + $0xca] sm:$0xff] }
 0x22d   : > { %9950 = vst [vmem:[#allocation72_spill] sm:$0xff] %v8066_v42  ;;  %v8068_v29 = vpop.permute.xlu0 %1662  ;;  %1212 = vperm.xlu1 %6643, %v8063_v10   ;;  %v3399_v20 = vsel %vm3335_vm8, %v3048_v6, -inf }
 0x22e   : > { %9951 = vst [vmem:[#allocation74_spill] sm:$0xff] %v8068_v29  ;;  %1702 = vperm.xlu0 %6642, %v9952_v19   ;;  %v1764_v19 = vmul.f32 %v7749_v7, %v9962_v23  ;;  %v9965_v23 = vld [vmem:[#allocation69_spill] sm:$0xff]  ;;  %v3400_v6 = vrot.slane %v3399_v20, 4  ;;  %v9977_v29 = vld [vmem:[#allocation68_spill] sm:$0xff] }
 0x22f   : > { %v1506_v4 = vmul.f32 %v7735_v33, %v9965_v23 }
 0x230   : > { %v8077_v31 = vpop.permute.xlu1 %1187 }
 0x231   : > { %9954 = vst [vmem:[#allocation71_spill] sm:$0xff] %v8077_v31  ;;  %v8083_v26 = vpop.permute.xlu0 %1677  ;;  %1227 = vperm.xlu1 %6643, %v8073_v16   ;;  %v9976_v31 = vld [vmem:[#allocation60_spill] sm:$0xff] }
 0x232   : > { %9957 = vst [vmem:[#allocation85_spill] sm:$0xff] %v8083_v26  ;;  %1717 = vperm.xlu0 %6642, %v9958_v32   ;;  %v1246_v32 = vmul.f32 %v7725_v46, %v9964_v24  ;;  %v3047_v26 = vrot.slane %v3033_v25, %v7866_v49  ;;  %v2026_v25 = vmul.f32 %v7766_v60, %v7814_v27 }
 0x234   : > { %v8092_v15 = vpop.permute.xlu1 %1672 }
 0x235   : > { %9961 = vst [vmem:[#allocation83_spill] sm:$0xff] %v8092_v15  ;;  %v8096_v51 = vpop.permute.xlu0 %2163  ;;  %1712 = vperm.xlu1 %6643, %v7931_v5   ;;  %v1796_v5 = vadd.f32 %v1764_v19, %v1536_v13  ;;  %v2545_v19 = vmul.f32 %v7787_v59, %v8031_v61 }
 0x236   : > { %2203 = vperm.xlu0 %6642, %v7764_v47   ;;  %v1278_v47 = vadd.f32 %v1246_v32, %v1018_v30  ;;  %v3392_v32 = vsel %vm3335_vm8, %v3040_v22, -inf }
 0x237   : > { %v2056_v14 = vadd.f32 %v2024_v44, %v1796_v5  ;;  %v3049_v44 = vcombine.high %v3047_v26, %v3047_v26  ;;  %v3393_v27 = vrot.slane %v3392_v32, 4 }
 0x238   : > { %v8108_v15 = vpop.permute.xlu1 %1687  ;;  %v1538_v38 = vadd.f32 %v1506_v4, %v1278_v47  ;;  %v2287_v4 = vmul.f32 %v7775_v2, %v7911_v45  ;;  %v2620_v47 = vld [vmem:[#allocation2 + $0xf2] sm:$0xff]  ;;  %v2619_v45 = vld [vmem:[#allocation2 + $0xe2] sm:$0xff] }
 0x239   : > { %9966 = vst [vmem:[#allocation76_spill] sm:$0xff] %v8108_v15  ;;  %v8113_v24 = vpop.permute.xlu0 %2178  ;;  %1727 = vperm.xlu1 %6643, %v7939_v55   ;;  %v2317_v55 = vadd.f32 %v2285_v43, %v2056_v14  ;;  %v2547_v14 = vmul.f32 %v7787_v59, %v8050_v11 }
 0x23a   : > { %9967 = vst [vmem:[#allocation88_spill] sm:$0xff] %v8113_v24  ;;  %2218 = vperm.xlu0 %6642, %v7785_v1   ;;  %v3406_v1 = vsel %vm3335_vm8, %v3047_v26, -inf  ;;  %v1798_v61 = vadd.f32 %v1766_v8, %v1538_v38  ;;  %v3413_v8 = vsel %vm3335_vm8, %v3049_v44, -inf  ;;  %v8140_v38 = vld [vmem:[#allocation2 + $0x159] sm:$0xff] }
 0x23b   : > { %v2577_v5 = vadd.f32 %v2545_v19, %v2317_v55  ;;  %v3407_v43 = vrot.slane %v3406_v1, 4  ;;  %v3394_v55 = vmax.f32 %v3392_v32, %v3393_v27  ;;  %v9983_v24 = vld [vmem:[#allocation82_spill] sm:$0xff] }
 0x23c   : > { %v8122_v13 = vpop.permute.xlu1 %2173  ;;  %v2058_v22 = vadd.f32 %v2026_v25, %v1798_v61  ;;  %v3414_v25 = vrot.slane %v3413_v8, 4 }
 0x23d   : > { %v2664_v30 = vpop.permute.xlu0 %2663  ;;  %2213 = vperm.xlu1 %6643, %v7961_v9  }
 0x23e   : > { %v2805_v23 = vmul.f32 %v7808_v35, %v2664_v30  ;;  %2703 = vperm.xlu0 %6642, %v2617_v34   ;;  %v3401_v34 = vmax.f32 %v3399_v20, %v3400_v6  ;;  %v2319_v19 = vadd.f32 %v2287_v4, %v2058_v22  ;;  %v3408_v30 = vmax.f32 %v3406_v1, %v3407_v43  ;;  %v2622_v20 = vld [vmem:[#allocation2 + $0x10a] sm:$0xff]  ;;  %v8147_v6 = vld [vmem:[#allocation2 + $0x140] sm:$0xff] }
 0x23f   : > { %v9970_v4 = vld [vmem:[#allocation52_spill] sm:$0xff]  ;;  %v3395_v1 = vrot.slane %v3394_v55, 2  ;;  %v3415_v43 = vmax.f32 %v3413_v8, %v3414_v25  ;;  %v9975_v25 = vld [vmem:[#allocation58_spill] sm:$0xff] }
 0x240   : > { %v8132_v63 = vpop.permute.xlu1 %2188  ;;  %v2837_v9 = vadd.f32 %v2805_v23, %v2577_v5  ;;  %v2579_v61 = vadd.f32 %v2547_v14, %v2319_v19  ;;  %v987_v32 = vmul.f32 %v7723_v40, %v9970_v4  ;;  %v3409_v27 = vrot.slane %v3408_v30, 2  ;;  %v9973_v19 = vld [vmem:[#allocation54_spill] sm:$0xff] }
 0x241   : > { %v8136_v26 = vpop.permute.xlu0 %2678  ;;  %2228 = vperm.xlu1 %6643, %v7981_v12   ;;  %v3402_v12 = vrot.slane %v3401_v34, 2  ;;  %v8161_v4 = vld [vmem:[#allocation2 + $0x171] sm:$0xff]  ;;  %v3416_v52 = vrot.slane %v3415_v43, 2 }
 0x242   : > { %2718 = vperm.xlu0 %6642, %v2620_v47   ;;  %v2875_v11 = vadd.f32 %v7831_v17, %v2837_v9  ;;  %v9972_v9 = vld [vmem:[#allocation21_spill] sm:$0xff]  ;;  %v3410_v42 = vmax.f32 %v3408_v30, %v3409_v27 }
 0x244   : > { %v2674_v15 = vpop.permute.xlu1 %2673  ;;  %v2907_v22 = vmax.f32 %v2875_v11, 0.0  ;;  %v1247_v11 = vmul.f32 %v7725_v46, %v9975_v25 }
 0x245   : > { %v2807_v23 = vmul.f32 %v7808_v35, %v2674_v15  ;;  %v8144_v5 = vpop.permute.xlu0 %922  ;;  %2713 = vperm.xlu1 %6643, %v2619_v45   ;;  %v727_v45 = vmul.f32 %v7721_v39, %v9972_v9  ;;  %v1249_v9 = vmul.f32 %v7725_v46, %v9976_v31  ;;  %v8181_v31 = vld [vmem:[#allocation2 + $0x158] sm:$0xff] }
 0x246   : > { %9969 = vst [vmem:[#allocation48_spill] sm:$0xff] %v8144_v5  ;;  %962 = vperm.xlu0 %6642, %v8140_v38   ;;  %v9974_v5 = vld [vmem:[#allocation23_spill] sm:$0xff]  ;;  %9980 = vst [vmem:[#allocation66_spill] sm:$0xff] %v8181_v31 }
 0x247   : > { %v2839_v44 = vadd.f32 %v2807_v23, %v2579_v61  ;;  %v989_v61 = vmul.f32 %v7723_v40, %v9973_v19  ;;  %v3403_v23 = vmax.f32 %v3401_v34, %v3402_v12  ;;  %v729_v8 = vmul.f32 %v7721_v39, %v9974_v5 }
 0x248   : > { %v8151_v47 = vpop.permute.xlu1 %2688  ;;  %v1507_v34 = vmul.f32 %v7735_v33, %v9977_v29  ;;  %v3396_v12 = vmax.f32 %v3394_v55, %v3395_v1  ;;  %v2944_v5 = vsel %vm2934_vm7, %v2907_v22, -inf  ;;  %v9981_v55 = vld [vmem:[#allocation70_spill] sm:$0xff] }
 0x249   : > { %v2877_v15 = vadd.f32 %v7831_v17, %v2839_v44  ;;  %v8154_v14 = vpop.permute.xlu0 %937  ;;  %2728 = vperm.xlu1 %6643, %v2622_v20   ;;  %v1019_v20 = vadd.f32 %v987_v32, %v727_v45  ;;  %v1021_v32 = vadd.f32 %v989_v61, %v729_v8  ;;  %v1509_v30 = vmul.f32 %v7735_v33, %v9981_v55 }
 0x24a   : > { %9971 = vst [vmem:[#allocation20_spill] sm:$0xff] %v8154_v14  ;;  %1462 = vperm.xlu0 %6642, %v8147_v6   ;;  %v8167_v14 = vld [vmem:[#allocation2 + $0x168] sm:$0xff]  ;;  %v3397_v27 = vrot.slane %v3396_v12, 1  ;;  %v1769_v61 = vmul.f32 %v7749_v7, %v9983_v24  ;;  %v3417_v8 = vmax.f32 %v3415_v43, %v3416_v52  ;;  %v2029_v52 = vmul.f32 %v7766_v60, %v7822_v50 }
 0x24b   : > { %v2909_v44 = vmax.f32 %v2877_v15, 0.0  ;;  %v3404_v15 = vrot.slane %v3403_v23, 1  ;;  %v1279_v29 = vadd.f32 %v1247_v11, %v1019_v20  ;;  %v1281_v1 = vadd.f32 %v1249_v9, %v1021_v32 }
 0x24c   : > { %v8173_v19 = vpop.permute.xlu1 %932  ;;  %v3398_v55 = vmax.f32 %v3396_v12, %v3397_v27 }
 0x24d   : > { %9978 = vst [vmem:[#allocation57_spill] sm:$0xff] %v8173_v19  ;;  %v2945_v54 = vsel %vm2934_vm7, %v2909_v44, -inf  ;;  %v8177_v25 = vpop.permute.xlu0 %1422  ;;  %972 = vperm.xlu1 %6643, %v8161_v4   ;;  %v3405_v11 = vmax.f32 %v3403_v23, %v3404_v15 }
 0x24e   : > { %9979 = vst [vmem:[#allocation91_spill] sm:$0xff] %v8177_v25  ;;  %v2946_v45 = vmax.f32 %v2944_v5, %v2945_v54  ;;  %1477 = vperm.xlu0 %6642, %v8167_v14   ;;  %v1539_v25 = vadd.f32 %v1507_v34, %v1279_v29  ;;  %v3411_v54 = vrot.slane %v3410_v42, 1  ;;  %v1541_v34 = vadd.f32 %v1509_v30, %v1281_v1  ;;  %v9985_v29 = vld [vmem:[#allocation80_spill] sm:$0xff] }
 0x24f   : > { %v1767_v24 = vmul.f32 %v7749_v7, %v9985_v29  ;;  %v3418_v29 = vrot.slane %v3417_v8, 1  ;;  %v3935_v50 = vsel %vm3921_vm9, %v3405_v11, %v3398_v55 }
 0x250   : > { %v3050_v22 = vcombine.high %v2946_v45, %v2946_v45  ;;  %v3057_v44 = vrot.slane %v2946_v45, %v7866_v49  ;;  %v8186_v19 = vpop.permute.xlu1 %947  ;;  %v8196_v45 = vld [vmem:[#allocation2 + $0x180] sm:$0xff]  ;;  %v3412_v1 = vmax.f32 %v3410_v42, %v3411_v54  ;;  %v2290_v42 = vmul.f32 %v7775_v2, %v7922_v56 }
 0x251   : > { %9982 = vst [vmem:[#allocation53_spill] sm:$0xff] %v8186_v19  ;;  %v8190_v5 = vpop.permute.xlu0 %1437  ;;  %1472 = vperm.xlu1 %6643, %v8181_v31  }
 0x252   : > { %9984 = vst [vmem:[#allocation78_spill] sm:$0xff] %v8190_v5  ;;  %v3064_v20 = vrot.slane %v3050_v22, %v7866_v49  ;;  %v3065_v9 = vcombine.high %v3057_v44, %v3057_v44  ;;  %v3420_v32 = vsel %vm3335_vm8, %v3057_v44, -inf  ;;  %1962 = vperm.xlu0 %6642, %v7851_v37   ;;  %v1801_v44 = vadd.f32 %v1769_v61, %v1541_v34  ;;  %v2361_v61 = vld [vmem:[#allocation2 + $0xf9] sm:$0xff] }
 0x253   : > { %v3421_v43 = vrot.slane %v3420_v32, 4  ;;  %v2027_v34 = vmul.f32 %v7766_v60, %v7797_v36  ;;  %v3936_v36 = vsel %vm3923_vm10, %v3412_v1, %v3935_v50 }
 0x254   : > { %v3066_v5 = vcombine.high %v3064_v20, %v3064_v20  ;;  %v3427_v23 = vsel %vm3335_vm8, %v3065_v9, -inf  ;;  %v3434_v15 = vsel %vm3335_vm8, %v3064_v20, -inf  ;;  %v8204_v22 = vpop.permute.xlu1 %1432 }
 0x255   : > { %9986 = vst [vmem:[#allocation22_spill] sm:$0xff] %v8204_v22  ;;  %v3422_v37 = vmax.f32 %v3420_v32, %v3421_v43  ;;  %v3428_v19 = vrot.slane %v3427_v23, 4  ;;  %v3435_v31 = vrot.slane %v3434_v15, 4  ;;  %v8206_v30 = vpop.permute.xlu0 %1922  ;;  %1487 = vperm.xlu1 %6643, %v8196_v45   ;;  %v1799_v32 = vadd.f32 %v1767_v24, %v1539_v25 }
 0x256   : > { %9987 = vst [vmem:[#allocation59_spill] sm:$0xff] %v8206_v30  ;;  %v3441_v12 = vsel %vm3335_vm8, %v3066_v5, -inf  ;;  %1977 = vperm.xlu0 %6642, %v7861_v41   ;;  %v2061_v43 = vadd.f32 %v2029_v52, %v1801_v44  ;;  %v3419_v25 = vmax.f32 %v3417_v8, %v3418_v29 }
 0x257   : > { %v3423_v27 = vrot.slane %v3422_v37, 2  ;;  %v3429_v20 = vmax.f32 %v3427_v23, %v3428_v19  ;;  %v3436_v9 = vmax.f32 %v3434_v15, %v3435_v31  ;;  %v3442_v22 = vrot.slane %v3441_v12, 4  ;;  %v2364_v15 = vld [vmem:[#allocation2 + $0x121] sm:$0xff] }
 0x258   : > { %v8216_v54 = vpop.permute.xlu1 %1447  ;;  %v2288_v19 = vmul.f32 %v7775_v2, %v7903_v0  ;;  %v2550_v31 = vmul.f32 %v7787_v59, %v8058_v3  ;;  %v2322_v44 = vadd.f32 %v2290_v42, %v2061_v43  ;;  %v2810_v0 = vmul.f32 %v7808_v35, %v8151_v47  ;;  %v8239_v42 = vld [vmem:[#allocation2 + $0x15a] sm:$0xff] }
 0x259   : > { %9988 = vst [vmem:[#allocation69_spill] sm:$0xff] %v8216_v54  ;;  %v3424_v11 = vmax.f32 %v3422_v37, %v3423_v27  ;;  %v3430_v55 = vrot.slane %v3429_v20, 2  ;;  %v3437_v5 = vrot.slane %v3436_v9, 2  ;;  %v3443_v30 = vmax.f32 %v3441_v12, %v3442_v22  ;;  %v8218_v41 = vpop.permute.xlu0 %1937  ;;  %1972 = vperm.xlu1 %6643, %v8046_v62  }
 0x25a   : > { %2463 = vperm.xlu0 %6642, %v2361_v61   ;;  %v2059_v22 = vadd.f32 %v2027_v34, %v1799_v32  ;;  %v2548_v37 = vmul.f32 %v7787_v59, %v8041_v21  ;;  %v3937_v21 = vsel %vm3925_vm11, %v3419_v25, %v3936_v36  ;;  %v2363_v61 = vld [vmem:[#allocation2 + $0x111] sm:$0xff]  ;;  %v2366_v25 = vld [vmem:[#allocation2 + $0x139] sm:$0xff] }
 0x25b   : > { %v3425_v56 = vrot.slane %v3424_v11, 1  ;;  %v3431_v24 = vmax.f32 %v3429_v20, %v3430_v55  ;;  %v3438_v52 = vmax.f32 %v3436_v9, %v3437_v5  ;;  %v3444_v23 = vrot.slane %v3443_v30, 2 }
 0x25c   : > { %v8230_v8 = vpop.permute.xlu1 %1932  ;;  %v2320_v27 = vadd.f32 %v2288_v19, %v2059_v22  ;;  %v2582_v20 = vadd.f32 %v2550_v31, %v2322_v44  ;;  %v2808_v9 = vmul.f32 %v7808_v35, %v8136_v26 }
 0x25d   : > { %v3426_v1 = vmax.f32 %v3424_v11, %v3425_v56  ;;  %v3432_v29 = vrot.slane %v3431_v24, 1  ;;  %v3439_v50 = vrot.slane %v3438_v52, 1  ;;  %v3445_v3 = vmax.f32 %v3443_v30, %v3444_v23  ;;  %v8232_v12 = vpop.permute.xlu0 %2423  ;;  %1987 = vperm.xlu1 %6643, %v8056_v53  }
 0x25e   : > { %2478 = vperm.xlu0 %6642, %v2364_v15   ;;  %v2580_v30 = vadd.f32 %v2548_v37, %v2320_v27  ;;  %v2842_v11 = vadd.f32 %v2810_v0, %v2582_v20  ;;  %v8257_v15 = vld [vmem:[#allocation2 + $0x172] sm:$0xff]  ;;  %v9994_v27 = vld [vmem:[#allocation63_spill] sm:$0xff] }
 0x25f   : > { %v3433_v47 = vmax.f32 %v3431_v24, %v3432_v29  ;;  %v3440_v32 = vmax.f32 %v3438_v52, %v3439_v50  ;;  %v3446_v34 = vrot.slane %v3445_v3, 1  ;;  %v3938_v43 = vsel %vm3927_vm12, %v3426_v1, %v3937_v21 }
 0x260   : > { %v8241_v55 = vpop.permute.xlu1 %1947  ;;  %v2840_v35 = vadd.f32 %v2808_v9, %v2580_v30  ;;  %v2880_v56 = vadd.f32 %v7831_v17, %v2842_v11  ;;  %v988_v20 = vmul.f32 %v7723_v40, %v9994_v27  ;;  %v9999_v30 = vld [vmem:[#allocation90_spill] sm:$0xff] }
 0x261   : > { %v3447_v5 = vmax.f32 %v3445_v3, %v3446_v34  ;;  %v3939_v19 = vsel %vm3929_vm13, %v3433_v47, %v3938_v43  ;;  %v8244_v31 = vpop.permute.xlu0 %2438  ;;  %2473 = vperm.xlu1 %6643, %v2363_v61   ;;  %v8273_v3 = vld [vmem:[#allocation2 + $0x181] sm:$0xff]  ;;  %v9997_v47 = vld [vmem:[#allocation73_spill] sm:$0xff]  ;;  %v1508_v11 = vmul.f32 %v7735_v33, %v9999_v30 }
 0x262   : > { %v3940_v26 = vsel %vm3931_vm14, %v3440_v32, %v3939_v19  ;;  %1222 = vperm.xlu0 %6642, %v8239_v42   ;;  %v2878_v23 = vadd.f32 %v7831_v17, %v2840_v35  ;;  %v2912_v22 = vmax.f32 %v2880_v56, 0.0  ;;  %v1248_v32 = vmul.f32 %v7725_v46, %v9997_v47  ;;  %v2621_v19 = vld [vmem:[#allocation2 + $0xfa] sm:$0xff]  ;;  %v10000_v35 = vld [vmem:[#allocation65_spill] sm:$0xff]  ;;  %v10002_v56 = vld [vmem:[#allocation100_spill] sm:$0xff] }
 0x263   : > { %v3941_v36 = vsel %vm3933_vm15, %v3447_v5, %v3940_v26  ;;  %v990_v26 = vmul.f32 %v7723_v40, %v10000_v35  ;;  %v2624_v47 = vld [vmem:[#allocation2 + $0x122] sm:$0xff]  ;;  %v2289_v35 = vmul.f32 %v7775_v2, %v8096_v51 }
 0x264   : > { %3994 = vst.msk [vmem:[#allocation3 + $0x21] sm:$0xff] %vm2934_vm7, %v3941_v36  ;;  %v8251_v24 = vpop.permute.xlu1 %2433  ;;  %v2910_v0 = vmax.f32 %v2878_v23, 0.0  ;;  %v2948_v1 = vsel %vm2934_vm7, %v2912_v22, -inf  ;;  %v1768_v23 = vmul.f32 %v7749_v7, %v10002_v56 }
 0x265   : > { %v8253_v52 = vpop.permute.xlu0 %1182  ;;  %2488 = vperm.xlu1 %6643, %v2366_v25  }
 0x266   : > { %9989 = vst [vmem:[#allocation81_spill] sm:$0xff] %v8253_v52  ;;  %1722 = vperm.xlu0 %6642, %v7955_v57   ;;  %v2947_v17 = vsel %vm2934_vm7, %v2910_v0, -inf  ;;  %v9993_v57 = vld [vmem:[#allocation19_spill] sm:$0xff]  ;;  %v10018_v52 = vld [vmem:[#allocation94_spill] sm:$0xff] }
 0x267   : > { %v2949_v9 = vmax.f32 %v2947_v17, %v2948_v1  ;;  %v10004_v17 = vld [vmem:[#allocation77_spill] sm:$0xff]  ;;  %v1511_v54 = vmul.f32 %v7735_v33, %v10018_v52 }
 0x268   : > { %v8259_v44 = vpop.permute.xlu1 %2448 }
 0x269   : > { %v8261_v37 = vpop.permute.xlu0 %1197  ;;  %1232 = vperm.xlu1 %6643, %v8257_v15   ;;  %v3074_v5 = vrot.slane %v2949_v9, %v7866_v49  ;;  %v3067_v22 = vcombine.high %v2949_v9, %v2949_v9 }
 0x26a   : > { %9990 = vst [vmem:[#allocation52_spill] sm:$0xff] %v8261_v37  ;;  %1737 = vperm.xlu0 %6642, %v7975_v58   ;;  %v9996_v58 = vld [vmem:[#allocation24_spill] sm:$0xff] }
 0x26b   : > { %v728_v61 = vmul.f32 %v7721_v39, %v9996_v58  ;;  %v3081_v56 = vrot.slane %v3067_v22, %v7866_v49  ;;  %v8376_v37 = vld [vmem:[#allocation2 + $0x182] sm:$0xff] }
 0x26c   : > { %v8266_v29 = vpop.permute.xlu1 %1192 }
 0x26d   : > { %9991 = vst [vmem:[#allocation21_spill] sm:$0xff] %v8266_v29  ;;  %v8268_v50 = vpop.permute.xlu0 %1682  ;;  %1732 = vperm.xlu1 %6643, %v8140_v38   ;;  %v1020_v43 = vadd.f32 %v988_v20, %v728_v61  ;;  %v10005_v20 = vld [vmem:[#allocation49_spill] sm:$0xff]  ;;  %v3082_v61 = vcombine.high %v3074_v5, %v3074_v5 }
 0x26e   : > { %9992 = vst [vmem:[#allocation54_spill] sm:$0xff] %v8268_v50  ;;  %2223 = vperm.xlu0 %6642, %v9993_v57   ;;  %v1250_v57 = vmul.f32 %v7725_v46, %v10004_v17  ;;  %v2028_v58 = vmul.f32 %v7766_v60, %v10005_v20  ;;  %v3448_v20 = vsel %vm3335_vm8, %v3074_v5, -inf  ;;  %v2291_v5 = vmul.f32 %v7775_v2, %v8122_v13 }
 0x26f   : > { %v1280_v36 = vadd.f32 %v1248_v32, %v1020_v43  ;;  %v10006_v43 = vld [vmem:[#allocation95_spill] sm:$0xff]  ;;  %v3455_v17 = vsel %vm3335_vm8, %v3082_v61, -inf }
 0x270   : > { %v8277_v21 = vpop.permute.xlu1 %1207  ;;  %v1510_v9 = vmul.f32 %v7735_v33, %v10006_v43  ;;  %v3456_v61 = vrot.slane %v3455_v17, 4 }
 0x271   : > { %9995 = vst [vmem:[#allocation23_spill] sm:$0xff] %v8277_v21  ;;  %v8283_v34 = vpop.permute.xlu0 %1697  ;;  %1747 = vperm.xlu1 %6643, %v8273_v3   ;;  %v1540_v27 = vadd.f32 %v1508_v11, %v1280_v36  ;;  %v10008_v36 = vld [vmem:[#allocation104_spill] sm:$0xff] }
 0x272   : > { %9998 = vst [vmem:[#allocation58_spill] sm:$0xff] %v8283_v34  ;;  %2238 = vperm.xlu0 %6642, %v8008_v48   ;;  %v10003_v48 = vld [vmem:[#allocation26_spill] sm:$0xff] }
 0x273   : > { %v730_v1 = vmul.f32 %v7721_v39, %v10003_v48 }
 0x274   : > { %v8292_v25 = vpop.permute.xlu1 %1692 }
 0x275   : > { %10001 = vst [vmem:[#allocation60_spill] sm:$0xff] %v8292_v25  ;;  %v8296_v0 = vpop.permute.xlu0 %2183  ;;  %2233 = vperm.xlu1 %6643, %v8147_v6   ;;  %v1022_v32 = vadd.f32 %v990_v26, %v730_v1  ;;  %v1800_v6 = vadd.f32 %v1768_v23, %v1540_v27  ;;  %v1770_v26 = vmul.f32 %v7749_v7, %v10008_v36  ;;  %v8320_v27 = vld [vmem:[#allocation2 + $0x170] sm:$0xff] }
 0x276   : > { %2723 = vperm.xlu0 %6642, %v2621_v19   ;;  %v2623_v19 = vld [vmem:[#allocation2 + $0x112] sm:$0xff]  ;;  %v2549_v23 = vmul.f32 %v7787_v59, %v8232_v12  ;;  %v8331_v12 = vld [vmem:[%s9792_s1 + $0x8] ss:$0 sm:$0xff]  ;;  %v2551_v36 = vmul.f32 %v7787_v59, %v8251_v24  ;;  %v8350_v24 = vld [vmem:[%s9793_s2] ss:$0 sm:$0xff] }
 0x277   : > { %v1282_v11 = vadd.f32 %v1250_v57, %v1022_v32  ;;  %v2060_v1 = vadd.f32 %v2028_v58, %v1800_v6  ;;  %v3083_v58 = vcombine.high %v3081_v56, %v3081_v56 }
 0x278   : > { %v8307_v30 = vpop.permute.xlu1 %1707 }
 0x279   : > { %10007 = vst [vmem:[#allocation68_spill] sm:$0xff] %v8307_v30  ;;  %v8312_v48 = vpop.permute.xlu0 %2198  ;;  %2248 = vperm.xlu1 %6643, %v8167_v14   ;;  %v1542_v51 = vadd.f32 %v1510_v9, %v1282_v11  ;;  %v2030_v14 = vmul.f32 %v7766_v60, %v8029_v18  ;;  %v2321_v57 = vadd.f32 %v2289_v35, %v2060_v1  ;;  %v2626_v9 = vld [vmem:[#allocation2 + $0x13a] sm:$0xff]  ;;  %v3449_v35 = vrot.slane %v3448_v20, 4 }
 0x27a   : > { %2738 = vperm.xlu0 %6642, %v2624_v47   ;;  %v3462_v47 = vsel %vm3335_vm8, %v3081_v56, -inf  ;;  %v3469_v25 = vsel %vm3335_vm8, %v3083_v58, -inf }
 0x27b   : > { %v1802_v18 = vadd.f32 %v1770_v26, %v1542_v51  ;;  %v2581_v6 = vadd.f32 %v2549_v23, %v2321_v57  ;;  %v3463_v11 = vrot.slane %v3462_v47, 4  ;;  %v8345_v26 = vld [vmem:[#allocation2 + $0x188] sm:$0xff]  ;;  %v3450_v23 = vmax.f32 %v3448_v20, %v3449_v35 }
 0x27c   : > { %v8322_v22 = vpop.permute.xlu1 %2193  ;;  %v3470_v34 = vrot.slane %v3469_v25, 4  ;;  %v10013_v35 = vld [vmem:[#allocation25_spill] sm:$0xff] }
 0x27d   : > { %v2684_v32 = vpop.permute.xlu0 %2683  ;;  %2733 = vperm.xlu1 %6643, %v2623_v19   ;;  %v2062_v56 = vadd.f32 %v2030_v14, %v1802_v18  ;;  %v3464_v51 = vmax.f32 %v3462_v47, %v3463_v11  ;;  %v731_v11 = vmul.f32 %v7721_v39, %v10013_v35 }
 0x27e   : > { %v2809_v43 = vmul.f32 %v8331_v12, %v2684_v32  ;;  %1482 = vperm.xlu0 %6642, %v8320_v27   ;;  %v3457_v32 = vmax.f32 %v3455_v17, %v3456_v61  ;;  %v10011_v61 = vld [vmem:[#allocation64_spill] sm:$0xff]  ;;  %v3471_v21 = vmax.f32 %v3469_v25, %v3470_v34 }
 0x27f   : > { %v2323_v13 = vadd.f32 %v2291_v5, %v2062_v56  ;;  %v991_v20 = vmul.f32 %v7723_v40, %v10011_v61  ;;  %v10014_v56 = vld [vmem:[#allocation27_spill] sm:$0xff]  ;;  %v3465_v61 = vrot.slane %v3464_v51, 2 }
 0x280   : > { %v8337_v19 = vpop.permute.xlu1 %2208  ;;  %v2841_v1 = vadd.f32 %v2809_v43, %v2581_v6  ;;  %v3458_v47 = vrot.slane %v3457_v32, 2  ;;  %v2365_v6 = vld [vmem:[#allocation2 + $0x129] sm:$0xff] }
 0x281   : > { %10009 = vst [vmem:[#allocation70_spill] sm:$0xff] %v8337_v19  ;;  %v8341_v30 = vpop.permute.xlu0 %2698  ;;  %2748 = vperm.xlu1 %6643, %v2626_v9   ;;  %v2583_v14 = vadd.f32 %v2551_v36, %v2323_v13  ;;  %v10012_v9 = vld [vmem:[#allocation67_spill] sm:$0xff]  ;;  %v733_v36 = vmul.f32 %v7721_v39, %v10014_v56 }
 0x282   : > { %1982 = vperm.xlu0 %6642, %v8063_v10   ;;  %v2879_v43 = vadd.f32 %v8350_v24, %v2841_v1  ;;  %v993_v18 = vmul.f32 %v7723_v40, %v10012_v9  ;;  %v10015_v1 = vld [vmem:[#allocation75_spill] sm:$0xff]  ;;  %v3459_v56 = vmax.f32 %v3457_v32, %v3458_v47  ;;  %v3472_v32 = vrot.slane %v3471_v21, 2 }
 0x283   : > { %v1251_v13 = vmul.f32 %v7725_v46, %v10015_v1 }
 0x284   : > { %v2694_v57 = vpop.permute.xlu1 %2693  ;;  %v2911_v50 = vmax.f32 %v2879_v43, 0.0  ;;  %v1025_v1 = vadd.f32 %v993_v18, %v733_v36  ;;  %v10019_v43 = vld [vmem:[#allocation96_spill] sm:$0xff] }
 0x285   : > { %v2811_v17 = vmul.f32 %v8331_v12, %v2694_v57  ;;  %v8354_v58 = vpop.permute.xlu0 %942  ;;  %1492 = vperm.xlu1 %6643, %v8345_v26   ;;  %v3451_v57 = vrot.slane %v3450_v23, 2 }
 0x286   : > { %10010 = vst [vmem:[#allocation82_spill] sm:$0xff] %v8354_v58  ;;  %1997 = vperm.xlu0 %6642, %v8073_v16   ;;  %v2950_v47 = vsel %vm2934_vm7, %v2911_v50, -inf }
 0x287   : > { %v2843_v5 = vadd.f32 %v2811_v17, %v2583_v14  ;;  %v1023_v14 = vadd.f32 %v991_v20, %v731_v11  ;;  %v10017_v17 = vld [vmem:[#allocation79_spill] sm:$0xff]  ;;  %v3452_v20 = vmax.f32 %v3450_v23, %v3451_v57 }
 0x288   : > { %v8368_v58 = vpop.permute.xlu1 %2708  ;;  %v1253_v35 = vmul.f32 %v7725_v46, %v10017_v17  ;;  %v3466_v17 = vmax.f32 %v3464_v51, %v3465_v61 }
 0x289   : > { %v2881_v29 = vadd.f32 %v8350_v24, %v2843_v5  ;;  %v8371_v9 = vpop.permute.xlu0 %957  ;;  %1992 = vperm.xlu1 %6643, %v8239_v42   ;;  %v1283_v25 = vadd.f32 %v1251_v13, %v1023_v14  ;;  %v1513_v5 = vmul.f32 %v7735_v33, %v10019_v43  ;;  %v6728_v13 = vld [vmem:[#allocation2 + $0x151] sm:$0xff]  ;;  %v3453_v51 = vrot.slane %v3452_v20, 1 }
 0x28a   : > { %10016 = vst [vmem:[#allocation80_spill] sm:$0xff] %v8371_v9  ;;  %2483 = vperm.xlu0 %6642, %v2365_v6   ;;  %v10020_v9 = vld [vmem:[#allocation103_spill] sm:$0xff]  ;;  %v1285_v52 = vadd.f32 %v1253_v35, %v1025_v1  ;;  %v3467_v35 = vrot.slane %v3466_v17, 1  ;;  %v3473_v1 = vmax.f32 %v3471_v21, %v3472_v32 }
 0x28b   : > { %v2913_v34 = vmax.f32 %v2881_v29, 0.0  ;;  %v1771_v19 = vmul.f32 %v7749_v7, %v10020_v9  ;;  %v3460_v29 = vrot.slane %v3459_v56, 1  ;;  %v1543_v14 = vadd.f32 %v1511_v54, %v1283_v25  ;;  %v10023_v9 = vld [vmem:[#allocation105_spill] sm:$0xff] }
 0x28c   : > { %v8384_v11 = vpop.permute.xlu1 %952  ;;  %v1773_v23 = vmul.f32 %v7749_v7, %v10023_v9  ;;  %v1545_v57 = vadd.f32 %v1513_v5, %v1285_v52  ;;  %v3454_v32 = vmax.f32 %v3452_v20, %v3453_v51  ;;  %v10029_v51 = vld [vmem:[#allocation66_spill] sm:$0xff] }
 0x28d   : > { %10021 = vst [vmem:[#allocation19_spill] sm:$0xff] %v8384_v11  ;;  %v2951_v18 = vsel %vm2934_vm7, %v2913_v34, -inf  ;;  %v8388_v6 = vpop.permute.xlu0 %1442  ;;  %2007 = vperm.xlu1 %6643, %v8376_v37   ;;  %v1803_v34 = vadd.f32 %v1771_v19, %v1543_v14  ;;  %v3461_v54 = vmax.f32 %v3459_v56, %v3460_v29 }
 0x28e   : > { %10022 = vst [vmem:[#allocation63_spill] sm:$0xff] %v8388_v6  ;;  %v2952_v36 = vmax.f32 %v2950_v47, %v2951_v18  ;;  %2498 = vperm.xlu0 %6642, %v6728_v13   ;;  %v2033_v6 = vmul.f32 %v7766_v60, %v8038_v28  ;;  %v6729_v18 = vld [vmem:[#allocation2 + $0x141] sm:$0xff]  ;;  %v2294_v28 = vmul.f32 %v7775_v2, %v8132_v63 }
 0x28f   : > { %v10026_v13 = vld [vmem:[#allocation56_spill] sm:$0xff]  ;;  %v3942_v63 = vsel %vm3921_vm9, %v3461_v54, %v3454_v32 }
 0x290   : > { %v3084_v61 = vcombine.high %v2952_v36, %v2952_v36  ;;  %v3091_v50 = vrot.slane %v2952_v36, %v7866_v49  ;;  %v8394_v43 = vpop.permute.xlu1 %967  ;;  %v1805_v36 = vadd.f32 %v1773_v23, %v1545_v57  ;;  %v2031_v19 = vmul.f32 %v7766_v60, %v10026_v13  ;;  %v6730_v57 = vld [vmem:[#allocation2 + $0x169] sm:$0xff] }
 0x291   : > { %10024 = vst [vmem:[#allocation24_spill] sm:$0xff] %v8394_v43  ;;  %v8398_v47 = vpop.permute.xlu0 %1457  ;;  %2493 = vperm.xlu1 %6643, %v6729_v18   ;;  %v3468_v13 = vmax.f32 %v3466_v17, %v3467_v35  ;;  %v3474_v43 = vrot.slane %v3473_v1, 1  ;;  %v2554_v17 = vmul.f32 %v7787_v59, %v8259_v44 }
 0x292   : > { %10025 = vst [vmem:[#allocation73_spill] sm:$0xff] %v8398_v47  ;;  %v3098_v25 = vrot.slane %v3084_v61, %v7866_v49  ;;  %v3099_v5 = vcombine.high %v3091_v50, %v3091_v50  ;;  %v3476_v52 = vsel %vm3335_vm8, %v3091_v50, -inf  ;;  %1742 = vperm.xlu0 %6642, %v8161_v4   ;;  %v2065_v61 = vadd.f32 %v2033_v6, %v1805_v36 }
 0x293   : > { %v3477_v21 = vrot.slane %v3476_v52, 4  ;;  %v2063_v36 = vadd.f32 %v2031_v19, %v1803_v34  ;;  %v3943_v34 = vsel %vm3923_vm10, %v3468_v13, %v3942_v63  ;;  %v2552_v19 = vmul.f32 %v7787_v59, %v8244_v31 }
 0x294   : > { %v3100_v14 = vcombine.high %v3098_v25, %v3098_v25  ;;  %v3483_v9 = vsel %vm3335_vm8, %v3099_v5, -inf  ;;  %v3490_v56 = vsel %vm3335_vm8, %v3098_v25, -inf  ;;  %v8409_v29 = vpop.permute.xlu1 %1452  ;;  %v8416_v5 = vld [vmem:[#allocation2 + $0x189] sm:$0xff]  ;;  %v2326_v11 = vadd.f32 %v2294_v28, %v2065_v61 }
 0x295   : > { %10027 = vst [vmem:[#allocation90_spill] sm:$0xff] %v8409_v29  ;;  %v3478_v50 = vmax.f32 %v3476_v52, %v3477_v21  ;;  %v3484_v18 = vrot.slane %v3483_v9, 4  ;;  %v3491_v47 = vrot.slane %v3490_v56, 4  ;;  %v8411_v23 = vpop.permute.xlu0 %1942  ;;  %2508 = vperm.xlu1 %6643, %v6730_v57   ;;  %v10030_v21 = vld [vmem:[#allocation88_spill] sm:$0xff]  ;;  %v2814_v28 = vmul.f32 %v8331_v12, %v8368_v58 }
 0x296   : > { %10028 = vst [vmem:[#allocation65_spill] sm:$0xff] %v8411_v23  ;;  %v3497_v20 = vsel %vm3335_vm8, %v3100_v14, -inf  ;;  %2243 = vperm.xlu0 %6642, %v10029_v51   ;;  %v2292_v23 = vmul.f32 %v7775_v2, %v10030_v21 }
 0x297   : > { %v3479_v25 = vrot.slane %v3478_v50, 2  ;;  %v3485_v29 = vmax.f32 %v3483_v9, %v3484_v18  ;;  %v3492_v6 = vmax.f32 %v3490_v56, %v3491_v47  ;;  %v3498_v52 = vrot.slane %v3497_v20, 4 }
 0x298   : > { %v8422_v35 = vpop.permute.xlu1 %1467  ;;  %v3475_v47 = vmax.f32 %v3473_v1, %v3474_v43  ;;  %v2586_v18 = vadd.f32 %v2554_v17, %v2326_v11  ;;  %v2114_v11 = vld [vmem:[#allocation2 + $0x198] sm:$0xff] }
 0x299   : > { %10031 = vst [vmem:[#allocation100_spill] sm:$0xff] %v8422_v35  ;;  %v3480_v54 = vmax.f32 %v3478_v50, %v3479_v25  ;;  %v3486_v32 = vrot.slane %v3485_v29, 2  ;;  %v3493_v14 = vrot.slane %v3492_v6, 2  ;;  %v3499_v57 = vmax.f32 %v3497_v20, %v3498_v52  ;;  %v8424_v51 = vpop.permute.xlu0 %1957  ;;  %1752 = vperm.xlu1 %6643, %v8416_v5   ;;  %v10067_v35 = vld [vmem:[#allocation84_spill] sm:$0xff] }
 0x29a   : > { %10032 = vst [vmem:[#allocation26_spill] sm:$0xff] %v8424_v51  ;;  %2258 = vperm.xlu0 %6642, %v8196_v45   ;;  %v2324_v50 = vadd.f32 %v2292_v23, %v2063_v36  ;;  %v2812_v20 = vmul.f32 %v8331_v12, %v8341_v30  ;;  %v3944_v58 = vsel %vm3925_vm11, %v3475_v47, %v3943_v34  ;;  %v10035_v34 = vld [vmem:[#allocation28_spill] sm:$0xff]  ;;  %v10066_v51 = vld [vmem:[#allocation102_spill] sm:$0xff] }
 0x29b   : > { %v3481_v44 = vrot.slane %v3480_v54, 1  ;;  %v3487_v9 = vmax.f32 %v3485_v29, %v3486_v32  ;;  %v3494_v56 = vmax.f32 %v3492_v6, %v3493_v14  ;;  %v3500_v61 = vrot.slane %v3499_v57, 2 }
 0x29c   : > { %v8435_v43 = vpop.permute.xlu1 %1952  ;;  %v2584_v45 = vadd.f32 %v2552_v19, %v2324_v50  ;;  %v2846_v29 = vadd.f32 %v2814_v28, %v2586_v18  ;;  %v732_v19 = vmul.f32 %v7721_v39, %v10035_v34  ;;  %v10036_v28 = vld [vmem:[#allocation29_spill] sm:$0xff]  ;;  %v10040_v18 = vld [vmem:[#allocation32_spill] sm:$0xff]  ;;  %v10050_v34 = vld [vmem:[#allocation39_spill] sm:$0xff] }
 0x29d   : > { %10033 = vst [vmem:[#allocation77_spill] sm:$0xff] %v8435_v43  ;;  %v3482_v1 = vmax.f32 %v3480_v54, %v3481_v44  ;;  %v3488_v13 = vrot.slane %v3487_v9, 1  ;;  %v3495_v63 = vrot.slane %v3494_v56, 1  ;;  %v3501_v31 = vmax.f32 %v3499_v57, %v3500_v61  ;;  %v8437_v25 = vpop.permute.xlu0 %2443  ;;  %2253 = vperm.xlu1 %6643, %v8320_v27   ;;  %v10065_v43 = vld [vmem:[#allocation99_spill] sm:$0xff] }
 0x29e   : > { %2743 = vperm.xlu0 %6642, %v8046_v62   ;;  %v2844_v36 = vadd.f32 %v2812_v20, %v2584_v45  ;;  %v2884_v14 = vadd.f32 %v8350_v24, %v2846_v29  ;;  %v735_v44 = vmul.f32 %v7721_v39, %v10036_v28  ;;  %v736_v20 = vmul.f32 %v7721_v39, %v10040_v18  ;;  %v10054_v18 = vld [vmem:[#allocation41_spill] sm:$0xff] }
 0x29f   : > { %v3489_v23 = vmax.f32 %v3487_v9, %v3488_v13  ;;  %v3496_v6 = vmax.f32 %v3494_v56, %v3495_v63  ;;  %v3502_v30 = vrot.slane %v3501_v31, 1  ;;  %v3945_v52 = vsel %vm3927_vm12, %v3482_v1, %v3944_v58  ;;  %v10037_v9 = vld [vmem:[#allocation30_spill] sm:$0xff]  ;;  %v10041_v1 = vld [vmem:[#allocation33_spill] sm:$0xff]  ;;  %v10043_v58 = vld [vmem:[#allocation35_spill] sm:$0xff] }
 0x2a0   : > { %v8443_v21 = vpop.permute.xlu1 %1967  ;;  %v2882_v57 = vadd.f32 %v8350_v24, %v2844_v36  ;;  %v734_v56 = vmul.f32 %v7721_v39, %v10037_v9  ;;  %v739_v13 = vmul.f32 %v7721_v39, %v10041_v1  ;;  %v2916_v63 = vmax.f32 %v2884_v14, 0.0  ;;  %v10047_v36 = vld [vmem:[#allocation37_spill] sm:$0xff]  ;;  %v10052_v9 = vld [vmem:[#allocation40_spill] sm:$0xff] }
 0x2a1   : > { %10034 = vst [vmem:[#allocation49_spill] sm:$0xff] %v8443_v21  ;;  %v3503_v17 = vmax.f32 %v3501_v31, %v3502_v30  ;;  %v3946_v54 = vsel %vm3929_vm13, %v3489_v23, %v3945_v52  ;;  %v8446_v32 = vpop.permute.xlu0 %2458  ;;  %2268 = vperm.xlu1 %6643, %v2114_v11   ;;  %v10042_v31 = vld [vmem:[#allocation34_spill] sm:$0xff]  ;;  %v741_v29 = vmul.f32 %v7721_v39, %v10043_v58  ;;  %v10045_v23 = vld [vmem:[#allocation87_spill] sm:$0xff]  ;;  %v10046_v30 = vld [vmem:[#allocation36_spill] sm:$0xff] }
 0x2a2   : > { %v3947_v27 = vsel %vm3931_vm14, %v3496_v6, %v3946_v54  ;;  %2758 = vperm.xlu0 %6642, %v8056_v53   ;;  %v10039_v53 = vld [vmem:[#allocation31_spill] sm:$0xff]  ;;  %v738_v45 = vmul.f32 %v7721_v39, %v10042_v31  ;;  %v10044_v11 = vld [vmem:[#allocation86_spill] sm:$0xff]  ;;  %v995_v6 = vmul.f32 %v7723_v40, %v10045_v23  ;;  %v8482_v52 = vmul.f32 %v7721_v39, %v10046_v30  ;;  %v10056_v31 = vld [vmem:[#allocation89_spill] sm:$0xff] }
 0x2a3   : > { %v3948_v62 = vsel %vm3933_vm15, %v3503_v17, %v3947_v27  ;;  %v737_v50 = vmul.f32 %v7721_v39, %v10039_v53  ;;  %v8486_v17 = vmul.f32 %v7721_v39, %v10047_v36  ;;  %v10048_v54 = vld [vmem:[#allocation38_spill] sm:$0xff]  ;;  %v2914_v14 = vmax.f32 %v2882_v57, 0.0  ;;  %v10060_v30 = vld [vmem:[#allocation43_spill] sm:$0xff] }
 0x2a4   : > { %3995 = vst.msk [vmem:[#allocation3 + $0x31] sm:$0xff] %vm2934_vm7, %v3948_v62  ;;  %v8454_v47 = vpop.permute.xlu1 %2453  ;;  %v8490_v27 = vmul.f32 %v7721_v39, %v10048_v54  ;;  %v8496_v28 = vmul.f32 %v7721_v39, %v10050_v34  ;;  %v8500_v53 = vmul.f32 %v7721_v39, %v10052_v9  ;;  %v8504_v1 = vmul.f32 %v7721_v39, %v10054_v18  ;;  %v10058_v57 = vld [vmem:[#allocation42_spill] sm:$0xff]  ;;  %v10062_v54 = vld [vmem:[#allocation93_spill] sm:$0xff] }
 0x2a5   : > { %v8462_v61 = vpop.permute.xlu0 %1202  ;;  %2753 = vperm.xlu1 %6643, %v8063_v10   ;;  %v992_v10 = vmul.f32 %v7723_v40, %v10044_v11  ;;  %v994_v58 = vmul.f32 %v7723_v40, %v10056_v31  ;;  %v8513_v23 = vmul.f32 %v7721_v39, %v10058_v57  ;;  %v8517_v36 = vmul.f32 %v7721_v39, %v10060_v30  ;;  %v8523_v18 = vld [vmem:[#allocation2 + $0x18a] sm:$0xff]  ;;  %v10064_v57 = vld [vmem:[#allocation98_spill] sm:$0xff] }
 0x2a6   : > { %10038 = vst [vmem:[#allocation95_spill] sm:$0xff] %v8462_v61  ;;  %2002 = vperm.xlu0 %6642, %v8257_v15   ;;  %10049 = vst [vmem:[#allocation104_spill] sm:$0xff] %v8490_v27  ;;  %v997_v34 = vmul.f32 %v7723_v40, %v10062_v54  ;;  %v2954_v9 = vsel %vm2934_vm7, %v2916_v63, -inf  ;;  %v1255_v21 = vmul.f32 %v7725_v46, %v10064_v57  ;;  %v10079_v27 = vld [vmem:[#allocation55_spill] sm:$0xff] }
 0x2a7   : > { %10051 = vst [vmem:[#allocation64_spill] sm:$0xff] %v8496_v28  ;;  %10053 = vst [vmem:[#allocation67_spill] sm:$0xff] %v8500_v53  ;;  %v1024_v31 = vadd.f32 %v992_v10, %v732_v19  ;;  %v1254_v30 = vmul.f32 %v7725_v46, %v10065_v43  ;;  %v1257_v54 = vmul.f32 %v7725_v46, %v10066_v51  ;;  %v10072_v43 = vld [vmem:[#allocation46_spill] sm:$0xff] }
 0x2a8   : > { %v8492_v62 = vpop.permute.xlu1 %2468  ;;  %10055 = vst [vmem:[#allocation25_spill] sm:$0xff] %v8504_v1  ;;  %10059 = vst [vmem:[#allocation75_spill] sm:$0xff] %v8513_v23  ;;  %v996_v63 = vmul.f32 %v7723_v40, %v10067_v35  ;;  %v1026_v19 = vadd.f32 %v994_v58, %v734_v56  ;;  %v1029_v51 = vadd.f32 %v997_v34, %v737_v50  ;;  %v10073_v1 = vld [vmem:[#allocation18_spill] sm:$0xff]  ;;  %v10075_v58 = vld [vmem:[#allocation44_spill] sm:$0xff] }
 0x2a9   : > { %v8508_v11 = vpop.permute.xlu0 %1217  ;;  %2768 = vperm.xlu1 %6643, %v8073_v16   ;;  %10061 = vst [vmem:[#allocation79_spill] sm:$0xff] %v8517_v36  ;;  %v10063_v16 = vld [vmem:[#allocation97_spill] sm:$0xff]  ;;  %v1512_v35 = vmul.f32 %v7735_v33, %v10072_v43  ;;  %v10078_v34 = vld [vmem:[#allocation50_spill] sm:$0xff] }
 0x2aa   : > { %10057 = vst [vmem:[#allocation27_spill] sm:$0xff] %v8508_v11  ;;  %2503 = vperm.xlu0 %6642, %v8140_v38   ;;  %v1027_v11 = vadd.f32 %v995_v6, %v735_v44  ;;  %v1252_v61 = vmul.f32 %v7725_v46, %v10063_v16  ;;  %v2953_v38 = vsel %vm2934_vm7, %v2914_v14, -inf  ;;  %v10069_v44 = vld [vmem:[#allocation92_spill] sm:$0xff]  ;;  %v10070_v6 = vld [vmem:[#allocation51_spill] sm:$0xff]  ;;  %v1001_v14 = vmul.f32 %v7723_v40, %v10073_v1 }
 0x2ab   : > { %v999_v10 = vmul.f32 %v7723_v40, %v10069_v44  ;;  %v998_v16 = vmul.f32 %v7723_v40, %v10070_v6  ;;  %v2955_v57 = vmax.f32 %v2953_v38, %v2954_v9  ;;  %v8554_v44 = vmul.f32 %v7721_v39, %v10075_v58  ;;  %v10077_v9 = vld [vmem:[#allocation45_spill] sm:$0xff] }
 0x2ac   : > { %v8536_v36 = vpop.permute.xlu1 %1212  ;;  %v8558_v38 = vmul.f32 %v7721_v39, %v10077_v9  ;;  %v1284_v50 = vadd.f32 %v1252_v61, %v1024_v31  ;;  %v1514_v6 = vmul.f32 %v7735_v33, %v10078_v34  ;;  %v1287_v43 = vadd.f32 %v1255_v21, %v1027_v11  ;;  %v10080_v11 = vld [vmem:[#allocation61_spill] sm:$0xff]  ;;  %v8599_v9 = vld [vmem:[#allocation3 + $0x10] sm:$0xff] }
 0x2ad   : > { %10068 = vst [vmem:[#allocation94_spill] sm:$0xff] %v8536_v36  ;;  %v8542_v23 = vpop.permute.xlu0 %1702  ;;  %2012 = vperm.xlu1 %6643, %v8523_v18   ;;  %v10074_v36 = vld [vmem:[#allocation47_spill] sm:$0xff]  ;;  %10076 = vst [vmem:[#allocation103_spill] sm:$0xff] %v8554_v44  ;;  %v1289_v1 = vadd.f32 %v1257_v54, %v1029_v51  ;;  %v1028_v53 = vadd.f32 %v996_v63, %v736_v20  ;;  %v1517_v58 = vmul.f32 %v7735_v33, %v10079_v27  ;;  %v3801_v27 = vld [vmem:[%s9794_s3 + $0x88] sm:$0xff] }
 0x2ae   : > { %10071 = vst [vmem:[#allocation96_spill] sm:$0xff] %v8542_v23  ;;  %v1515_v56 = vmul.f32 %v7735_v33, %v10074_v36  ;;  %2518 = vperm.xlu0 %6642, %v8273_v3   ;;  %v1286_v23 = vadd.f32 %v1254_v30, %v1026_v19  ;;  %v1031_v36 = vadd.f32 %v999_v10, %v739_v13  ;;  %v2374_v13 = vld [vmem:[#allocation2 + $0x199] sm:$0xff]  ;;  %v10082_v10 = vld [vmem:[#allocation72_spill] sm:$0xff] }
 0x2af   : > { %v1030_v3 = vadd.f32 %v998_v16, %v738_v45  ;;  %v8567_v44 = vrot.slane %v2955_v57, %v7866_v49  ;;  %v1544_v61 = vadd.f32 %v1512_v35, %v1284_v50  ;;  %v1033_v31 = vadd.f32 %v1001_v14, %v741_v29  ;;  %v3800_v45 = vld [vmem:[%s9794_s3 + $0x80] sm:$0xff]  ;;  %v10081_v54 = vld [vmem:[#allocation62_spill] sm:$0xff] }
 0x2b0   : > { %v8562_v28 = vpop.permute.xlu1 %1227  ;;  %v1547_v21 = vadd.f32 %v1515_v56, %v1287_v43  ;;  %v1256_v20 = vmul.f32 %v7725_v46, %v10080_v11  ;;  %v1546_v30 = vadd.f32 %v1514_v6, %v1286_v23  ;;  %v3101_v29 = vcombine.high %v2955_v57, %v2955_v57  ;;  %v3784_v19 = vld [vmem:[%s9794_s3] sm:$0xff]  ;;  %v10083_v51 = vld [vmem:[#allocation74_spill] sm:$0xff]  ;;  %v10086_v6 = vld [vmem:[#allocation85_spill] sm:$0xff] }
 0x2b1   : > { %v8569_v39 = vpop.permute.xlu0 %1717  ;;  %2513 = vperm.xlu1 %6643, %v8161_v4   ;;  %v1259_v4 = vmul.f32 %v7725_v46, %v10081_v54  ;;  %v6337_v63 = vpack.c.bf16 %v3801_v27, %v3800_v45  ;;  %v1258_v16 = vmul.f32 %v7725_v46, %v10082_v10  ;;  %v1772_v35 = vmul.f32 %v7749_v7, %v10083_v51  ;;  %v10084_v23 = vld [vmem:[#allocation71_spill] sm:$0xff]  ;;  %v8597_v57 = vld [vmem:[#allocation3 + $0x1] sm:$0xff] }
 0x2b2   : > { %2263 = vperm.xlu0 %6642, %v8345_v26   ;;  %v3785_v26 = vld [vmem:[%s9794_s3 + $0x8] sm:$0xff]  ;;  %v1261_v14 = vmul.f32 %v7725_v46, %v10084_v23  ;;  %v1549_v34 = vadd.f32 %v1517_v58, %v1289_v1  ;;  %v1775_v43 = vmul.f32 %v7749_v7, %v10086_v6  ;;  %v3116_v11 = vcombine.high %v8567_v44, %v8567_v44  ;;  %v10087_v54 = vld [vmem:[#allocation83_spill] sm:$0xff]  ;;  %v3802_v58 = vld [vmem:[%s9794_s3 + $0x90] sm:$0xff] }
 0x2b3   : > { %v6339_v50 = vpack.c.bf16 %v3785_v26, %v3784_v19  ;;  %6338 = vmatprep.subr.bf16.mxu0 %v6337_v63  ;;  %v8607_v27 = vadd.f32 %v1256_v20, %v1028_v53  ;;  %v1774_v10 = vmul.f32 %v7749_v7, %v10087_v54  ;;  %v10088_v51 = vld [vmem:[#allocation59_spill] sm:$0xff]  ;;  %v8620_v53 = vadd.f32 %v1259_v4, %v1031_v36 }
 0x2b4   : > { %v8595_v56 = vpop.permute.xlu1 %1712  ;;  %v2032_v23 = vmul.f32 %v7766_v60, %v10088_v51  ;;  %v2115_v1 = vld [vmem:[#allocation2 + $0x1a0] sm:$0xff]  ;;  %v3115_v20 = vrot.slane %v3101_v29, %v7866_v49  ;;  %v3787_v26 = vld [vmem:[%s9794_s3 + $0x18] sm:$0xff]  ;;  %v1804_v6 = vadd.f32 %v1772_v35, %v1544_v61  ;;  %v8633_v54 = vadd.f32 %v1261_v14, %v1033_v31  ;;  %v3833_v14 = vld [vmem:[%s9794_s3 + $0x188] sm:$0xff] }
 0x2b5   : > { %10085 = vst [vmem:[#allocation105_spill] sm:$0xff] %v8595_v56  ;;  %v8605_v45 = vpop.permute.xlu0 %2203  ;;  %2528 = vperm.xlu1 %6643, %v2374_v13   ;;  %6340 = vmatpush3.bf16.msra.mxu0 %v6339_v50  ;;  %v3803_v13 = vld [vmem:[%s9794_s3 + $0x98] sm:$0xff]  ;;  %v8631_v50 = vadd.f32 %v1258_v16, %v1030_v3  ;;  %v8637_v29 = vadd.f32 %v1775_v43, %v1547_v21  ;;  %v10089_v51 = vld [vmem:[#allocation76_spill] sm:$0xff]  ;;  %v3511_v63 = vsel %vm3335_vm8, %v3116_v11, -inf  ;;  %v3504_v35 = vsel %vm3335_vm8, %v8567_v44, -inf }
 0x2b6   : > { %2763 = vperm.xlu0 %6642, %v8239_v42   ;;  %v6341_v19 = vpack.c.bf16 %v3803_v13, %v3802_v58  ;;  %v3786_v42 = vld [vmem:[%s9794_s3 + $0x10] sm:$0xff]  ;;  %v1777_v58 = vmul.f32 %v7749_v7, %v10089_v51  ;;  %v2293_v13 = vmul.f32 %v7775_v2, %v8296_v0  ;;  %v1806_v3 = vadd.f32 %v1774_v10, %v1546_v30  ;;  %v3804_v21 = vld [vmem:[%s9794_s3 + $0xa0] sm:$0xff]  ;;  %v3805_v0 = vld [vmem:[%s9794_s3 + $0xa8] sm:$0xff] }
 0x2b7   : > { %v6343_v4 = vpack.c.bf16 %v3787_v26, %v3786_v42  ;;  %v2064_v61 = vadd.f32 %v2032_v23, %v1804_v6  ;;  %v2034_v31 = vmul.f32 %v7766_v60, %v8230_v8  ;;  %v3832_v16 = vld [vmem:[%s9794_s3 + $0x180] sm:$0xff]  ;;  %v3117_v30 = vcombine.high %v3115_v20, %v3115_v20  ;;  %v3789_v11 = vld [vmem:[%s9794_s3 + $0x28] sm:$0xff] }
 0x2b8   : > { %v8635_v36 = vpop.permute.xlu1 %1727  ;;  %6342 = vmatprep.subr.bf16.mxu0 %v6341_v19  ;;  %v2553_v8 = vmul.f32 %v7787_v59, %v8437_v25  ;;  %v3788_v43 = vld [vmem:[%s9794_s3 + $0x20] sm:$0xff]  ;;  %v3512_v10 = vrot.slane %v3511_v63, 4  ;;  %v3518_v23 = vsel %vm3335_vm8, %v3115_v20, -inf  ;;  %v3817_v42 = vld [vmem:[%s9794_s3 + $0x108] sm:$0xff]  ;;  %v8680_v26 = vadd.f32 %v1777_v58, %v1549_v34  ;;  %v3806_v34 = vld [vmem:[%s9794_s3 + $0xb0] sm:$0xff] }
 0x2b9   : > { %v8644_v56 = vpop.permute.xlu0 %2218  ;;  %2273 = vperm.xlu1 %6643, %v2115_v1   ;;  %6344 = vmatpush3.bf16.msra.mxu0 %v6343_v4  ;;  %v6369_v1 = vpack.c.bf16 %v3833_v14, %v3832_v16  ;;  %v6347_v25 = vpack.c.bf16 %v3789_v11, %v3788_v43  ;;  %v3816_v19 = vld [vmem:[%s9794_s3 + $0x100] sm:$0xff]  ;;  %v2325_v6 = vadd.f32 %v2293_v13, %v2064_v61  ;;  %v3505_v16 = vrot.slane %v3504_v35, 4  ;;  %v3834_v58 = vld [vmem:[%s9794_s3 + $0x190] sm:$0xff]  ;;  %v3835_v61 = vld [vmem:[%s9794_s3 + $0x198] sm:$0xff] }
 0x2ba   : > { %2778 = vperm.xlu0 %6642, %v8376_v37   ;;  %v6345_v37 = vpack.c.bf16 %v3805_v0, %v3804_v21  ;;  %v2634_v51 = vld [vmem:[#allocation2 + $0x19a] sm:$0xff]  ;;  %v6371_v20 = vpack.c.bf16 %v3817_v42, %v3816_v19  ;;  %v2066_v21 = vadd.f32 %v2034_v31, %v1806_v3  ;;  %v2295_v0 = vmul.f32 %v7775_v2, %v8322_v22  ;;  %v3790_v31 = vld [vmem:[%s9794_s3 + $0x30] sm:$0xff]  ;;  %v10090_v42 = vld [vmem:[#allocation48_spill] sm:$0xff] }
 0x2bb   : > { %6370 = vmatprep.subr.bf16.mxu1 %v6369_v1  ;;  %v3519_v13 = vrot.slane %v3518_v23, 4  ;;  %v3525_v22 = vsel %vm3335_vm8, %v3117_v30, -inf  ;;  %v2585_v3 = vadd.f32 %v2553_v8, %v2325_v6  ;;  %v8706_v43 = vmax.f32 %v3511_v63, %v3512_v10  ;;  %v3819_v19 = vld [vmem:[%s9794_s3 + $0x118] sm:$0xff] }
 0x2bc   : > { %v8672_v44 = vpop.permute.xlu1 %2213  ;;  %6346 = vmatprep.subr.bf16.mxu0 %v6345_v37  ;;  %6372 = vmatpush3.bf16.msra.mxu1 %v6371_v20  ;;  %v3791_v37 = vld [vmem:[%s9794_s3 + $0x38] sm:$0xff]  ;;  %v2555_v30 = vmul.f32 %v7787_v59, %v8454_v47  ;;  %v6373_v11 = vpack.c.bf16 %v3835_v61, %v3834_v58  ;;  %v1000_v6 = vmul.f32 %v7723_v40, %v10090_v42  ;;  %v2375_v47 = vld [vmem:[#allocation2 + $0x1a1] sm:$0xff]  ;;  %v3526_v58 = vrot.slane %v3525_v22, 4 }
 0x2bd   : > { %v2704_v4 = vpop.permute.xlu0 %2703  ;;  %2773 = vperm.xlu1 %6643, %v8257_v15   ;;  %v3807_v15 = vld [vmem:[%s9794_s3 + $0xb8] sm:$0xff]  ;;  %6348 = vmatpush3.bf16.msra.mxu0 %v6347_v25  ;;  %v6351_v1 = vpack.c.bf16 %v3791_v37, %v3790_v31  ;;  %v3818_v25 = vld [vmem:[%s9794_s3 + $0x110] sm:$0xff]  ;;  %v2035_v20 = vmul.f32 %v7766_v60, %v8218_v41  ;;  %v2037_v41 = vmul.f32 %v7766_v60, %v8241_v55  ;;  %v3820_v37 = vld [vmem:[%s9794_s3 + $0x120] sm:$0xff] }
 0x2be   : > { %v2813_v14 = vmul.f32 %v8331_v12, %v2704_v4  ;;  %2523 = vperm.xlu0 %6642, %v8416_v5   ;;  %v6349_v5 = vpack.c.bf16 %v3807_v15, %v3806_v34  ;;  %v6375_v4 = vpack.c.bf16 %v3819_v19, %v3818_v25  ;;  %v2327_v34 = vadd.f32 %v2295_v0, %v2066_v21  ;;  %v3837_v21 = vld [vmem:[%s9794_s3 + $0x1a8] sm:$0xff]  ;;  %v3792_v0 = vld [vmem:[%s9794_s3 + $0x40] sm:$0xff] }
 0x2bf   : > { %v8724_v15 = vmax.f32 %v3504_v35, %v3505_v16  ;;  %6374 = vmatprep.subr.bf16.mxu1 %v6373_v11  ;;  %v8738_v35 = vmax.f32 %v3518_v23, %v3519_v13  ;;  %v3793_v16 = vld [vmem:[%s9794_s3 + $0x48] sm:$0xff]  ;;  %v4027_v42 = vld [vmem:[#allocation3 + $0x30] sm:$0xff] }
 0x2c0   : > { %v8710_v8 = vpop.permute.xlu1 %2228  ;;  %v2845_v63 = vadd.f32 %v2813_v14, %v2585_v3  ;;  %6350 = vmatprep.subr.bf16.mxu0 %v6349_v5  ;;  %v3808_v14 = vld [vmem:[%s9794_s3 + $0xc0] sm:$0xff]  ;;  %6376 = vmatpush3.bf16.msra.mxu1 %v6375_v4  ;;  %v3514_v5 = vrot.slane %v8706_v43, 2  ;;  %v2587_v55 = vadd.f32 %v2555_v30, %v2327_v34  ;;  %v6355_v31 = vpack.c.bf16 %v3793_v16, %v3792_v0  ;;  %v3821_v11 = vld [vmem:[%s9794_s3 + $0x128] sm:$0xff]  ;;  %v8762_v30 = vld [vmem:[#allocation3 + $0x21] sm:$0xff] }
 0x2c1   : > { %v8720_v10 = vpop.permute.xlu0 %2718  ;;  %2788 = vperm.xlu1 %6643, %v2634_v51   ;;  %v3809_v51 = vld [vmem:[%s9794_s3 + $0xc8] sm:$0xff]  ;;  %v3836_v3 = vld [vmem:[%s9794_s3 + $0x1a0] sm:$0xff]  ;;  %6352 = vmatpush3.bf16.msra.mxu0 %v6351_v1  ;;  %v8764_v4 = vld [vmem:[#allocation3 + $0x20] sm:$0xff]  ;;  %v6379_v34 = vpack.c.bf16 %v3821_v11, %v3820_v37  ;;  %v6654_v16 = vpack.i.bf16 %v8762_v30, %v4027_v42  ;;  %v2069_v37 = vadd.f32 %v2037_v41, %v8680_v26 }
 0x2c2   : > { %2783 = vperm.xlu0 %6642, %v8523_v18   ;;  %v6353_v18 = vpack.c.bf16 %v3809_v51, %v3808_v14  ;;  %v2635_v13 = vld [vmem:[#allocation2 + $0x1a2] sm:$0xff]  ;;  %v6377_v61 = vpack.c.bf16 %v3837_v21, %v3836_v3  ;;  %v8757_v1 = vadd.f32 %v8350_v24, %v2845_v63  ;;  %v8767_v14 = vadd.f32 %v1000_v6, %v8482_v52  ;;  %v3811_v52 = vld [vmem:[%s9794_s3 + $0xd8] sm:$0xff] }
 0x2c3   : > { %v2067_v51 = vadd.f32 %v2035_v20, %v8637_v29  ;;  %v3507_v63 = vrot.slane %v8724_v15, 2  ;;  %v8771_v3 = vmax.f32 %v3525_v22, %v3526_v58  ;;  %v3838_v29 = vld [vmem:[%s9794_s3 + $0x1b0] sm:$0xff]  ;;  %v2296_v22 = vmul.f32 %v7775_v2, %v8312_v48  ;;  %v3839_v20 = vld [vmem:[%s9794_s3 + $0x1b8] sm:$0xff]  ;;  %v4041_v42 = vld [vmem:[#allocation3 + $0x12] sm:$0xff] }
 0x2c4   : > { %v2714_v23 = vpop.permute.xlu1 %2713  ;;  %6354 = vmatprep.subr.bf16.mxu0 %v6353_v18  ;;  %6378 = vmatprep.subr.bf16.mxu1 %v6377_v61  ;;  %v3810_v18 = vld [vmem:[%s9794_s3 + $0xd0] sm:$0xff]  ;;  %v3521_v6 = vrot.slane %v8738_v35, 2  ;;  %v3795_v21 = vld [vmem:[%s9794_s3 + $0x58] sm:$0xff]  ;;  %v8799_v48 = vmax.f32 %v8706_v43, %v3514_v5  ;;  %v2915_v11 = vmax.f32 %v8757_v1, 0.0  ;;  %v3812_v41 = vld [vmem:[%s9794_s3 + $0xe0] sm:$0xff] }
 0x2c5   : > { %v2815_v25 = vmul.f32 %v8331_v12, %v2714_v23  ;;  %v8760_v19 = vpop.permute.xlu0 %962  ;;  %2533 = vperm.xlu1 %6643, %v2375_v47   ;;  %v10091_v47 = vpack.i.bf16 %v8597_v57, %v8599_v9  ;;  %6356 = vmatpush3.bf16.msra.mxu0 %v6355_v31  ;;  %v6357_v9 = vpack.c.bf16 %v3811_v52, %v3810_v18  ;;  %v3794_v58 = vld [vmem:[%s9794_s3 + $0x50] sm:$0xff]  ;;  %v3823_v31 = vld [vmem:[%s9794_s3 + $0x138] sm:$0xff] }
 0x2c6   : > { %6380 = vmatpush3.bf16.msra.mxu1 %v6379_v34  ;;  %v6359_v23 = vpack.c.bf16 %v3795_v21, %v3794_v58  ;;  %v3822_v61 = vld [vmem:[%s9794_s3 + $0x130] sm:$0xff]  ;;  %v8818_v52 = vmax.f32 %v8724_v15, %v3507_v63  ;;  %v3840_v15 = vld [vmem:[%s9794_s3 + $0x1c0] sm:$0xff]  ;;  %v8833_v1 = vmax.f32 %v8738_v35, %v3521_v6  ;;  %v3797_v58 = vld [vmem:[%s9794_s3 + $0x68] sm:$0xff]  ;;  %v2328_v35 = vadd.f32 %v2296_v22, %v2067_v51 }
 0x2c7   : > { %6645 = vrot.lane.b32.xlu0 %v10091_v47, %s6868_s24  ;;  %v2847_v57 = vadd.f32 %v2815_v25, %v2587_v55  ;;  %v6381_v55 = vpack.c.bf16 %v3839_v20, %v3838_v29  ;;  %v4010_v25 = vld [vmem:[#allocation3 + $0x11] sm:$0xff]  ;;  %6358 = vmatprep.subr.bf16.mxu0 %v6357_v9  ;;  %v6383_v34 = vpack.c.bf16 %v3823_v31, %v3822_v61  ;;  %v10093_v47 = vld [vmem:[#allocation70_spill] sm:$0xff]  ;;  %v3528_v29 = vrot.slane %v8771_v3, 2 }
 0x2c8   : > { %v8801_v0 = vpop.permute.xlu1 %2728  ;;  %v2298_v18 = vmul.f32 %v7775_v2, %v10093_v47  ;;  %v6649_v26 = vpack.i.bf16 %v4010_v25, %v8764_v4  ;;  %v3841_v9 = vld [vmem:[%s9794_s3 + $0x1c8] sm:$0xff]  ;;  %v3796_v20 = vld [vmem:[%s9794_s3 + $0x60] sm:$0xff]  ;;  %v3516_v6 = vrot.slane %v8799_v48, 1  ;;  %v2558_v31 = vmul.f32 %v7787_v59, %v8492_v62  ;;  %v4042_v25 = vld [vmem:[#allocation3 + $0x22] sm:$0xff] }
 0x2c9   : > { %v2885_v43 = vadd.f32 %v8350_v24, %v2847_v57  ;;  %v8813_v5 = vpop.permute.xlu0 %1462  ;;  %2793 = vperm.xlu1 %6643, %v2635_v13   ;;  %6382 = vmatprep.subr.bf16.mxu1 %v6381_v55  ;;  %v3813_v13 = vld [vmem:[%s9794_s3 + $0xe8] sm:$0xff]  ;;  %v6664_v57 = vpack.i.bf16 %v4041_v42, %v8762_v30  ;;  %v6363_v55 = vpack.c.bf16 %v3797_v58, %v3796_v20  ;;  %v2956_v51 = vsel %vm2934_vm7, %v2915_v11, -inf  ;;  %v3814_v62 = vld [vmem:[%s9794_s3 + $0xf0] sm:$0xff]  ;;  %v3815_v11 = vld [vmem:[%s9794_s3 + $0xf8] sm:$0xff] }
 0x2ca   : > { %10092 = vst [vmem:[#allocation56_spill] sm:$0xff] %v8813_v5  ;;  %6360 = vmatpush3.bf16.msra.mxu0 %v6359_v23  ;;  %6384 = vmatpush3.bf16.msra.mxu1 %v6383_v34  ;;  %v6361_v4 = vpack.c.bf16 %v3813_v13, %v3812_v41  ;;  %v8848_v30 = vld [vmem:[#allocation3 + $0x31] sm:$0xff]  ;;  %v2330_v34 = vadd.f32 %v2298_v18, %v2069_v37  ;;  %v3509_v47 = vrot.slane %v8818_v52, 1  ;;  %v3842_v37 = vld [vmem:[%s9794_s3 + $0x1d0] sm:$0xff]  ;;  %v3523_v18 = vrot.slane %v8833_v1, 1 }
 0x2cb   : > { %6655 = vrot.lane.b32.xlu0 %v6654_v16, %s6868_s24  ;;  %v2917_v63 = vmax.f32 %v2885_v43, 0.0  ;;  %v6385_v16 = vpack.c.bf16 %v3841_v9, %v3840_v15  ;;  %v3824_v23 = vld [vmem:[%s9794_s3 + $0x140] sm:$0xff]  ;;  %v3825_v61 = vld [vmem:[%s9794_s3 + $0x148] sm:$0xff]  ;;  %v8865_v41 = vmax.f32 %v8771_v3, %v3528_v29  ;;  %v2556_v3 = vmul.f32 %v7787_v59, %v8446_v32  ;;  %v3843_v15 = vld [vmem:[%s9794_s3 + $0x1d8] sm:$0xff] }
 0x2cc   : > { %v8846_v21 = vpop.permute.xlu1 %972  ;;  %6362 = vmatprep.subr.bf16.mxu0 %v6361_v4  ;;  %v6387_v42 = vpack.c.bf16 %v3825_v61, %v3824_v23  ;;  %v6674_v29 = vpack.i.bf16 %v4042_v25, %v8848_v30  ;;  %v2818_v9 = vmul.f32 %v8331_v12, %v8801_v0  ;;  %v6389_v58 = vpack.c.bf16 %v3843_v15, %v3842_v37  ;;  %v4043_v5 = vld [vmem:[#allocation3 + $0x32] sm:$0xff] }
 0x2cd   : > { %v2957_v22 = vsel %vm2934_vm7, %v2917_v63, -inf  ;;  %v8860_v43 = vpop.permute.xlu0 %1477  ;;  %6650 = vrot.lane.b32.xlu1 %v6649_v26, %s6868_s24  ;;  %6386 = vmatprep.subr.bf16.mxu1 %v6385_v16  ;;  %v6365_v26 = vpack.c.bf16 %v3815_v11, %v3814_v62  ;;  %v3798_v63 = vld [vmem:[%s9794_s3 + $0x70] sm:$0xff]  ;;  %v3517_v23 = vmax.f32 %v8799_v48, %v3516_v6  ;;  %v2590_v61 = vadd.f32 %v2558_v31, %v2330_v34  ;;  %v10096_v11 = vld [vmem:[#allocation20_spill] sm:$0xff] }
 0x2ce   : > { %v2958_v13 = vmax.f32 %v2956_v51, %v2957_v22  ;;  %6364 = vmatpush3.bf16.msra.mxu0 %v6363_v55  ;;  %6388 = vmatpush3.bf16.msra.mxu1 %v6387_v42  ;;  %v3826_v16 = vld [vmem:[%s9794_s3 + $0x150] sm:$0xff]  ;;  %v3827_v55 = vld [vmem:[%s9794_s3 + $0x158] sm:$0xff]  ;;  %v2816_v0 = vmul.f32 %v8331_v12, %v8720_v10  ;;  %v1003_v48 = vmul.f32 %v7723_v40, %v10096_v11 }
 0x2cf   : > { %6665 = vrot.lane.b32.xlu0 %v6664_v57, %s6868_s24  ;;  %v3799_v57 = vld [vmem:[%s9794_s3 + $0x78] sm:$0xff]  ;;  %6366 = vmatprep.subr.bf16.mxu0 %v6365_v26  ;;  %v6391_v25 = vpack.c.bf16 %v3827_v55, %v3826_v16  ;;  %v3510_v6 = vmax.f32 %v8818_v52, %v3509_v47  ;;  %v2588_v31 = vadd.f32 %v2556_v3, %v2328_v35  ;;  %v3530_v52 = vrot.slane %v8865_v41, 1 }
 0x2d0   : > { %v3118_v4 = vcombine.high %v2958_v13, %v2958_v13  ;;  %v3125_v32 = vrot.slane %v2958_v13, %v7866_v49  ;;  %v8893_v20 = vpop.permute.xlu1 %1472  ;;  %v6367_v22 = vpack.c.bf16 %v3799_v57, %v3798_v63  ;;  %6390 = vmatprep.subr.bf16.mxu1 %v6389_v58  ;;  %v2850_v26 = vadd.f32 %v2818_v9, %v2590_v61  ;;  %v10098_v61 = vld [vmem:[#allocation57_spill] sm:$0xff] }
 0x2d1   : > { %10094 = vst [vmem:[#allocation66_spill] sm:$0xff] %v8893_v20  ;;  %v8902_v51 = vpop.permute.xlu0 %1962  ;;  %v3949_v35 = vsel %vm3921_vm9, %v3517_v23, %v3510_v6  ;;  %v2848_v47 = vadd.f32 %v2816_v0, %v2588_v31 }
 0x2d2   : > { %10095 = vst [vmem:[#allocation88_spill] sm:$0xff] %v8902_v51  ;;  %v3132_v42 = vrot.slane %v3118_v4, %v7866_v49  ;;  %v3133_v13 = vcombine.high %v3125_v32, %v3125_v32  ;;  %v3532_v62 = vsel %vm3335_vm8, %v3125_v32, -inf  ;;  %6368 = vmatpush3.bf16.msra.mxu0 %v6367_v22  ;;  %6392 = vmatpush3.bf16.msra.mxu1 %v6391_v25  ;;  %v10100_v25 = vld [vmem:[#allocation53_spill] sm:$0xff] }
 0x2d3   : > { %6675 = vrot.lane.b32.xlu0 %v6674_v29, %s6868_s24  ;;  %v3533_v34 = vrot.slane %v3532_v62, 4  ;;  %v3524_v29 = vmax.f32 %v8833_v1, %v3523_v18  ;;  %v1002_v22 = vmul.f32 %v7723_v40, %v10098_v61  ;;  %v10099_v1 = vld [vmem:[#allocation91_spill] sm:$0xff] }
 0x2d4   : > { %v3134_v37 = vcombine.high %v3132_v42, %v3132_v42  ;;  %v3539_v12 = vsel %vm3335_vm8, %v3133_v13, -inf  ;;  %v3546_v10 = vsel %vm3335_vm8, %v3132_v42, -inf  ;;  %v8914_v15 = vpop.permute.xlu1 %1487  ;;  %v1516_v18 = vmul.f32 %v7735_v33, %v10099_v1 }
 0x2d5   : > { %10097 = vst [vmem:[#allocation28_spill] sm:$0xff] %v8914_v15  ;;  %v3534_v63 = vmax.f32 %v3532_v62, %v3533_v34  ;;  %v3540_v57 = vrot.slane %v3539_v12, 4  ;;  %v3547_v4 = vrot.slane %v3546_v10, 4  ;;  %v8917_v32 = vpop.permute.xlu0 %1977  ;;  %v1005_v42 = vmul.f32 %v7723_v40, %v10100_v25  ;;  %v10102_v34 = vld [vmem:[#allocation78_spill] sm:$0xff] }
 0x2d6   : > { %v3553_v3 = vsel %vm3335_vm8, %v3134_v37, -inf  ;;  %v2888_v13 = vadd.f32 %v8350_v24, %v2850_v26  ;;  %v1519_v37 = vmul.f32 %v7735_v33, %v10102_v34  ;;  %v10132_v15 = vld [vmem:[#allocation26_spill] sm:$0xff] }
 0x2d7   : > { %v3535_v58 = vrot.slane %v3534_v63, 2  ;;  %v3541_v16 = vmax.f32 %v3539_v12, %v3540_v57  ;;  %v3548_v55 = vmax.f32 %v3546_v10, %v3547_v4  ;;  %v3554_v9 = vrot.slane %v3553_v3, 4 }
 0x2d8   : > { %v8929_v62 = vpop.permute.xlu1 %1972  ;;  %v3531_v12 = vmax.f32 %v8865_v41, %v3530_v52  ;;  %v3950_v10 = vsel %vm3923_vm10, %v3524_v29, %v3949_v35  ;;  %v2886_v57 = vadd.f32 %v8350_v24, %v2848_v47  ;;  %v10104_v24 = vld [vmem:[#allocation64_spill] sm:$0xff]  ;;  %v1551_v47 = vadd.f32 %v1519_v37, %v8620_v53 }
 0x2d9   : > { %10101 = vst [vmem:[#allocation29_spill] sm:$0xff] %v8929_v62  ;;  %v3536_v23 = vmax.f32 %v3534_v63, %v3535_v58  ;;  %v3542_v0 = vrot.slane %v3541_v16, 2  ;;  %v3549_v11 = vrot.slane %v3548_v55, 2  ;;  %v3555_v6 = vmax.f32 %v3553_v3, %v3554_v9  ;;  %v8931_v31 = vpop.permute.xlu0 %2463  ;;  %v10103_v58 = vld [vmem:[#allocation104_spill] sm:$0xff] }
 0x2da   : > { %v1035_v63 = vadd.f32 %v1003_v48, %v8486_v17  ;;  %v1034_v25 = vadd.f32 %v1002_v22, %v10103_v58  ;;  %v1548_v3 = vadd.f32 %v1516_v18, %v8607_v27  ;;  %v2920_v9 = vmax.f32 %v2888_v13, 0.0  ;;  %v10105_v18 = vld [vmem:[#allocation22_spill] sm:$0xff]  ;;  %v10108_v37 = vld [vmem:[#allocation52_spill] sm:$0xff]  ;;  %v10111_v58 = vld [vmem:[#allocation23_spill] sm:$0xff] }
 0x2db   : > { %v3537_v4 = vrot.slane %v3536_v23, 1  ;;  %v3543_v61 = vmax.f32 %v3541_v16, %v3542_v0  ;;  %v3550_v26 = vmax.f32 %v3548_v55, %v3549_v11  ;;  %v3556_v1 = vrot.slane %v3555_v6, 2  ;;  %v10107_v11 = vld [vmem:[#allocation81_spill] sm:$0xff] }
 0x2dc   : > { %v8941_v20 = vpop.permute.xlu1 %1987  ;;  %v1037_v35 = vadd.f32 %v1005_v42, %v10104_v24  ;;  %v2918_v16 = vmax.f32 %v2886_v57, 0.0  ;;  %v3951_v17 = vsel %vm3925_vm11, %v3531_v12, %v3950_v10  ;;  %v1518_v13 = vmul.f32 %v7735_v33, %v10105_v18  ;;  %v10109_v12 = vld [vmem:[#allocation21_spill] sm:$0xff]  ;;  %v10112_v24 = vld [vmem:[#allocation58_spill] sm:$0xff]  ;;  %v10113_v18 = vld [vmem:[#allocation60_spill] sm:$0xff] }
 0x2dd   : > { %v3538_v34 = vmax.f32 %v3536_v23, %v3537_v4  ;;  %v3544_v62 = vrot.slane %v3543_v61, 1  ;;  %v3551_v41 = vrot.slane %v3550_v26, 1  ;;  %v3557_v52 = vmax.f32 %v3555_v6, %v3556_v1  ;;  %v8943_v29 = vpop.permute.xlu0 %2478  ;;  %v10106_v23 = vld [vmem:[#allocation69_spill] sm:$0xff] }
 0x2de   : > { %v1521_v0 = vmul.f32 %v7735_v33, %v10106_v23  ;;  %v1260_v6 = vmul.f32 %v7725_v46, %v10107_v11  ;;  %v2960_v42 = vsel %vm2934_vm7, %v2920_v9, -inf  ;;  %v1262_v10 = vmul.f32 %v7725_v46, %v10109_v12  ;;  %v10114_v23 = vld [vmem:[#allocation68_spill] sm:$0xff] }
 0x2df   : > { %v3545_v48 = vmax.f32 %v3543_v61, %v3544_v62  ;;  %v3552_v55 = vmax.f32 %v3550_v26, %v3551_v41  ;;  %v3558_v22 = vrot.slane %v3557_v52, 1  ;;  %v3952_v27 = vsel %vm3927_vm12, %v3538_v34, %v3951_v17  ;;  %v10110_v26 = vld [vmem:[#allocation54_spill] sm:$0xff] }
 0x2e0   : > { %v8956_v53 = vpop.permute.xlu1 %2473  ;;  %v1263_v62 = vmul.f32 %v7725_v46, %v10108_v37  ;;  %v1776_v1 = vmul.f32 %v7749_v7, %v10110_v26  ;;  %v1265_v34 = vmul.f32 %v7725_v46, %v10111_v58  ;;  %v2959_v9 = vsel %vm2934_vm7, %v2918_v16, -inf  ;;  %v10115_v37 = vld [vmem:[#allocation82_spill] sm:$0xff]  ;;  %v10116_v16 = vld [vmem:[#allocation80_spill] sm:$0xff] }
 0x2e1   : > { %v3559_v57 = vmax.f32 %v3557_v52, %v3558_v22  ;;  %v3953_v4 = vsel %vm3929_vm13, %v3545_v48, %v3952_v27  ;;  %v8963_v61 = vpop.permute.xlu0 %1222  ;;  %v1779_v17 = vmul.f32 %v7749_v7, %v10112_v24  ;;  %v1778_v52 = vmul.f32 %v7749_v7, %v10113_v18 }
 0x2e2   : > { %v3954_v41 = vsel %vm3931_vm14, %v3552_v55, %v3953_v4  ;;  %v2961_v22 = vmax.f32 %v2959_v9, %v2960_v42  ;;  %v1550_v27 = vadd.f32 %v1518_v13, %v8631_v50  ;;  %v1781_v11 = vmul.f32 %v7749_v7, %v10114_v23  ;;  %v10117_v42 = vld [vmem:[#allocation19_spill] sm:$0xff]  ;;  %v10120_v23 = vld [vmem:[#allocation24_spill] sm:$0xff] }
 0x2e3   : > { %v3955_v48 = vsel %vm3933_vm15, %v3559_v57, %v3954_v41  ;;  %v1004_v12 = vmul.f32 %v7723_v40, %v10115_v37  ;;  %v1007_v55 = vmul.f32 %v7723_v40, %v10116_v16  ;;  %v1553_v26 = vadd.f32 %v1521_v0, %v8633_v54  ;;  %v10118_v13 = vld [vmem:[#allocation63_spill] sm:$0xff] }
 0x2e4   : > { %3996 = vst.msk [vmem:[#allocation3 + $0x41] sm:$0xff] %vm2934_vm7, %v3955_v48  ;;  %v8984_v4 = vpop.permute.xlu1 %2488  ;;  %v1292_v57 = vadd.f32 %v1260_v6, %v8767_v14  ;;  %v1006_v50 = vmul.f32 %v7723_v40, %v10117_v42  ;;  %v1520_v58 = vmul.f32 %v7735_v33, %v10118_v13  ;;  %v1295_v41 = vadd.f32 %v1263_v62, %v1035_v63  ;;  %v3844_v54 = vld [vmem:[%s9794_s3 + $0x1e0] sm:$0xff]  ;;  %v3845_v14 = vld [vmem:[%s9794_s3 + $0x1e8] sm:$0xff] }
 0x2e5   : > { %v8992_v9 = vpop.permute.xlu0 %1722  ;;  %v1294_v24 = vadd.f32 %v1262_v10, %v1034_v25  ;;  %v1808_v18 = vadd.f32 %v1776_v1, %v1548_v3  ;;  %v1009_v48 = vmul.f32 %v7723_v40, %v10120_v23  ;;  %v1297_v0 = vadd.f32 %v1265_v34, %v1037_v35  ;;  %v3828_v63 = vld [vmem:[%s9794_s3 + $0x160] sm:$0xff]  ;;  %v3829_v25 = vld [vmem:[%s9794_s3 + $0x168] sm:$0xff]  ;;  %v3846_v35 = vld [vmem:[%s9794_s3 + $0x1f0] sm:$0xff] }
 0x2e6   : > { %10119 = vst [vmem:[#allocation30_spill] sm:$0xff] %v8992_v9  ;;  %v1811_v6 = vadd.f32 %v1779_v17, %v1551_v47  ;;  %v1810_v37 = vadd.f32 %v1778_v52, %v1550_v27  ;;  %v3135_v16 = vcombine.high %v2961_v22, %v2961_v22  ;;  %v1813_v3 = vadd.f32 %v1781_v11, %v1553_v26  ;;  %v10121_v62 = vld [vmem:[#allocation67_spill] sm:$0xff]  ;;  %v10122_v1 = vld [vmem:[#allocation25_spill] sm:$0xff] }
 0x2e7   : > { %v1036_v10 = vadd.f32 %v1004_v12, %v10121_v62  ;;  %v1039_v42 = vadd.f32 %v1007_v55, %v10122_v1  ;;  %v3142_v13 = vrot.slane %v2961_v22, %v7866_v49  ;;  %v3847_v47 = vld [vmem:[%s9794_s3 + $0x1f8] sm:$0xff]  ;;  %v9022_v52 = vadd.f32 %v1520_v58, %v1292_v57  ;;  %v10126_v27 = vld [vmem:[#allocation73_spill] sm:$0xff] }
 0x2e8   : > { %v9011_v23 = vpop.permute.xlu1 %1232  ;;  %v10123_v34 = vld [vmem:[#allocation75_spill] sm:$0xff]  ;;  %v1523_v11 = vmul.f32 %v7735_v33, %v10126_v27  ;;  %v6393_v22 = vpack.c.bf16 %v3845_v14, %v3844_v54  ;;  %v3830_v55 = vld [vmem:[%s9794_s3 + $0x170] sm:$0xff]  ;;  %v6395_v27 = vpack.c.bf16 %v3829_v25, %v3828_v63  ;;  %v1783_v14 = vmul.f32 %v7749_v7, %v8569_v39 }
 0x2e9   : > { %v9020_v17 = vadd.f32 %v1006_v50, %v10123_v34  ;;  %10125 = vst [vmem:[#allocation32_spill] sm:$0xff] %v9022_v52  ;;  %v9026_v12 = vpop.permute.xlu0 %1737  ;;  %v3831_v26 = vld [vmem:[%s9794_s3 + $0x178] sm:$0xff]  ;;  %v10130_v58 = vld [vmem:[#allocation65_spill] sm:$0xff]  ;;  %v3149_v9 = vrot.slane %v3135_v16, %v7866_v49  ;;  %v3150_v52 = vcombine.high %v3142_v13, %v3142_v13  ;;  %v2039_v39 = vmul.f32 %v7766_v60, %v10132_v15 }
 0x2ea   : > { %10127 = vst [vmem:[#allocation33_spill] sm:$0xff] %v9026_v12  ;;  %v10128_v62 = vld [vmem:[#allocation79_spill] sm:$0xff]  ;;  %v10129_v50 = vld [vmem:[#allocation90_spill] sm:$0xff]  ;;  %v2036_v34 = vmul.f32 %v7766_v60, %v10130_v58  ;;  %6394 = vmatprep.subr.bf16.mxu1 %v6393_v22  ;;  %v6399_v25 = vpack.c.bf16 %v3831_v26, %v3830_v55  ;;  %v10133_v16 = vld [vmem:[#allocation77_spill] sm:$0xff]  ;;  %v3560_v26 = vsel %vm3335_vm8, %v3142_v13, -inf  ;;  %v2557_v13 = vmul.f32 %v7787_v59, %v8931_v31 }
 0x2eb   : > { %10124 = vst [vmem:[#allocation31_spill] sm:$0xff] %v9020_v17  ;;  %v9035_v1 = vadd.f32 %v1009_v48, %v10128_v62  ;;  %v1522_v57 = vmul.f32 %v7735_v33, %v10129_v50  ;;  %v10131_v17 = vld [vmem:[#allocation100_spill] sm:$0xff]  ;;  %v9046_v51 = vld [vmem:[#allocation3 + $0x41] sm:$0xff]  ;;  %v6397_v62 = vpack.c.bf16 %v3847_v47, %v3846_v35  ;;  %6396 = vmatpush3.bf16.msra.mxu1 %v6395_v27  ;;  %v10136_v55 = vld [vmem:[#allocation27_spill] sm:$0xff] }
 0x2ec   : > { %v1525_v54 = vmul.f32 %v7735_v33, %v10131_v17  ;;  %v4028_v48 = vld [vmem:[#allocation3 + $0x40] sm:$0xff]  ;;  %v9048_v50 = vpop.permute.xlu1 %1732  ;;  %v6684_v58 = vpack.i.bf16 %v4043_v5, %v9046_v51  ;;  %v1555_v17 = vadd.f32 %v1523_v11, %v1295_v41  ;;  %v2038_v49 = vmul.f32 %v7766_v60, %v10133_v16  ;;  %v10135_v41 = vld [vmem:[#allocation95_spill] sm:$0xff] }
 0x2ed   : > { %v6659_v63 = vpack.i.bf16 %v8848_v30, %v4028_v48  ;;  %v10134_v12 = vld [vmem:[#allocation49_spill] sm:$0xff]  ;;  %v9058_v35 = vpop.permute.xlu0 %2223  ;;  %6398 = vmatprep.subr.bf16.mxu1 %v6397_v62  ;;  %v9060_v47 = vadd.f32 %v1522_v57, %v1294_v24  ;;  %v2068_v5 = vadd.f32 %v2036_v34, %v1808_v18  ;;  %v2043_v30 = vmul.f32 %v7766_v60, %v8917_v32 }
 0x2ee   : > { %v2041_v22 = vmul.f32 %v7766_v60, %v10134_v12  ;;  %6685 = vrot.lane.b32.xlu0 %v6684_v58, %s6868_s24  ;;  %v1557_v15 = vadd.f32 %v1525_v54, %v1297_v0  ;;  %v1264_v11 = vmul.f32 %v7725_v46, %v10135_v41  ;;  %v1267_v12 = vmul.f32 %v7725_v46, %v10136_v55  ;;  %v9106_v41 = vld [vmem:[%s9792_s1 + $0x8] ss:$0 sm:$0xff] }
 0x2ef   : > { %6660 = vrot.lane.b32.xlu1 %v6659_v63, %s6868_s24  ;;  %v1815_v27 = vadd.f32 %v1783_v14, %v1555_v17  ;;  %v2297_v24 = vmul.f32 %v7775_v2, %v8605_v45  ;;  %v3151_v18 = vcombine.high %v3149_v9, %v3149_v9  ;;  %v3567_v32 = vsel %vm3335_vm8, %v3150_v52, -inf  ;;  %6400 = vmatpush3.bf16.msra.mxu1 %v6399_v25 }
 0x2f0   : > { %v9074_v57 = vpop.permute.xlu1 %1747  ;;  %v2071_v34 = vadd.f32 %v2039_v39, %v1811_v6  ;;  %v2070_v0 = vadd.f32 %v2038_v49, %v1810_v37  ;;  %v2073_v54 = vadd.f32 %v2041_v22, %v1813_v3  ;;  %v3574_v48 = vsel %vm3335_vm8, %v3149_v9, -inf  ;;  %v10137_v39 = vld [vmem:[#allocation96_spill] sm:$0xff] }
 0x2f1   : > { %v2239_v62 = vpop.permute.xlu0 %2238  ;;  %v3561_v58 = vrot.slane %v3560_v26, 4  ;;  %v2075_v63 = vadd.f32 %v2043_v30, %v1815_v27  ;;  %v9080_v45 = vadd.f32 %v1264_v11, %v1036_v10  ;;  %v9082_v17 = vadd.f32 %v1267_v12, %v1039_v42 }
 0x2f2   : > { %v2304_v14 = vmul.f32 %v7775_v2, %v2239_v62  ;;  %v1785_v52 = vmul.f32 %v7749_v7, %v8635_v36  ;;  %v3568_v6 = vrot.slane %v3567_v32, 4  ;;  %v2329_v49 = vadd.f32 %v2297_v24, %v2068_v5 }
 0x2f3   : > { %v3575_v37 = vrot.slane %v3574_v48, 4  ;;  %v3581_v9 = vsel %vm3335_vm8, %v3151_v18, -inf  ;;  %v9093_v31 = vmul.f32 %v7749_v7, %v10137_v39  ;;  %v1269_v10 = vmul.f32 %v7725_v46, %v8562_v28 }
 0x2f4   : > { %v9087_v3 = vadd.f32 %v2304_v14, %v2075_v63  ;;  %v9089_v25 = vpop.permute.xlu1 %2233  ;;  %v2300_v42 = vmul.f32 %v7775_v2, %v8644_v56  ;;  %v2045_v36 = vmul.f32 %v7766_v60, %v8941_v20  ;;  %v2299_v22 = vmul.f32 %v7775_v2, %v8672_v44 }
 0x2f5   : > { %v2724_v16 = vpop.permute.xlu0 %2723  ;;  %v3562_v5 = vmax.f32 %v3560_v26, %v3561_v58  ;;  %v2589_v30 = vadd.f32 %v2557_v13, %v2329_v49  ;;  %v1817_v28 = vadd.f32 %v1785_v52, %v1557_v15  ;;  %v3569_v55 = vmax.f32 %v3567_v32, %v3568_v6  ;;  %v10138_v6 = vld [vmem:[#allocation103_spill] sm:$0xff] }
 0x2f6   : > { %v2817_v11 = vmul.f32 %v9106_v41, %v2724_v16  ;;  %v3582_v12 = vrot.slane %v3581_v9, 4  ;;  %v2560_v56 = vmul.f32 %v7787_v59, %v8943_v29  ;;  %v2302_v20 = vmul.f32 %v7775_v2, %v8710_v8 }
 0x2f7   : > { %v1008_v44 = vmul.f32 %v7723_v40, %v8760_v19  ;;  %v3576_v26 = vmax.f32 %v3574_v48, %v3575_v37  ;;  %v2332_v18 = vadd.f32 %v2300_v42, %v2071_v34  ;;  %v2077_v62 = vadd.f32 %v2045_v36, %v1817_v28 }
 0x2f8   : > { %v2849_v27 = vadd.f32 %v2817_v11, %v2589_v30  ;;  %v2249_v24 = vpop.permute.xlu1 %2248  ;;  %v2559_v58 = vmul.f32 %v7787_v59, %v8956_v53  ;;  %v2331_v63 = vadd.f32 %v2299_v22, %v2070_v0  ;;  %v3563_v13 = vrot.slane %v3562_v5, 2  ;;  %v9127_v53 = vld [vmem:[%s9793_s2] ss:$0 sm:$0xff] }
 0x2f9   : > { %v2306_v15 = vmul.f32 %v7775_v2, %v2249_v24  ;;  %v2739_v32 = vpop.permute.xlu0 %2738  ;;  %v1268_v29 = vmul.f32 %v7725_v46, %v8963_v61  ;;  %v3570_v14 = vrot.slane %v3569_v55, 2  ;;  %v3583_v19 = vmax.f32 %v3581_v9, %v3582_v12 }
 0x2fa   : > { %v2820_v8 = vmul.f32 %v9106_v41, %v2739_v32  ;;  %v2592_v48 = vadd.f32 %v2560_v56, %v2332_v18  ;;  %v2334_v34 = vadd.f32 %v2302_v20, %v2073_v54  ;;  %v1040_v49 = vadd.f32 %v1008_v44, %v10138_v6 }
 0x2fb   : > { %v9121_v52 = vadd.f32 %v2306_v15, %v2077_v62  ;;  %v3577_v37 = vrot.slane %v3576_v26, 2  ;;  %v2887_v0 = vadd.f32 %v9127_v53, %v2849_v27  ;;  %v2591_v61 = vadd.f32 %v2559_v58, %v2331_v63 }
 0x2fc   : > { %v2734_v39 = vpop.permute.xlu1 %2733  ;;  %v2562_v42 = vmul.f32 %v7787_v59, %v8984_v4  ;;  %v2852_v9 = vadd.f32 %v2820_v8, %v2592_v48  ;;  %v1010_v54 = vmul.f32 %v7723_v40, %v8846_v21  ;;  %v1527_v22 = vmul.f32 %v7735_v33, %v8860_v43 }
 0x2fd   : > { %v2819_v36 = vmul.f32 %v9106_v41, %v2734_v39  ;;  %v1483_v16 = vpop.permute.xlu0 %1482  ;;  %v1300_v30 = vadd.f32 %v1268_v29, %v1040_v49  ;;  %v3564_v28 = vmax.f32 %v3562_v5, %v3563_v13  ;;  %v3571_v12 = vmax.f32 %v3569_v55, %v3570_v14 }
 0x2fe   : > { %v1528_v11 = vmul.f32 %v7735_v33, %v1483_v16  ;;  %v3584_v56 = vrot.slane %v3583_v19, 2  ;;  %v3578_v44 = vmax.f32 %v3576_v26, %v3577_v37  ;;  %v1270_v4 = vmul.f32 %v7725_v46, %v9011_v23  ;;  %v10139_v23 = vld [vmem:[#allocation33_spill] sm:$0xff]  ;;  %v10140_v37 = vld [vmem:[#allocation28_spill] sm:$0xff] }
 0x2ff   : > { %v2851_v20 = vadd.f32 %v2819_v36, %v2591_v61  ;;  %v2919_v27 = vmax.f32 %v2887_v0, 0.0  ;;  %v2594_v62 = vadd.f32 %v2562_v42, %v2334_v34  ;;  %v2890_v40 = vadd.f32 %v9127_v53, %v2852_v9 }
 0x300   : > { %v9140_v24 = vadd.f32 %v1528_v11, %v1300_v30  ;;  %v2749_v18 = vpop.permute.xlu1 %2748  ;;  %v1301_v5 = vadd.f32 %v1269_v10, %v9035_v1  ;;  %v1042_v55 = vadd.f32 %v1010_v54, %v8558_v38  ;;  %v1559_v26 = vadd.f32 %v1527_v22, %v9082_v17  ;;  %v10141_v54 = vld [vmem:[#allocation105_spill] sm:$0xff] }
 0x301   : > { %v2889_v21 = vadd.f32 %v9127_v53, %v2851_v20  ;;  %v2822_v43 = vmul.f32 %v9106_v41, %v2749_v18  ;;  %v9145_v58 = vpop.permute.xlu0 %1982  ;;  %v1787_v15 = vmul.f32 %v7749_v7, %v10139_v23  ;;  %v3572_v32 = vrot.slane %v3571_v12, 1  ;;  %v10142_v11 = vld [vmem:[#allocation101_spill] sm:$0xff] }
 0x302   : > { %v3585_v63 = vmax.f32 %v3583_v19, %v3584_v56  ;;  %v3565_v8 = vrot.slane %v3564_v28, 1  ;;  %v3579_v14 = vrot.slane %v3578_v44, 1  ;;  %v1302_v48 = vadd.f32 %v1270_v4, %v1042_v55 }
 0x303   : > { %v2921_v13 = vmax.f32 %v2889_v21, 0.0  ;;  %v2854_v29 = vadd.f32 %v2822_v43, %v2594_v62  ;;  %v2962_v34 = vsel %vm2934_vm7, %v2919_v27, -inf  ;;  %v2922_v49 = vmax.f32 %v2890_v40, 0.0 }
 0x304   : > { %v1493_v6 = vpop.permute.xlu1 %1492  ;;  %v1529_v0 = vmul.f32 %v7735_v33, %v10140_v37  ;;  %v1819_v19 = vadd.f32 %v1787_v15, %v1559_v26  ;;  %v3573_v42 = vmax.f32 %v3571_v12, %v3572_v32  ;;  %v3586_v9 = vrot.slane %v3585_v63, 1 }
 0x305   : > { %v2963_v1 = vsel %vm2934_vm7, %v2921_v13, -inf  ;;  %v2892_v38 = vadd.f32 %v9127_v53, %v2854_v29  ;;  %v1530_v17 = vmul.f32 %v7735_v33, %v1493_v6  ;;  %v1998_v10 = vpop.permute.xlu0 %1997  ;;  %v9163_v22 = vmul.f32 %v7749_v7, %v10141_v54 }
 0x306   : > { %v2964_v39 = vmax.f32 %v2962_v34, %v2963_v1  ;;  %v2047_v61 = vmul.f32 %v7766_v60, %v1998_v10  ;;  %v3566_v27 = vmax.f32 %v3564_v28, %v3565_v8  ;;  %v3580_v18 = vmax.f32 %v3578_v44, %v3579_v14 }
 0x307   : > { %v2924_v36 = vmax.f32 %v2892_v38, 0.0  ;;  %v9159_v16 = vadd.f32 %v1530_v17, %v1302_v48  ;;  %v2965_v62 = vsel %vm2934_vm7, %v2922_v49, -inf  ;;  %v3587_v23 = vmax.f32 %v3585_v63, %v3586_v9 }
 0x308   : > { %v3152_v30 = vcombine.high %v2964_v39, %v2964_v39  ;;  %v3159_v56 = vrot.slane %v2964_v39, %v10142_v11  ;;  %v9166_v20 = vadd.f32 %v2047_v61, %v1819_v19  ;;  %v9168_v4 = vpop.permute.xlu1 %1992  ;;  %v3956_v15 = vsel %vm3921_vm9, %v3573_v42, %v3566_v27 }
 0x309   : > { %v2966_v12 = vsel %vm2934_vm7, %v2924_v36, -inf  ;;  %v9172_v40 = vpop.permute.xlu0 %2483  ;;  %v1561_v32 = vadd.f32 %v1529_v0, %v1301_v5  ;;  %v3957_v63 = vsel %vm3923_vm10, %v3580_v18, %v3956_v15  ;;  %v1789_v5 = vmul.f32 %v7749_v7, %v9074_v57 }
 0x30a   : > { %v3166_v21 = vrot.slane %v3152_v30, %v10142_v11  ;;  %v3167_v43 = vcombine.high %v3159_v56, %v3159_v56  ;;  %v3588_v55 = vsel %vm3335_vm8, %v3159_v56, -inf  ;;  %v2967_v26 = vmax.f32 %v2965_v62, %v2966_v12 }
 0x30b   : > { %v3589_v13 = vrot.slane %v3588_v55, 4 }
 0x30c   : > { %v3168_v29 = vcombine.high %v3166_v21, %v3166_v21  ;;  %v3595_v28 = vsel %vm3335_vm8, %v3167_v43, -inf  ;;  %v3602_v44 = vsel %vm3335_vm8, %v3166_v21, -inf  ;;  %v3169_v8 = vcombine.high %v2967_v26, %v2967_v26  ;;  %v2008_v14 = vpop.permute.xlu1 %2007 }
 0x30d   : > { %v3590_v48 = vmax.f32 %v3588_v55, %v3589_v13  ;;  %v3596_v34 = vrot.slane %v3595_v28, 4  ;;  %v3603_v6 = vrot.slane %v3602_v44, 4  ;;  %v3176_v49 = vrot.slane %v2967_v26, %v10142_v11  ;;  %v9180_v1 = vpop.permute.xlu0 %2498 }
 0x30e   : > { %v3609_v38 = vsel %vm3335_vm8, %v3168_v29, -inf  ;;  %v3183_v17 = vrot.slane %v3169_v8, %v10142_v11  ;;  %v1821_v13 = vadd.f32 %v1789_v5, %v1561_v32  ;;  %v3958_v29 = vsel %vm3925_vm11, %v3587_v23, %v3957_v63  ;;  %v10143_v63 = vld [vmem:[#allocation94_spill] sm:$0xff]  ;;  %v10144_v5 = vld [vmem:[#allocation32_spill] sm:$0xff] }
 0x30f   : > { %v3591_v10 = vrot.slane %v3590_v48, 2  ;;  %v3597_v37 = vmax.f32 %v3595_v28, %v3596_v34  ;;  %v3604_v0 = vmax.f32 %v3602_v44, %v3603_v6  ;;  %v3610_v19 = vrot.slane %v3609_v38, 4 }
 0x310   : > { %v3184_v39 = vcombine.high %v3176_v49, %v3176_v49  ;;  %v3185_v61 = vcombine.high %v3183_v17, %v3183_v17  ;;  %v3616_v42 = vsel %vm3335_vm8, %v3176_v49, -inf  ;;  %v3630_v9 = vsel %vm3335_vm8, %v3183_v17, -inf  ;;  %v9189_v36 = vpop.permute.xlu1 %2493 }
 0x311   : > { %v3592_v54 = vmax.f32 %v3590_v48, %v3591_v10  ;;  %v3598_v30 = vrot.slane %v3597_v37, 2  ;;  %v3605_v56 = vrot.slane %v3604_v0, 2  ;;  %v3611_v57 = vmax.f32 %v3609_v38, %v3610_v19  ;;  %v9191_v27 = vpop.permute.xlu0 %1742 }
 0x312   : > { %v3617_v18 = vrot.slane %v3616_v42, 4  ;;  %v3623_v62 = vsel %vm3335_vm8, %v3184_v39, -inf  ;;  %v3631_v12 = vrot.slane %v3630_v9, 4  ;;  %v3637_v21 = vsel %vm3335_vm8, %v3185_v61, -inf }
 0x313   : > { %v3593_v43 = vrot.slane %v3592_v54, 1  ;;  %v3599_v55 = vmax.f32 %v3597_v37, %v3598_v30  ;;  %v3606_v26 = vmax.f32 %v3604_v0, %v3605_v56  ;;  %v3612_v15 = vrot.slane %v3611_v57, 2  ;;  %v10145_v30 = vld [vmem:[#allocation88_spill] sm:$0xff] }
 0x314   : > { %v3624_v28 = vrot.slane %v3623_v62, 4  ;;  %v2049_v44 = vmul.f32 %v7766_v60, %v2008_v14  ;;  %v9197_v8 = vpop.permute.xlu1 %2508  ;;  %v3618_v17 = vmax.f32 %v3616_v42, %v3617_v18  ;;  %v3632_v19 = vmax.f32 %v3630_v9, %v3631_v12 }
 0x315   : > { %v3594_v48 = vmax.f32 %v3592_v54, %v3593_v43  ;;  %v3600_v34 = vrot.slane %v3599_v55, 1  ;;  %v3607_v6 = vrot.slane %v3606_v26, 1  ;;  %v3613_v49 = vmax.f32 %v3611_v57, %v3612_v15  ;;  %v9199_v38 = vpop.permute.xlu0 %2243 }
 0x316   : > { %v3625_v10 = vmax.f32 %v3623_v62, %v3624_v28  ;;  %v3638_v37 = vrot.slane %v3637_v21, 4  ;;  %v1266_v14 = vmul.f32 %v7725_v46, %v10143_v63  ;;  %v1812_v61 = vadd.f32 %v9093_v31, %v10144_v5  ;;  %v10146_v46 = vld [vmem:[#allocation56_spill] sm:$0xff]  ;;  %v10147_v31 = vld [vmem:[#allocation29_spill] sm:$0xff] }
 0x317   : > { %v3601_v0 = vmax.f32 %v3599_v55, %v3600_v34  ;;  %v3608_v39 = vmax.f32 %v3606_v26, %v3607_v6  ;;  %v3614_v32 = vrot.slane %v3613_v49, 1  ;;  %v3959_v23 = vsel %vm3927_vm12, %v3594_v48, %v3958_v29  ;;  %v10149_v34 = vld [vmem:[#allocation30_spill] sm:$0xff] }
 0x318   : > { %v1814_v54 = vadd.f32 %v9163_v22, %v9060_v47  ;;  %v2040_v42 = vmul.f32 %v7766_v60, %v10145_v30  ;;  %v9210_v56 = vpop.permute.xlu1 %1752  ;;  %v3626_v18 = vrot.slane %v3625_v10, 2  ;;  %v9213_v62 = vadd.f32 %v2049_v44, %v1821_v13  ;;  %v10148_v13 = vld [vmem:[#allocation66_spill] sm:$0xff] }
 0x319   : > { %v3615_v9 = vmax.f32 %v3613_v49, %v3614_v32  ;;  %v3960_v57 = vsel %vm3929_vm13, %v3601_v0, %v3959_v23  ;;  %v9215_v12 = vpop.permute.xlu0 %2258  ;;  %v1524_v43 = vmul.f32 %v7735_v33, %v10146_v46  ;;  %v2042_v55 = vmul.f32 %v7766_v60, %v10147_v31 }
 0x31a   : > { %v2301_v47 = vmul.f32 %v7775_v2, %v9058_v35  ;;  %v3961_v22 = vsel %vm3931_vm14, %v3608_v39, %v3960_v57  ;;  %v3619_v15 = vrot.slane %v3618_v17, 2  ;;  %v3633_v29 = vrot.slane %v3632_v19, 2 }
 0x31b   : > { %v3962_v26 = vsel %vm3933_vm15, %v3615_v9, %v3961_v22  ;;  %v3639_v28 = vmax.f32 %v3637_v21, %v3638_v37  ;;  %v1526_v44 = vmul.f32 %v7735_v33, %v10148_v13  ;;  %v2072_v48 = vadd.f32 %v2040_v42, %v1812_v61  ;;  %v10150_v21 = vld [vmem:[#allocation31_spill] sm:$0xff]  ;;  %v9251_v22 = vld [vmem:[#allocation3 + $0x42] sm:$0xff] }
 0x31c   : > { %v1784_v6 = vmul.f32 %v7749_v7, %v10149_v34  ;;  %3997 = vst.msk [vmem:[#allocation3 + $0x51] sm:$0xff] %vm2934_vm7, %v3962_v26  ;;  %v2561_v49 = vmul.f32 %v7787_v59, %v9172_v40  ;;  %v9232_v35 = vpop.permute.xlu1 %2253  ;;  %v2303_v0 = vmul.f32 %v7775_v2, %v9089_v25  ;;  %v3627_v39 = vmax.f32 %v3625_v10, %v3626_v18 }
 0x31d   : > { %v2744_v32 = vpop.permute.xlu0 %2743  ;;  %v1298_v37 = vadd.f32 %v1266_v14, %v10150_v21  ;;  %v1556_v33 = vadd.f32 %v1524_v43, %v9080_v45  ;;  %v2074_v23 = vadd.f32 %v2042_v55, %v1814_v54  ;;  %v2333_v63 = vadd.f32 %v2301_v47, %v2072_v48 }
 0x31e   : > { %v3620_v5 = vmax.f32 %v3618_v17, %v3619_v15  ;;  %v3634_v61 = vmax.f32 %v3632_v19, %v3633_v29  ;;  %v3640_v30 = vrot.slane %v3639_v28, 2  ;;  %v2564_v42 = vmul.f32 %v7787_v59, %v9180_v1 }
 0x31f   : > { %v1558_v40 = vadd.f32 %v1526_v44, %v1298_v37  ;;  %v1816_v9 = vadd.f32 %v1784_v6, %v1556_v33  ;;  %v2593_v57 = vadd.f32 %v2561_v49, %v2333_v63  ;;  %v2821_v46 = vmul.f32 %v9106_v41, %v2744_v32 }
 0x320   : > { %v2269_v25 = vpop.permute.xlu1 %2268  ;;  %v1786_v10 = vmul.f32 %v7749_v7, %v9048_v50  ;;  %v2335_v14 = vadd.f32 %v2303_v0, %v2074_v23  ;;  %v3628_v18 = vrot.slane %v3627_v39, 1  ;;  %v2563_v45 = vmul.f32 %v7787_v59, %v9189_v36 }
 0x321   : > { %v2759_v17 = vpop.permute.xlu0 %2758  ;;  %v2044_v19 = vmul.f32 %v7766_v60, %v9145_v58  ;;  %v2046_v1 = vmul.f32 %v7766_v60, %v9168_v4  ;;  %v2853_v54 = vadd.f32 %v2821_v46, %v2593_v57  ;;  %v3621_v31 = vrot.slane %v3620_v5, 1 }
 0x322   : > { %v2824_v43 = vmul.f32 %v9106_v41, %v2759_v17  ;;  %v3635_v55 = vrot.slane %v3634_v61, 1  ;;  %v3641_v47 = vmax.f32 %v3639_v28, %v3640_v30  ;;  %v2596_v50 = vadd.f32 %v2564_v42, %v9087_v3 }
 0x323   : > { %v9253_v26 = vld [vmem:[#allocation3 + $0x51] sm:$0xff]  ;;  %v2566_v58 = vmul.f32 %v7787_v59, %v9197_v8  ;;  %v2891_v15 = vadd.f32 %v9127_v53, %v2853_v54  ;;  %v3629_v13 = vmax.f32 %v3627_v39, %v3628_v18  ;;  %v2595_v3 = vadd.f32 %v2563_v45, %v2335_v14 }
 0x324   : > { %v9255_v36 = vld [vmem:[#allocation3 + $0x50] sm:$0xff]  ;;  %v2754_v4 = vpop.permute.xlu1 %2753  ;;  %v6694_v29 = vpack.i.bf16 %v9251_v22, %v9253_v26  ;;  %v2856_v44 = vadd.f32 %v2824_v43, %v2596_v50  ;;  %v1818_v6 = vadd.f32 %v1786_v10, %v1558_v40  ;;  %v1788_v49 = vmul.f32 %v7749_v7, %v9191_v27 }
 0x325   : > { %v6669_v28 = vpack.i.bf16 %v9046_v51, %v9255_v36  ;;  %v2823_v48 = vmul.f32 %v9106_v41, %v2754_v4  ;;  %v2003_v34 = vpop.permute.xlu0 %2002  ;;  %v3622_v8 = vmax.f32 %v3620_v5, %v3621_v31  ;;  %v3642_v0 = vrot.slane %v3641_v47, 1 }
 0x326   : > { %6695 = vrot.lane.b32.xlu0 %v6694_v29, %s6868_s24  ;;  %v2076_v32 = vadd.f32 %v2044_v19, %v1816_v9  ;;  %v3636_v37 = vmax.f32 %v3634_v61, %v3635_v55  ;;  %v2078_v51 = vadd.f32 %v2046_v1, %v1818_v6  ;;  %v2598_v39 = vadd.f32 %v2566_v58, %v9121_v52 }
 0x327   : > { %6670 = vrot.lane.b32.xlu1 %v6669_v28, %s6868_s24  ;;  %v2855_v21 = vadd.f32 %v2823_v48, %v2595_v3  ;;  %v2923_v33 = vmax.f32 %v2891_v15, 0.0  ;;  %v3963_v63 = vsel %vm3921_vm9, %v3629_v13, %v3622_v8  ;;  %v2894_v30 = vadd.f32 %v9127_v53, %v2856_v44 }
 0x328   : > { %v2769_v23 = vpop.permute.xlu1 %2768  ;;  %v1820_v5 = vadd.f32 %v1788_v49, %v9140_v24  ;;  %v2305_v9 = vmul.f32 %v7775_v2, %v9199_v38  ;;  %v1790_v61 = vmul.f32 %v7749_v7, %v9210_v56  ;;  %v2308_v52 = vmul.f32 %v7775_v2, %v9215_v12 }
 0x329   : > { %v2893_v27 = vadd.f32 %v9127_v53, %v2855_v21  ;;  %v2826_v42 = vmul.f32 %v9106_v41, %v2769_v23  ;;  %v2504_v40 = vpop.permute.xlu0 %2503  ;;  %v3643_v57 = vmax.f32 %v3641_v47, %v3642_v0  ;;  %v2307_v46 = vmul.f32 %v7775_v2, %v9232_v35 }
 0x32a   : > { %v3964_v18 = vsel %vm3923_vm10, %v3636_v37, %v3963_v63  ;;  %v2968_v45 = vsel %vm2934_vm7, %v2923_v33, -inf  ;;  %v2310_v24 = vmul.f32 %v7775_v2, %v2269_v25  ;;  %v2048_v38 = vmul.f32 %v7766_v60, %v2003_v34 }
 0x32b   : > { %v2925_v10 = vmax.f32 %v2893_v27, 0.0  ;;  %v2858_v14 = vadd.f32 %v2826_v42, %v2598_v39  ;;  %v2926_v19 = vmax.f32 %v2894_v30, 0.0  ;;  %v2565_v12 = vmul.f32 %v7787_v59, %v2504_v40 }
 0x32c   : > { %v2013_v17 = vpop.permute.xlu1 %2012  ;;  %v2337_v35 = vadd.f32 %v2305_v9, %v2076_v32  ;;  %v9291_v54 = vadd.f32 %v1790_v61, %v9159_v16  ;;  %v2340_v43 = vadd.f32 %v2308_v52, %v9166_v20  ;;  %v2339_v55 = vadd.f32 %v2307_v46, %v2078_v51 }
 0x32d   : > { %v2969_v7 = vsel %vm2934_vm7, %v2925_v10, -inf  ;;  %v2896_v56 = vadd.f32 %v9127_v53, %v2858_v14  ;;  %v2519_v1 = vpop.permute.xlu0 %2518  ;;  %v9295_v25 = vsel %vm3925_vm11, %v3643_v57, %v3964_v18  ;;  %v9299_v58 = vadd.f32 %v2310_v24, %v9213_v62 }
 0x32e   : > { %v2970_v31 = vmax.f32 %v2968_v45, %v2969_v7  ;;  %v2568_v50 = vmul.f32 %v7787_v59, %v2519_v1  ;;  %v9302_v29 = vadd.f32 %v2048_v38, %v1820_v5  ;;  %v2971_v28 = vsel %vm2934_vm7, %v2926_v19, -inf }
 0x32f   : > { %v2928_v47 = vmax.f32 %v2896_v56, 0.0  ;;  %v9306_v13 = vadd.f32 %v2565_v12, %v2337_v35  ;;  %v9312_v8 = vmul.f32 %v7766_v60, %v2013_v17 }
 0x330   : > { %v3186_v15 = vcombine.high %v2970_v31, %v2970_v31  ;;  %v3193_v4 = vrot.slane %v2970_v31, %v10142_v11  ;;  %v2514_v16 = vpop.permute.xlu1 %2513  ;;  %v9314_v0 = vadd.f32 %v2568_v50, %v2340_v43 }
 0x331   : > { %v2972_v20 = vsel %vm2934_vm7, %v2928_v47, -inf  ;;  %v2567_v3 = vmul.f32 %v7787_v59, %v2514_v16  ;;  %v2264_v44 = vpop.permute.xlu0 %2263 }
 0x332   : > { %v3200_v48 = vrot.slane %v3186_v15, %v10142_v11  ;;  %v3201_v34 = vcombine.high %v3193_v4, %v3193_v4  ;;  %v3644_v62 = vsel %vm3335_vm8, %v3193_v4, -inf  ;;  %v2973_v6 = vmax.f32 %v2971_v28, %v2972_v20 }
 0x333   : > { %v3645_v49 = vrot.slane %v3644_v62, 4  ;;  %v9316_v32 = vadd.f32 %v2567_v3, %v2339_v55  ;;  %v2309_v5 = vmul.f32 %v7775_v2, %v2264_v44 }
 0x334   : > { %v3202_v21 = vcombine.high %v3200_v48, %v3200_v48  ;;  %v3651_v37 = vsel %vm3335_vm8, %v3201_v34, -inf  ;;  %v3658_v51 = vsel %vm3335_vm8, %v3200_v48, -inf  ;;  %v3203_v39 = vcombine.high %v2973_v6, %v2973_v6  ;;  %v2529_v33 = vpop.permute.xlu1 %2528 }
 0x335   : > { %v3646_v23 = vmax.f32 %v3644_v62, %v3645_v49  ;;  %v3652_v63 = vrot.slane %v3651_v37, 4  ;;  %v3659_v30 = vrot.slane %v3658_v51, 4  ;;  %v3210_v27 = vrot.slane %v2973_v6, %v10142_v11  ;;  %v2764_v42 = vpop.permute.xlu0 %2763 }
 0x336   : > { %v3665_v60 = vsel %vm3335_vm8, %v3202_v21, -inf  ;;  %v3217_v40 = vrot.slane %v3203_v39, %v10142_v11  ;;  %v2570_v9 = vmul.f32 %v7787_v59, %v2529_v33 }
 0x337   : > { %v3647_v61 = vrot.slane %v3646_v23, 2  ;;  %v3653_v52 = vmax.f32 %v3651_v37, %v3652_v63  ;;  %v3660_v57 = vmax.f32 %v3658_v51, %v3659_v30  ;;  %v3666_v46 = vrot.slane %v3665_v60, 4 }
 0x338   : > { %v3218_v10 = vcombine.high %v3210_v27, %v3210_v27  ;;  %v3219_v14 = vcombine.high %v3217_v40, %v3217_v40  ;;  %v3672_v18 = vsel %vm3335_vm8, %v3210_v27, -inf  ;;  %v3686_v45 = vsel %vm3335_vm8, %v3217_v40, -inf  ;;  %v2274_v24 = vpop.permute.xlu1 %2273 }
 0x339   : > { %v3648_v38 = vmax.f32 %v3646_v23, %v3647_v61  ;;  %v3654_v17 = vrot.slane %v3653_v52, 2  ;;  %v3661_v19 = vrot.slane %v3660_v57, 2  ;;  %v3667_v7 = vmax.f32 %v3665_v60, %v3666_v46  ;;  %v2779_v56 = vpop.permute.xlu0 %2778 }
 0x33a   : > { %v3673_v12 = vrot.slane %v3672_v18, 4  ;;  %v3679_v1 = vsel %vm3335_vm8, %v3218_v10, -inf  ;;  %v3687_v35 = vrot.slane %v3686_v45, 4  ;;  %v3693_v43 = vsel %vm3335_vm8, %v3219_v14, -inf }
 0x33b   : > { %v3649_v31 = vrot.slane %v3648_v38, 1  ;;  %v3655_v55 = vmax.f32 %v3653_v52, %v3654_v17  ;;  %v3662_v47 = vmax.f32 %v3660_v57, %v3661_v19  ;;  %v3668_v50 = vrot.slane %v3667_v7, 2 }
 0x33c   : > { %v3674_v15 = vmax.f32 %v3672_v18, %v3673_v12  ;;  %v3680_v4 = vrot.slane %v3679_v1, 4  ;;  %v3688_v16 = vmax.f32 %v3686_v45, %v3687_v35  ;;  %v3694_v28 = vrot.slane %v3693_v43, 4  ;;  %v2774_v20 = vpop.permute.xlu1 %2773 }
 0x33d   : > { %v3650_v3 = vmax.f32 %v3648_v38, %v3649_v31  ;;  %v3656_v44 = vrot.slane %v3655_v55, 1  ;;  %v3663_v48 = vrot.slane %v3662_v47, 1  ;;  %v3669_v34 = vmax.f32 %v3667_v7, %v3668_v50  ;;  %v2524_v62 = vpop.permute.xlu0 %2523 }
 0x33e   : > { %v3675_v6 = vrot.slane %v3674_v15, 2  ;;  %v3681_v49 = vmax.f32 %v3679_v1, %v3680_v4  ;;  %v3689_v21 = vrot.slane %v3688_v16, 2  ;;  %v3695_v37 = vmax.f32 %v3693_v43, %v3694_v28 }
 0x33f   : > { %v3657_v51 = vmax.f32 %v3655_v55, %v3656_v44  ;;  %v3664_v39 = vmax.f32 %v3662_v47, %v3663_v48  ;;  %v3670_v33 = vrot.slane %v3669_v34, 1  ;;  %v3966_v23 = vsel %vm3927_vm12, %v3650_v3, %v9295_v25 }
 0x340   : > { %v3676_v63 = vmax.f32 %v3674_v15, %v3675_v6  ;;  %v3682_v30 = vrot.slane %v3681_v49, 2  ;;  %v3690_v27 = vmax.f32 %v3688_v16, %v3689_v21  ;;  %v3696_v60 = vrot.slane %v3695_v37, 2  ;;  %v2789_v40 = vpop.permute.xlu1 %2788 }
 0x341   : > { %v3671_v61 = vmax.f32 %v3669_v34, %v3670_v33  ;;  %v3967_v52 = vsel %vm3929_vm13, %v3657_v51, %v3966_v23  ;;  %v2341_v57 = vadd.f32 %v2309_v5, %v9302_v29  ;;  %v2825_v46 = vmul.f32 %v9106_v41, %v2764_v42  ;;  %v2784_v10 = vpop.permute.xlu0 %2783 }
 0x342   : > { %v3968_v14 = vsel %vm3931_vm14, %v3664_v39, %v3967_v52  ;;  %v3677_v18 = vrot.slane %v3676_v63, 1  ;;  %v3683_v45 = vmax.f32 %v3681_v49, %v3682_v30  ;;  %v3691_v38 = vrot.slane %v3690_v27, 1  ;;  %v4017_v49 = vld [vmem:[#allocation3 + $0x2] sm:$0xff] }
 0x343   : > { %v3969_v25 = vsel %vm3933_vm15, %v3671_v61, %v3968_v14  ;;  %v3697_v17 = vmax.f32 %v3695_v37, %v3696_v60  ;;  %v2602_v19 = vadd.f32 %v2570_v9, %v9299_v58  ;;  %v2857_v7 = vadd.f32 %v2825_v46, %v9306_v13  ;;  %v4001_v30 = vld [vmem:[#allocation3] sm:$0xff] }
 0x344   : > { %3998 = vst.msk [vmem:[#allocation3 + $0x61] sm:$0xff] %vm2934_vm7, %v3969_v25  ;;  %v3678_v12 = vmax.f32 %v3676_v63, %v3677_v18  ;;  %v3684_v1 = vrot.slane %v3683_v45, 1  ;;  %v2311_v29 = vmul.f32 %v7775_v2, %v2274_v24  ;;  %v2828_v42 = vmul.f32 %v9106_v41, %v2779_v56  ;;  %v2534_v5 = vpop.permute.xlu1 %2533 }
 0x345   : > { %v3692_v35 = vmax.f32 %v3690_v27, %v3691_v38  ;;  %v3698_v43 = vrot.slane %v3697_v17, 1  ;;  %v2895_v31 = vadd.f32 %v9127_v53, %v2857_v7  ;;  %v2827_v55 = vmul.f32 %v9106_v41, %v2774_v20  ;;  %v6646_v47 = vpop.permute.xlu0 %6645 }
 0x346   : > { %v3685_v50 = vmax.f32 %v3683_v45, %v3684_v1  ;;  %v2860_v58 = vadd.f32 %v2828_v42, %v9314_v0  ;;  %v2569_v13 = vmul.f32 %v7787_v59, %v2524_v62  ;;  %v2830_v9 = vmul.f32 %v9106_v41, %v2789_v40 }
 0x347   : > { %v2082_v2 = vadd.f32 %v9312_v8, %v9291_v54  ;;  %v2927_v24 = vmax.f32 %v2895_v31, 0.0  ;;  %v2859_v56 = vadd.f32 %v2827_v55, %v9316_v32  ;;  %v2829_v15 = vmul.f32 %v9106_v41, %v2784_v10 }
 0x348   : > { %v3970_v4 = vsel %vm3921_vm9, %v3685_v50, %v3678_v12  ;;  %v2898_v16 = vadd.f32 %v9127_v53, %v2860_v58  ;;  %v2601_v28 = vadd.f32 %v2569_v13, %v2341_v57  ;;  %v2862_v20 = vadd.f32 %v2830_v9, %v2602_v19  ;;  %v2794_v3 = vpop.permute.xlu1 %2793 }
 0x349   : > { %v3699_v0 = vmax.f32 %v3697_v17, %v3698_v43  ;;  %v2343_v44 = vadd.f32 %v2311_v29, %v2082_v2  ;;  %v2897_v48 = vadd.f32 %v9127_v53, %v2859_v56  ;;  %v2571_v34 = vmul.f32 %v7787_v59, %v2534_v5  ;;  %v9354_v62 = vpop.permute.xlu0 %6655 }
 0x34a   : > { %v3971_v54 = vsel %vm3923_vm10, %v3692_v35, %v3970_v4  ;;  %v2930_v8 = vmax.f32 %v2898_v16, 0.0  ;;  %v2900_v32 = vadd.f32 %v9127_v53, %v2862_v20  ;;  %v2861_v6 = vadd.f32 %v2829_v15, %v2601_v28 }
 0x34b   : > { %v2974_v21 = vsel %vm2934_vm7, %v2927_v24, -inf  ;;  %v2929_v37 = vmax.f32 %v2897_v48, 0.0  ;;  %v6648_v51 = vunpack.i.h.bf16 %v6646_v47  ;;  %v6647_v39 = vunpack.i.l.bf16 %v6646_v47 }
 0x34c   : > { %v2932_v33 = vmax.f32 %v2900_v32, 0.0  ;;  %v2899_v23 = vadd.f32 %v9127_v53, %v2861_v6  ;;  %v2603_v63 = vadd.f32 %v2571_v34, %v2343_v44  ;;  %v2831_v59 = vmul.f32 %v9106_v41, %v2794_v3  ;;  %v9367_v52 = vpop.permute.xlu1 %6650 }
 0x34d   : > { %v2977_v27 = vsel %vm2934_vm7, %v2930_v8, -inf  ;;  %v9363_v60 = vsel %vm3925_vm11, %v3699_v0, %v3971_v54  ;;  %v2975_v40 = vsel %vm2934_vm7, %v2929_v37, -inf  ;;  %v4210_v61 = vsel %vm2934_vm7, %v4017_v49, %v6647_v39  ;;  %v9373_v25 = vpop.permute.xlu0 %6665 }
 0x34e   : > { %v2976_v57 = vmax.f32 %v2974_v21, %v2975_v40  ;;  %v2978_v46 = vsel %vm2934_vm7, %v2932_v33, -inf  ;;  %v2931_v10 = vmax.f32 %v2899_v23, 0.0  ;;  %v2863_v14 = vadd.f32 %v2831_v59, %v2603_v63  ;;  %4328 = vmatprep.mubr.f32.mxu0 %v4210_v61 }
 0x34f   : > { %v2979_v18 = vmax.f32 %v2977_v27, %v2978_v46  ;;  %v6658_v41 = vunpack.i.h.bf16 %v9354_v62  ;;  %v6657_v45 = vunpack.i.l.bf16 %v9354_v62  ;;  %v4202_v38 = vsel %vm2934_vm7, %v4001_v30, %v6648_v51 }
 0x350   : > { %v3220_v17 = vcombine.high %v2976_v57, %v2976_v57  ;;  %v3227_v19 = vrot.slane %v2976_v57, %v10142_v11  ;;  %4329 = vmatmul.mubr.f32.vlgmr.msra.gmra.mrb[0].mxu0 %v4202_v38  ;;  %v6653_v7 = vunpack.i.h.bf16 %v9367_v52  ;;  %v6652_v12 = vunpack.i.l.bf16 %v9367_v52 }
 0x351   : > { %v3237_v1 = vcombine.high %v2979_v18, %v2979_v18  ;;  %v3244_v29 = vrot.slane %v2979_v18, %v10142_v11  ;;  %v9380_v42 = vsel %vm2934_vm7, %v2931_v10, -inf  ;;  %v2901_v5 = vadd.f32 %v9127_v53, %v2863_v14 }
 0x352   : > { %v3234_v35 = vrot.slane %v3220_v17, %v10142_v11  ;;  %v3235_v43 = vcombine.high %v3227_v19, %v3227_v19  ;;  %v3700_v31 = vsel %vm3335_vm8, %v3227_v19, -inf  ;;  %v6667_v55 = vunpack.i.l.bf16 %v9373_v25 }
 0x353   : > { %v3701_v47 = vrot.slane %v3700_v31, 4  ;;  %v3251_v50 = vrot.slane %v3237_v1, %v10142_v11  ;;  %v3252_v58 = vcombine.high %v3244_v29, %v3244_v29  ;;  %v3728_v13 = vsel %vm3335_vm8, %v3244_v29, -inf }
 0x354   : > { %v3236_v9 = vcombine.high %v3234_v35, %v3234_v35  ;;  %v3707_v2 = vsel %vm3335_vm8, %v3235_v43, -inf  ;;  %v3714_v24 = vsel %vm3335_vm8, %v3234_v35, -inf  ;;  %v3729_v56 = vrot.slane %v3728_v13, 4 }
 0x355   : > { %v3702_v53 = vmax.f32 %v3700_v31, %v3701_v47  ;;  %v3708_v15 = vrot.slane %v3707_v2, 4  ;;  %v3715_v4 = vrot.slane %v3714_v24, 4  ;;  %v3253_v16 = vcombine.high %v3251_v50, %v3251_v50  ;;  %v9394_v31 = vld [vmem:[#allocation3 + $0x61] sm:$0xff] }
 0x356   : > { %v3721_v28 = vsel %vm3335_vm8, %v3236_v9, -inf  ;;  %v3730_v20 = vmax.f32 %v3728_v13, %v3729_v56  ;;  %v3735_v3 = vsel %vm3335_vm8, %v3252_v58, -inf  ;;  %v3742_v0 = vsel %vm3335_vm8, %v3251_v50, -inf  ;;  %v9399_v56 = vld [vmem:[#allocation3 + $0x52] sm:$0xff] }
 0x357   : > { %v3703_v44 = vrot.slane %v3702_v53, 2  ;;  %v3709_v48 = vmax.f32 %v3707_v2, %v3708_v15  ;;  %v3716_v34 = vmax.f32 %v3714_v24, %v3715_v4  ;;  %v3722_v54 = vrot.slane %v3721_v28, 4 }
 0x358   : > { %v3731_v8 = vrot.slane %v3730_v20, 2  ;;  %v3736_v32 = vrot.slane %v3735_v3, 4  ;;  %v3743_v6 = vrot.slane %v3742_v0, 4  ;;  %v3749_v49 = vsel %vm3335_vm8, %v3253_v16, -inf }
 0x359   : > { %v3704_v21 = vmax.f32 %v3702_v53, %v3703_v44  ;;  %v3710_v37 = vrot.slane %v3709_v48, 2  ;;  %v3717_v51 = vrot.slane %v3716_v34, 2  ;;  %v3723_v39 = vmax.f32 %v3721_v28, %v3722_v54  ;;  %v9401_v53 = vld [vmem:[#allocation3 + $0x60] sm:$0xff] }
 0x35a   : > { %v3732_v33 = vmax.f32 %v3730_v20, %v3731_v8  ;;  %v3737_v23 = vmax.f32 %v3735_v3, %v3736_v32  ;;  %v3744_v63 = vmax.f32 %v3742_v0, %v3743_v6  ;;  %v3750_v59 = vrot.slane %v3749_v49, 4  ;;  %v4018_v8 = vld [vmem:[#allocation3 + $0x12] sm:$0xff] }
 0x35b   : > { %v3705_v30 = vrot.slane %v3704_v21, 1  ;;  %v3711_v27 = vmax.f32 %v3709_v48, %v3710_v37  ;;  %v3718_v40 = vmax.f32 %v3716_v34, %v3717_v51  ;;  %v3724_v61 = vrot.slane %v3723_v39, 2 }
 0x35c   : > { %v3738_v57 = vrot.slane %v3737_v23, 2  ;;  %v3745_v46 = vrot.slane %v3744_v63, 2  ;;  %v3751_v10 = vmax.f32 %v3749_v49, %v3750_v59  ;;  %v2933_v14 = vmax.f32 %v2901_v5, 0.0 }
 0x35d   : > { %v3706_v18 = vmax.f32 %v3704_v21, %v3705_v30  ;;  %v3712_v38 = vrot.slane %v3711_v27, 1  ;;  %v3719_v17 = vrot.slane %v3718_v40, 1  ;;  %v3725_v19 = vmax.f32 %v3723_v39, %v3724_v61 }
 0x35e   : > { %v3733_v1 = vrot.slane %v3732_v33, 1  ;;  %v3739_v29 = vmax.f32 %v3737_v23, %v3738_v57  ;;  %v3746_v35 = vmax.f32 %v3744_v63, %v3745_v46  ;;  %v3752_v43 = vrot.slane %v3751_v10, 2  ;;  %v4002_v23 = vld [vmem:[#allocation3 + $0x10] sm:$0xff] }
 0x35f   : > { %v3713_v47 = vmax.f32 %v3711_v27, %v3712_v38  ;;  %v3720_v50 = vmax.f32 %v3718_v40, %v3719_v17  ;;  %v3726_v58 = vrot.slane %v3725_v19, 1  ;;  %v3973_v13 = vsel %vm3927_vm12, %v3706_v18, %v9363_v60  ;;  %v4050_v40 = vld [vmem:[#allocation3 + $0x20] sm:$0xff]  ;;  %v4051_v17 = vld [vmem:[#allocation3 + $0x30] sm:$0xff] }
 0x360   : > { %v3740_v9 = vrot.slane %v3739_v29, 1  ;;  %v3747_v2 = vrot.slane %v3746_v35, 1  ;;  %v3753_v24 = vmax.f32 %v3751_v10, %v3752_v43  ;;  %v2981_v5 = vsel %vm2934_vm7, %v2933_v14, -inf  ;;  %v9432_v10 = vld [vmem:[#allocation3 + $0x22] sm:$0xff] }
 0x361   : > { %v3727_v15 = vmax.f32 %v3725_v19, %v3726_v58  ;;  %v3974_v4 = vsel %vm3929_vm13, %v3713_v47, %v3973_v13  ;;  %v2982_v16 = vmax.f32 %v9380_v42, %v2981_v5  ;;  %v6704_v28 = vpack.i.bf16 %v9399_v56, %v9394_v31  ;;  %v6676_v42 = vpop.permute.xlu0 %6675  ;;  %v9445_v5 = vld [vmem:[#allocation3 + $0x40] sm:$0xff] }
 0x362   : > { %v3975_v20 = vsel %vm3931_vm14, %v3720_v50, %v3974_v4  ;;  %v3734_v60 = vmax.f32 %v3732_v33, %v3733_v1  ;;  %v3741_v3 = vmax.f32 %v3739_v29, %v3740_v9  ;;  %v3754_v0 = vrot.slane %v3753_v24, 1  ;;  %v6661_v1 = vpop.permute.xlu1 %6660 }
 0x363   : > { %v3976_v44 = vsel %vm3933_vm15, %v3727_v15, %v3975_v20  ;;  %v3254_v48 = vcombine.high %v2982_v16, %v2982_v16  ;;  %v3261_v34 = vrot.slane %v2982_v16, %v10142_v11  ;;  %6705 = vrot.lane.b32.xlu0 %v6704_v28, %s6868_s24  ;;  %v6679_v54 = vpack.i.bf16 %v9253_v26, %v9401_v53  ;;  %v3848_v28 = vld [vmem:[%s9794_s3 + $0x200] sm:$0xff]  ;;  %v3849_v20 = vld [vmem:[%s9794_s3 + $0x208] sm:$0xff] }
 0x364   : > { %3999 = vst.msk [vmem:[#allocation3 + $0x71] sm:$0xff] %vm2934_vm7, %v3976_v44  ;;  %v3748_v32 = vmax.f32 %v3746_v35, %v3747_v2  ;;  %v9414_v6 = vmax.f32 %v3753_v24, %v3754_v0  ;;  %v6668_v49 = vunpack.i.h.bf16 %v9373_v25  ;;  %v4211_v21 = vsel %vm2934_vm7, %v4018_v8, %v6652_v12  ;;  %v9456_v0 = vld [vmem:[#allocation3 + $0x32] sm:$0xff] }
 0x365   : > { %v3977_v37 = vsel %vm3921_vm9, %v3741_v3, %v3734_v60  ;;  %v3268_v51 = vrot.slane %v3254_v48, %v10142_v11  ;;  %v3269_v39 = vcombine.high %v3261_v34, %v3261_v34  ;;  %v3756_v33 = vsel %vm3335_vm8, %v3261_v34, -inf  ;;  %6680 = vrot.lane.b32.xlu1 %v6679_v54, %s6868_s24  ;;  %4333 = vmatprep.mubr.f32.mxu0 %v4211_v21  ;;  %v6686_v19 = vpop.permute.xlu0 %6685  ;;  %v3850_v21 = vld [vmem:[%s9794_s3 + $0x210] sm:$0xff] }
 0x366   : > { %v3757_v63 = vrot.slane %v3756_v33, 4  ;;  %v6678_v59 = vunpack.i.h.bf16 %v6676_v42  ;;  %v6677_v30 = vunpack.i.l.bf16 %v6676_v42  ;;  %v4203_v27 = vsel %vm2934_vm7, %v4002_v23, %v6653_v7  ;;  %v4033_v7 = vld [vmem:[#allocation3 + $0x11] sm:$0xff] }
 0x367   : > { %v3270_v12 = vcombine.high %v3268_v51, %v3268_v51  ;;  %v3763_v61 = vsel %vm3335_vm8, %v3269_v39, -inf  ;;  %v3770_v57 = vsel %vm3335_vm8, %v3268_v51, -inf  ;;  %4334 = vmatmul.mubr.f32.gmra.mrb[2].mxu0 %v4203_v27  ;;  %v4226_v46 = vsel %vm2934_vm7, %v4050_v40, %v6667_v55 }
 0x368   : > { %v3758_v14 = vmax.f32 %v3756_v33, %v3757_v63  ;;  %v3764_v18 = vrot.slane %v3763_v61, 4  ;;  %v3771_v38 = vrot.slane %v3770_v57, 4  ;;  %4433 = vmatprep.mubr.f32.mxu1 %v4226_v46  ;;  %v4212_v52 = vsel %vm2934_vm7, %v9432_v10, %v6657_v45  ;;  %v4034_v45 = vld [vmem:[#allocation3 + $0x21] sm:$0xff] }
 0x369   : > { %v3777_v29 = vsel %vm3335_vm8, %v3270_v12, -inf  ;;  %4338 = vmatprep.mubr.f32.mxu0 %v4212_v52  ;;  %v4218_v25 = vsel %vm2934_vm7, %v4033_v7, %v6668_v49  ;;  %v4204_v55 = vsel %vm2934_vm7, %v4050_v40, %v6658_v41  ;;  %v4227_v35 = vsel %vm2934_vm7, %v4051_v17, %v6677_v30  ;;  %v4035_v49 = vld [vmem:[#allocation3 + $0x31] sm:$0xff] }
 0x36a   : > { %v3759_v43 = vrot.slane %v3758_v14, 2  ;;  %v3765_v47 = vmax.f32 %v3763_v61, %v3764_v18  ;;  %v3772_v50 = vmax.f32 %v3770_v57, %v3771_v38  ;;  %v3778_v58 = vrot.slane %v3777_v29, 4  ;;  %4434 = vmatmul.mubr.f32.vlgmr.msra.gmra.mrb[0].mxu1 %v4218_v25  ;;  %v3852_v12 = vld [vmem:[%s9794_s3 + $0x220] sm:$0xff]  ;;  %v3853_v61 = vld [vmem:[%s9794_s3 + $0x228] sm:$0xff] }
 0x36b   : > { %4339 = vmatmul.mubr.f32.gmra.mrb[4].mxu0 %v4204_v55  ;;  %4438 = vmatprep.mubr.f32.mxu1 %v4227_v35  ;;  %v4219_v13 = vsel %vm2934_vm7, %v4034_v45, %v6678_v59  ;;  %v6688_v9 = vunpack.i.h.bf16 %v6686_v19  ;;  %v6687_v2 = vunpack.i.l.bf16 %v6686_v19  ;;  %v6663_v24 = vunpack.i.h.bf16 %v6661_v1  ;;  %v9447_v16 = vld [vmem:[#allocation3 + $0x70] sm:$0xff]  ;;  %v3855_v19 = vld [vmem:[%s9794_s3 + $0x238] sm:$0xff] }
 0x36c   : > { %v3760_v62 = vmax.f32 %v3758_v14, %v3759_v43  ;;  %v3766_v15 = vrot.slane %v3765_v47, 2  ;;  %v3773_v41 = vrot.slane %v3772_v50, 2  ;;  %v3779_v4 = vmax.f32 %v3777_v29, %v3778_v58  ;;  %v9492_v25 = vld [vmem:[#allocation3 + $0x72] sm:$0xff]  ;;  %v9506_v58 = vld [vmem:[#allocation3 + $0x62] sm:$0xff] }
 0x36d   : > { %v3978_v60 = vsel %vm3923_vm10, %v3748_v32, %v3977_v37  ;;  %v6662_v3 = vunpack.i.l.bf16 %v6661_v1  ;;  %v4228_v44 = vsel %vm2934_vm7, %v9445_v5, %v6687_v2  ;;  %v4205_v48 = vsel %vm2934_vm7, %v4051_v17, %v6663_v24  ;;  %v3851_v32 = vld [vmem:[%s9794_s3 + $0x218] sm:$0xff]  ;;  %v3854_v17 = vld [vmem:[%s9794_s3 + $0x230] sm:$0xff]  ;;  %v9496_v35 = vld [vmem:[#allocation3 + $0x71] sm:$0xff] }
 0x36e   : > { %v3761_v34 = vrot.slane %v3760_v62, 1  ;;  %v3767_v54 = vmax.f32 %v3765_v47, %v3766_v15  ;;  %v3774_v8 = vmax.f32 %v3772_v50, %v3773_v41  ;;  %v3780_v42 = vrot.slane %v3779_v4, 2  ;;  %4439 = vmatmul.mubr.f32.gmra.mrb[2].mxu1 %v4219_v13 }
 0x36f   : > { %v4213_v37 = vsel %vm2934_vm7, %v9456_v0, %v6662_v3  ;;  %4443 = vmatprep.mubr.f32.mxu1 %v4228_v44  ;;  %v4220_v51 = vsel %vm2934_vm7, %v4035_v49, %v6688_v9  ;;  %v6689_v39 = vpack.i.bf16 %v9394_v31, %v9447_v16  ;;  %v6401_v33 = vpack.c.bf16 %v3849_v20, %v3848_v28  ;;  %v4065_v9 = vld [vmem:[#allocation3 + $0x91] sm:$0xff]  ;;  %v4036_v20 = vld [vmem:[#allocation3 + $0x41] sm:$0xff] }
 0x370   : > { %v3762_v23 = vmax.f32 %v3760_v62, %v3761_v34  ;;  %v3768_v63 = vrot.slane %v3767_v54, 1  ;;  %v3775_v59 = vrot.slane %v3774_v8, 1  ;;  %v3781_v30 = vmax.f32 %v3779_v4, %v3780_v42  ;;  %4343 = vmatprep.mubr.f32.mxu0 %v4213_v37 }
 0x371   : > { %v3979_v27 = vsel %vm3925_vm11, %v9414_v6, %v3978_v60  ;;  %4344 = vmatmul.mubr.f32.gmra.mrb[6].mxu0 %v4205_v48  ;;  %6690 = vrot.lane.b32.xlu1 %v6689_v39, %s6868_s24  ;;  %v6405_v40 = vpack.c.bf16 %v3851_v32, %v3850_v21  ;;  %v6409_v52 = vpack.c.bf16 %v3853_v61, %v3852_v12 }
 0x372   : > { %v3769_v57 = vmax.f32 %v3767_v54, %v3768_v63  ;;  %v3776_v46 = vmax.f32 %v3774_v8, %v3775_v59  ;;  %v3782_v14 = vrot.slane %v3781_v30, 1  ;;  %v3980_v18 = vsel %vm3927_vm12, %v3762_v23, %v3979_v27  ;;  %4444 = vmatmul.mubr.f32.gmra.mrb[4].mxu1 %v4220_v51  ;;  %6402 = vmatprep.subr.bf16.mxu0 %v6401_v33 }
 0x373   : > { %6404 = vmatpush3.bf16.msra.mxu0 %v6401_v33  ;;  %v6413_v29 = vpack.c.bf16 %v3855_v19, %v3854_v17  ;;  %v6709_v45 = vpack.i.bf16 %v9506_v58, %v9496_v35  ;;  %v4073_v19 = vld [vmem:[#allocation3 + $0x92] sm:$0xff] }
 0x374   : > { %v3783_v6 = vmax.f32 %v3781_v30, %v3782_v14  ;;  %v3981_v38 = vsel %vm3929_vm13, %v3769_v57, %v3980_v18  ;;  %6406 = vmatprep.subr.bf16.mxu0 %v6405_v40 }
 0x375   : > { %v3982_v7 = vsel %vm3931_vm14, %v3776_v46, %v3981_v38 }
 0x376   : > { %v3983_v1 = vsel %vm3933_vm15, %v3783_v6, %v3982_v7  ;;  %v4068_v7 = vld [vmem:[#allocation3 + $0x42] sm:$0xff] }
 0x377   : > { %4000 = vst.msk [vmem:[#allocation3 + $0x81] sm:$0xff] %vm2934_vm7, %v3983_v1  ;;  %6408 = vmatpush3.bf16.msra.mxu0 %v6405_v40 }
 0x378   : > { %6410 = vmatprep.subr.bf16.mxu0 %v6409_v52 }
 0x37b   : > { %6412 = vmatpush3.bf16.msra.mxu0 %v6409_v52 }
 0x37c   : > { %6414 = vmatprep.subr.bf16.mxu0 %v6413_v29 }
 0x37e   : > { %v9494_v55 = vld [vmem:[#allocation3 + $0x81] sm:$0xff] }
 0x37f   : > { %v9498_v43 = vld [vmem:[#allocation3 + $0x80] sm:$0xff]  ;;  %v6714_v47 = vpack.i.bf16 %v9492_v25, %v9494_v55  ;;  %6416 = vmatpush3.bf16.msra.mxu0 %v6413_v29 }
 0x380   : > { %v6699_v50 = vpack.i.bf16 %v9496_v35, %v9498_v43  ;;  %v9510_v13 = vld [vmem:[#allocation3 + $0x82] sm:$0xff] }
 0x381   : > { %6715 = vrot.lane.b32.xlu0 %v6714_v47, %s6868_s24  ;;  %v6719_v2 = vpack.i.bf16 %v9510_v13, %v4065_v9  ;;  %v9566_v47 = vld [vmem:[%s9795_s4] ss:$0 sm:$0xff] }
 0x382   : > { %6700 = vrot.lane.b32.xlu1 %v6699_v50, %s6868_s24 }
 0x386   : > { %6710 = vrot.lane.b32.xlu1 %v6709_v45, %s6868_s24 }
 0x38a   : > { %6720 = vrot.lane.b32.xlu1 %v6719_v2, %s6868_s24 }
 0x398   : > { %v6696_v24 = vpop.permute.xlu0 %6695 }
 0x399   : > { %v6671_v62 = vpop.permute.xlu1 %6670  ;;  %v6698_v15 = vunpack.i.h.bf16 %v6696_v24  ;;  %v6697_v41 = vunpack.i.l.bf16 %v6696_v24 }
 0x39a   : > { %v6673_v4 = vunpack.i.h.bf16 %v6671_v62  ;;  %v6672_v28 = vunpack.i.l.bf16 %v6671_v62 }
 0x39b   : > { %v4229_v3 = vsel %vm2934_vm7, %v9255_v36, %v6697_v41  ;;  %v4221_v48 = vsel %vm2934_vm7, %v4036_v20, %v6698_v15 }
 0x39c   : > { %v4214_v60 = vsel %vm2934_vm7, %v9251_v22, %v6672_v28  ;;  %v4206_v44 = vsel %vm2934_vm7, %v9445_v5, %v6673_v4  ;;  %4448 = vmatprep.mubr.f32.mxu1 %v4229_v3 }
 0x39d   : > { %4348 = vmatprep.mubr.f32.mxu0 %v4214_v60  ;;  %4449 = vmatmul.mubr.f32.gmra.mrb[6].mxu1 %v4221_v48 }
 0x39e   : > { %4349 = vmatmul.mubr.f32.gmra.mrb[8].mxu0 %v4206_v44 }
 0x3d5   : > { %v6706_v34 = vpop.permute.xlu0 %6705 }
 0x3d6   : > { %v6708_v54 = vunpack.i.h.bf16 %v6706_v34  ;;  %v6707_v8 = vunpack.i.l.bf16 %v6706_v34 }
 0x3d7   : > { %v6681_v42 = vpop.permute.xlu1 %6680 }
 0x3d8   : > { %v6683_v49 = vunpack.i.h.bf16 %v6681_v42  ;;  %v6682_v21 = vunpack.i.l.bf16 %v6681_v42  ;;  %v4230_v22 = vsel %vm2934_vm7, %v9401_v53, %v6707_v8  ;;  %v4222_v32 = vsel %vm2934_vm7, %v9253_v26, %v6708_v54 }
 0x3d9   : > { %4453 = vmatprep.mubr.f32.mxu1 %v4230_v22 }
 0x3da   : > { %v4215_v5 = vsel %vm2934_vm7, %v9399_v56, %v6682_v21  ;;  %v4207_v37 = vsel %vm2934_vm7, %v9255_v36, %v6683_v49  ;;  %4454 = vmatmul.mubr.f32.gmra.mrb[8].mxu1 %v4222_v32 }
 0x3db   : > { %4353 = vmatprep.mubr.f32.mxu0 %v4215_v5 }
 0x3dc   : > { %4354 = vmatmul.mubr.f32.gmra.mrb[10].mxu0 %v4207_v37 }
 0x3e3   : > { %v6691_v51 = vpop.permute.xlu1 %6690 }
 0x3e4   : > { %v6693_v39 = vunpack.i.h.bf16 %v6691_v51  ;;  %v6692_v33 = vunpack.i.l.bf16 %v6691_v51 }
 0x3e6   : > { %v4216_v23 = vsel %vm2934_vm7, %v9506_v58, %v6692_v33  ;;  %v4208_v63 = vsel %vm2934_vm7, %v9401_v53, %v6693_v39  ;;  %v4815_v39 = vld [vmem:[#allocation6 + $0x80] sm:$0xff]  ;;  %v4816_v33 = vld [vmem:[#allocation6 + $0x88] sm:$0xff] }
 0x3e7   : > { %4358 = vmatprep.mubr.f32.mxu0 %v4216_v23  ;;  %v4799_v23 = vld [vmem:[#allocation6] sm:$0xff] }
 0x3e8   : > { %4359 = vmatmul.mubr.f32.gmra.mrb[12].mxu0 %v4208_v63  ;;  %v6417_v63 = vpack.c.bf16 %v4816_v33, %v4815_v39 }
 0x3ea   : > { %6418 = vmatprep.subr.bf16.mxu1 %v6417_v63 }
 0x3f3   : > { %v6716_v27 = vpop.permute.xlu0 %6715 }
 0x3f4   : > { %v6701_v26 = vpop.permute.xlu1 %6700  ;;  %v6717_v61 = vunpack.i.l.bf16 %v6716_v27  ;;  %v6718_v18 = vunpack.i.h.bf16 %v6716_v27 }
 0x3f5   : > { %v6703_v59 = vunpack.i.h.bf16 %v6701_v26  ;;  %v6702_v30 = vunpack.i.l.bf16 %v6701_v26  ;;  %v4800_v26 = vld [vmem:[#allocation6 + $0x8] sm:$0xff] }
 0x3f6   : > { %v4232_v52 = vsel %vm2934_vm7, %v9498_v43, %v6717_v61  ;;  %v6419_v27 = vpack.c.bf16 %v4800_v26, %v4799_v23  ;;  %v4819_v61 = vld [vmem:[#allocation6 + $0xa0] sm:$0xff] }
 0x3f7   : > { %v4217_v36 = vsel %vm2934_vm7, %v9492_v25, %v6702_v30  ;;  %v4209_v40 = vsel %vm2934_vm7, %v9447_v16, %v6703_v59  ;;  %v4817_v59 = vld [vmem:[#allocation6 + $0x90] sm:$0xff]  ;;  %v4818_v30 = vld [vmem:[#allocation6 + $0x98] sm:$0xff] }
 0x3f8   : > { %v6711_v12 = vpop.permute.xlu1 %6710  ;;  %4363 = vmatprep.mubr.f32.mxu0 %v4217_v36  ;;  %v6421_v36 = vpack.c.bf16 %v4818_v30, %v4817_v59  ;;  %6420 = vmatpush3.bf16.msra.mxu1 %v6419_v27 }
 0x3f9   : > { %v6713_v57 = vunpack.i.h.bf16 %v6711_v12  ;;  %v6712_v46 = vunpack.i.l.bf16 %v6711_v12  ;;  %4364 = vmatmul.mubr.f32.gmra.mrb[14].mxu0 %v4209_v40  ;;  %v4801_v40 = vld [vmem:[#allocation6 + $0x10] sm:$0xff]  ;;  %v4802_v12 = vld [vmem:[#allocation6 + $0x18] sm:$0xff] }
 0x3fa   : > { %6287 = vmatprep.mubr.msk.f32.mxu0 %vm2934_vm7, %v9432_v10  ;;  %v4057_v10 = vld [vmem:[#allocation3 + $0x90] sm:$0xff]  ;;  %6422 = vmatprep.subr.bf16.mxu1 %v6421_v36 }
 0x3fb   : > { %v4231_v53 = vsel %vm2934_vm7, %v9447_v16, %v6712_v46  ;;  %v4223_v14 = vsel %vm2934_vm7, %v9394_v31, %v6713_v57  ;;  %v4224_v31 = vsel %vm2934_vm7, %v9496_v35, %v6718_v18  ;;  %v4820_v57 = vld [vmem:[#allocation6 + $0xa8] sm:$0xff]  ;;  %v4847_v46 = vld [vmem:[#allocation6 + $0x180] sm:$0xff] }
 0x3fc   : > { %v6721_v6 = vpop.permute.xlu1 %6720  ;;  %4458 = vmatprep.mubr.f32.mxu1 %v4231_v53  ;;  %v4848_v53 = vld [vmem:[#allocation6 + $0x188] sm:$0xff] }
 0x3fd   : > { %v6722_v38 = vunpack.i.l.bf16 %v6721_v6  ;;  %4459 = vmatmul.mubr.f32.gmra.mrb[10].mxu1 %v4223_v14  ;;  %6288 = vmatmul.mubr.msk.f32.vlgmr.msra.gmra.mrb[16].mxu0 %vm2934_vm7, %v9456_v0  ;;  %v6723_v16 = vunpack.i.h.bf16 %v6721_v6  ;;  %v6423_v14 = vpack.c.bf16 %v4802_v12, %v4801_v40  ;;  %v6449_v18 = vpack.c.bf16 %v4848_v53, %v4847_v46  ;;  %v4803_v6 = vld [vmem:[#allocation6 + $0x20] sm:$0xff] }
 0x3fe   : > { %4463 = vmatprep.mubr.f32.mxu1 %v4232_v52  ;;  %6290 = vmatprep.mubr.msk.f32.mxu0 %vm2934_vm7, %v4068_v7  ;;  %v6425_v52 = vpack.c.bf16 %v4820_v57, %v4819_v61  ;;  %v4804_v7 = vld [vmem:[#allocation6 + $0x28] sm:$0xff] }
 0x3ff   : > { %v4233_v17 = vsel %vm2934_vm7, %v4057_v10, %v6722_v38  ;;  %v4225_v0 = vsel %vm2934_vm7, %v9494_v55, %v6723_v16  ;;  %v4831_v38 = vld [vmem:[#allocation6 + $0x100] sm:$0xff]  ;;  %v4832_v10 = vld [vmem:[#allocation6 + $0x108] sm:$0xff]  ;;  %v4821_v16 = vld [vmem:[#allocation6 + $0xb0] sm:$0xff]  ;;  %6450 = vmatprep.subr.bf16.mxu0 %v6449_v18  ;;  %6424 = vmatpush3.bf16.msra.mxu1 %v6423_v14 }
 0x400   : > { %6426 = vmatprep.subr.bf16.mxu1 %v6425_v52 }
 0x401   : > { %4464 = vmatmul.mubr.f32.gmra.mrb[12].mxu1 %v4224_v31  ;;  %6291 = vmatmul.mubr.msk.f32.gmra.mrb[18].mxu0 %vm2934_vm7, %v9399_v56  ;;  %v6451_v31 = vpack.c.bf16 %v4832_v10, %v4831_v38 }
 0x402   : > { %4468 = vmatprep.mubr.f32.mxu1 %v4233_v17  ;;  %6293 = vmatprep.mubr.msk.f32.mxu0 %vm2934_vm7, %v9506_v58  ;;  %v4822_v17 = vld [vmem:[#allocation6 + $0xb8] sm:$0xff] }
 0x403   : > { %6452 = vmatpush3.bf16.msra.mxu0 %v6451_v31 }
 0x405   : > { %4469 = vmatmul.mubr.f32.gmra.mrb[14].mxu1 %v4225_v0  ;;  %6294 = vmatmul.mubr.msk.f32.gmra.mrb[20].mxu0 %vm2934_vm7, %v9492_v25  ;;  %v4849_v0 = vld [vmem:[#allocation6 + $0x190] sm:$0xff] }
 0x406   : > { %6296 = vmatprep.mubr.msk.f32.mxu0 %vm2934_vm7, %v9510_v13 }
 0x409   : > { %6297 = vmatmul.mubr.msk.f32.gmra.mrb[22].mxu0 %vm2934_vm7, %v4073_v19  ;;  %v4850_v19 = vld [vmem:[#allocation6 + $0x198] sm:$0xff] }
 0x423   : > { %v6010_v56 = vpop.f32.mrb[0].mxu0 }
 0x424   : > { %v6011_v1 = vpop.f32.mrb[1].mxu0 }
 0x425   : > { %v6012_v29 = vadd.f32 %v6011_v1, %v6010_v56  ;;  %v6453_v56 = vpack.c.bf16 %v4850_v19, %v4849_v0  ;;  %v4833_v1 = vld [vmem:[#allocation6 + $0x110] sm:$0xff] }
 0x427   : > { %v4331_v45 = vadd.f32 %v6012_v29, %v9566_v47  ;;  %v4834_v29 = vld [vmem:[#allocation6 + $0x118] sm:$0xff]  ;;  %6454 = vmatprep.subr.bf16.mxu0 %v6453_v56 }
 0x43a   : > { %v6013_v35 = vpop.f32.mrb[2].mxu0 }
 0x43b   : > { %v6014_v43 = vpop.f32.mrb[3].mxu0 }
 0x43c   : > { %v6015_v55 = vadd.f32 %v6014_v43, %v6013_v35  ;;  %v6427_v35 = vpack.c.bf16 %v4804_v7, %v4803_v6  ;;  %v4805_v43 = vld [vmem:[#allocation6 + $0x30] sm:$0xff] }
 0x43d   : > { %v6066_v50 = vpop.f32.mrb[0].mxu1 }
 0x43e   : > { %v6067_v58 = vpop.f32.mrb[1].mxu1  ;;  %v6016_v25 = vpop.f32.mrb[4].mxu0  ;;  %v4336_v41 = vadd.f32 %v6015_v55, %v9566_v47  ;;  %v6455_v55 = vpack.c.bf16 %v4834_v29, %v4833_v1  ;;  %6428 = vmatpush3.bf16.msra.mxu1 %v6427_v35 }
 0x43f   : > { %v6068_v13 = vadd.f32 %v6067_v58, %v6066_v50  ;;  %v6017_v9 = vpop.f32.mrb[5].mxu0  ;;  %v4851_v50 = vld [vmem:[#allocation6 + $0x1a0] sm:$0xff]  ;;  %v6429_v58 = vpack.c.bf16 %v4822_v17, %v4821_v16 }
 0x440   : > { %v6018_v2 = vadd.f32 %v6017_v9, %v6016_v25  ;;  %v4806_v25 = vld [vmem:[#allocation6 + $0x38] sm:$0xff]  ;;  %v4824_v9 = vld [vmem:[#allocation6 + $0xc8] sm:$0xff]  ;;  %6456 = vmatpush3.bf16.msra.mxu0 %v6455_v55 }
 0x441   : > { %v6069_v24 = vpop.f32.mrb[2].mxu1  ;;  %v9569_v62 = vadd.f32 %v6068_v13, %v4331_v45  ;;  %v4823_v45 = vld [vmem:[#allocation6 + $0xc0] sm:$0xff]  ;;  %v4852_v13 = vld [vmem:[#allocation6 + $0x1a8] sm:$0xff]  ;;  %6430 = vmatprep.subr.bf16.mxu1 %v6429_v58 }
 0x442   : > { %v6070_v15 = vpop.f32.mrb[3].mxu1  ;;  %v4341_v34 = vadd.f32 %v6018_v2, %v9566_v47  ;;  %v6457_v2 = vpack.c.bf16 %v4852_v13, %v4851_v50 }
 0x443   : > { %v6071_v4 = vadd.f32 %v6070_v15, %v6069_v24  ;;  %v4835_v24 = vld [vmem:[#allocation6 + $0x120] sm:$0xff]  ;;  %v4836_v15 = vld [vmem:[#allocation6 + $0x128] sm:$0xff] }
 0x444   : > { %v6019_v28 = vpop.f32.mrb[6].mxu0  ;;  %6458 = vmatprep.subr.bf16.mxu0 %v6457_v2 }
 0x445   : > { %v6072_v20 = vpop.f32.mrb[4].mxu1  ;;  %v6020_v60 = vpop.f32.mrb[7].mxu0  ;;  %v9572_v3 = vadd.f32 %v6071_v4, %v4336_v41  ;;  %v4853_v41 = vld [vmem:[#allocation6 + $0x1b0] sm:$0xff]  ;;  %v4854_v4 = vld [vmem:[#allocation6 + $0x1b8] sm:$0xff] }
 0x446   : > { %v6021_v44 = vadd.f32 %v6020_v60, %v6019_v28  ;;  %v6073_v48 = vpop.f32.mrb[5].mxu1  ;;  %v6431_v28 = vpack.c.bf16 %v4806_v25, %v4805_v43 }
 0x447   : > { %v6074_v54 = vadd.f32 %v6073_v48, %v6072_v20  ;;  %v6459_v20 = vpack.c.bf16 %v4836_v15, %v4835_v24  ;;  %v4807_v48 = vld [vmem:[#allocation6 + $0x40] sm:$0xff] }
 0x448   : > { %v4346_v32 = vadd.f32 %v6021_v44, %v9566_v47  ;;  %v6433_v44 = vpack.c.bf16 %v4824_v9, %v4823_v45  ;;  %6432 = vmatpush3.bf16.msra.mxu1 %v6431_v28 }
 0x449   : > { %v9575_v8 = vadd.f32 %v6074_v54, %v4341_v34  ;;  %v4808_v34 = vld [vmem:[#allocation6 + $0x48] sm:$0xff]  ;;  %v6461_v54 = vpack.c.bf16 %v4854_v4, %v4853_v41  ;;  %6460 = vmatpush3.bf16.msra.mxu0 %v6459_v20 }
 0x44a   : > { %v6435_v33 = vpack.c.bf16 %v4808_v34, %v4807_v48  ;;  %6434 = vmatprep.subr.bf16.mxu1 %v6433_v44 }
 0x44b   : > { %6462 = vmatprep.subr.bf16.mxu0 %v6461_v54 }
 0x44c   : > { %6436 = vmatpush3.bf16.msra.mxu1 %v6435_v33 }
 0x470   : > { %v6075_v49 = vpop.f32.mrb[6].mxu1 }
 0x471   : > { %v6022_v42 = vpop.f32.mrb[8].mxu0  ;;  %v6076_v22 = vpop.f32.mrb[7].mxu1 }
 0x472   : > { %v6023_v21 = vpop.f32.mrb[9].mxu0  ;;  %v6077_v37 = vadd.f32 %v6076_v22, %v6075_v49  ;;  %v4825_v49 = vld [vmem:[#allocation6 + $0xd0] sm:$0xff] }
 0x473   : > { %v9578_v5 = vadd.f32 %v6023_v21, %v6022_v42  ;;  %v4826_v21 = vld [vmem:[#allocation6 + $0xd8] sm:$0xff] }
 0x474   : > { %v9580_v51 = vadd.f32 %v6077_v37, %v4346_v32  ;;  %v6437_v26 = vpack.c.bf16 %v4826_v21, %v4825_v49 }
 0x475   : > { %v4351_v22 = vadd.f32 %v9578_v5, %v9566_v47 }
 0x476   : > { %6438 = vmatprep.subr.bf16.mxu1 %v6437_v26 }
 0x4ad   : > { %v6078_v60 = vpop.f32.mrb[8].mxu1 }
 0x4ae   : > { %v6079_v42 = vpop.f32.mrb[9].mxu1 }
 0x4af   : > { %v6025_v32 = vpop.f32.mrb[10].mxu0  ;;  %v6080_v37 = vadd.f32 %v6079_v42, %v6078_v60 }
 0x4b0   : > { %v6026_v39 = vpop.f32.mrb[11].mxu0 }
 0x4b1   : > { %v6027_v23 = vadd.f32 %v6026_v39, %v6025_v32  ;;  %v4456_v63 = vadd.f32 %v6080_v37, %v4351_v22 }
 0x4b3   : > { %v4356_v14 = vadd.f32 %v6027_v23, %v9566_v47 }
 0x4bb   : > { %v6028_v59 = vpop.f32.mrb[12].mxu0 }
 0x4bc   : > { %v6029_v30 = vpop.f32.mrb[13].mxu0 }
 0x4bd   : > { %v6030_v27 = vadd.f32 %v6029_v30, %v6028_v59 }
 0x4cc   : > { %v6031_v36 = vpop.f32.mrb[14].mxu0 }
 0x4cd   : > { %v6032_v40 = vpop.f32.mrb[15].mxu0 }
 0x4ce   : > { %v6033_v12 = vadd.f32 %v6032_v40, %v6031_v36 }
 0x4d0   : > { %v6081_v5 = vpop.f32.mrb[10].mxu1  ;;  %v6289_v61 = vpop.f32.mrb[16].mxu0  ;;  %v4366_v24 = vadd.f32 %v6033_v12, %v9566_v47 }
 0x4d1   : > { %v4546_v57 = vadd.f32 %v6289_v61, %v9572_v3  ;;  %v6082_v46 = vpop.f32.mrb[11].mxu1  ;;  %v4540_v53 = vpop.f32.mrb[17].mxu0  ;;  %v4361_v3 = vadd.f32 %v6030_v27, %v9566_v47 }
 0x4d2   : > { %v6083_v18 = vadd.f32 %v6082_v46, %v6081_v5  ;;  %v4541_v6 = vadd.f32 %v4540_v53, %v9569_v62 }
 0x4d3   : > { %v4580_v38 = vmax.f32 %v4546_v57, 0.0 }
 0x4d4   : > { %v4579_v52 = vmax.f32 %v4541_v6, 0.0  ;;  %v6084_v7 = vpop.f32.mrb[12].mxu1  ;;  %v6292_v10 = vpop.f32.mrb[18].mxu0  ;;  %v4461_v16 = vadd.f32 %v6083_v18, %v4356_v14 }
 0x4d5   : > { %v4588_v31 = vsel %vm2934_vm7, %v4580_v38, -inf  ;;  %v4556_v17 = vadd.f32 %v6292_v10, %v9580_v51  ;;  %v6085_v0 = vpop.f32.mrb[13].mxu1  ;;  %v4550_v19 = vpop.f32.mrb[19].mxu0 }
 0x4d6   : > { %v4587_v56 = vsel %vm2934_vm7, %v4579_v52, -inf  ;;  %v6086_v1 = vadd.f32 %v6085_v0, %v6084_v7  ;;  %v4551_v29 = vadd.f32 %v4550_v19, %v9575_v8 }
 0x4d7   : > { %v4589_v35 = vmax.f32 %v4587_v56, %v4588_v31  ;;  %v4582_v62 = vmax.f32 %v4556_v17, 0.0 }
 0x4d8   : > { %v4581_v43 = vmax.f32 %v4551_v29, 0.0  ;;  %v6087_v55 = vpop.f32.mrb[14].mxu1  ;;  %v6295_v50 = vpop.f32.mrb[20].mxu0  ;;  %v9592_v58 = vadd.f32 %v6086_v1, %v4361_v3 }
 0x4d9   : > { %v4603_v25 = vcombine.high %v4589_v35, %v4589_v35  ;;  %v4610_v45 = vrot.slane %v4589_v35, %v10142_v11  ;;  %v4591_v51 = vsel %vm2934_vm7, %v4582_v62, -inf  ;;  %v4566_v13 = vadd.f32 %v6295_v50, %v4461_v16  ;;  %v6088_v9 = vpop.f32.mrb[15].mxu1  ;;  %v4560_v2 = vpop.f32.mrb[21].mxu0 }
 0x4da   : > { %v4590_v15 = vsel %vm2934_vm7, %v4581_v43, -inf  ;;  %v6089_v8 = vadd.f32 %v6088_v9, %v6087_v55  ;;  %v4561_v41 = vadd.f32 %v4560_v2, %v4456_v63 }
 0x4db   : > { %v4617_v4 = vrot.slane %v4603_v25, %v10142_v11  ;;  %v4618_v28 = vcombine.high %v4610_v45, %v4610_v45  ;;  %v4687_v20 = vsel %vm3335_vm8, %v4610_v45, -inf  ;;  %v4592_v60 = vmax.f32 %v4590_v15, %v4591_v51 }
 0x4dc   : > { %v4688_v44 = vrot.slane %v4687_v20, 4  ;;  %v4584_v48 = vmax.f32 %v4566_v13, 0.0  ;;  %v4583_v34 = vmax.f32 %v4561_v41, 0.0  ;;  %v9600_v54 = vadd.f32 %v6089_v8, %v4366_v24  ;;  %v9602_v42 = vpop.f32.mrb[22].mxu0 }
 0x4dd   : > { %v4619_v49 = vcombine.high %v4617_v4, %v4617_v4  ;;  %v4694_v47 = vsel %vm3335_vm8, %v4618_v28, -inf  ;;  %v4701_v21 = vsel %vm3335_vm8, %v4617_v4, -inf  ;;  %v4620_v22 = vcombine.high %v4592_v60, %v4592_v60  ;;  %v9606_v32 = vpop.f32.mrb[23].mxu0 }
 0x4de   : > { %v4689_v37 = vmax.f32 %v4687_v20, %v4688_v44  ;;  %v4695_v39 = vrot.slane %v4694_v47, 4  ;;  %v4702_v33 = vrot.slane %v4701_v21, 4  ;;  %v4627_v23 = vrot.slane %v4592_v60, %v10142_v11 }
 0x4df   : > { %v4708_v63 = vsel %vm3335_vm8, %v4619_v49, -inf  ;;  %v4634_v26 = vrot.slane %v4620_v22, %v10142_v11  ;;  %v4594_v59 = vsel %vm2934_vm7, %v4584_v48, -inf  ;;  %v4593_v30 = vsel %vm2934_vm7, %v4583_v34, -inf }
 0x4e0   : > { %v4690_v27 = vrot.slane %v4689_v37, 2  ;;  %v4696_v36 = vmax.f32 %v4694_v47, %v4695_v39  ;;  %v4703_v40 = vmax.f32 %v4701_v21, %v4702_v33  ;;  %v4709_v12 = vrot.slane %v4708_v63, 4 }
 0x4e1   : > { %v4635_v5 = vcombine.high %v4627_v23, %v4627_v23  ;;  %v4636_v61 = vcombine.high %v4634_v26, %v4634_v26  ;;  %v4715_v57 = vsel %vm3335_vm8, %v4627_v23, -inf  ;;  %v4729_v46 = vsel %vm3335_vm8, %v4634_v26, -inf }
 0x4e2   : > { %v4691_v53 = vmax.f32 %v4689_v37, %v4690_v27  ;;  %v4697_v14 = vrot.slane %v4696_v36, 2  ;;  %v4704_v18 = vrot.slane %v4703_v40, 2  ;;  %v4710_v6 = vmax.f32 %v4708_v63, %v4709_v12 }
 0x4e3   : > { %v4716_v38 = vrot.slane %v4715_v57, 4  ;;  %v4722_v52 = vsel %vm3335_vm8, %v4635_v5, -inf  ;;  %v4730_v7 = vrot.slane %v4729_v46, 4  ;;  %v4736_v10 = vsel %vm3335_vm8, %v4636_v61, -inf }
 0x4e4   : > { %v4692_v16 = vrot.slane %v4691_v53, 1  ;;  %v4698_v31 = vmax.f32 %v4696_v36, %v4697_v14  ;;  %v4705_v17 = vmax.f32 %v4703_v40, %v4704_v18  ;;  %v4711_v0 = vrot.slane %v4710_v6, 2 }
 0x4e5   : > { %v4717_v19 = vmax.f32 %v4715_v57, %v4716_v38  ;;  %v4723_v3 = vrot.slane %v4722_v52, 4  ;;  %v4731_v56 = vmax.f32 %v4729_v46, %v4730_v7  ;;  %v4737_v1 = vrot.slane %v4736_v10, 4  ;;  %v4810_v7 = vld [vmem:[#allocation6 + $0x58] sm:$0xff] }
 0x4e6   : > { %v4693_v29 = vmax.f32 %v4691_v53, %v4692_v16  ;;  %v4699_v35 = vrot.slane %v4698_v31, 1  ;;  %v4706_v62 = vrot.slane %v4705_v17, 1  ;;  %v4712_v43 = vmax.f32 %v4710_v6, %v4711_v0  ;;  %v4827_v0 = vld [vmem:[#allocation6 + $0xe0] sm:$0xff] }
 0x4e7   : > { %v4718_v55 = vrot.slane %v4717_v19, 2  ;;  %v4724_v50 = vmax.f32 %v4722_v52, %v4723_v3  ;;  %v4732_v25 = vrot.slane %v4731_v56, 2  ;;  %v4738_v45 = vmax.f32 %v4736_v10, %v4737_v1  ;;  %v4809_v52 = vld [vmem:[#allocation6 + $0x50] sm:$0xff] }
 0x4e8   : > { %v4700_v51 = vmax.f32 %v4698_v31, %v4699_v35  ;;  %v4707_v13 = vmax.f32 %v4705_v17, %v4706_v62  ;;  %v4713_v9 = vrot.slane %v4712_v43, 1  ;;  %v4595_v2 = vmax.f32 %v4593_v30, %v4594_v59  ;;  %v4837_v10 = vld [vmem:[#allocation6 + $0x130] sm:$0xff]  ;;  %v4855_v35 = vld [vmem:[#allocation6 + $0x1c0] sm:$0xff]  ;;  %v4856_v62 = vld [vmem:[#allocation6 + $0x1c8] sm:$0xff] }
 0x4e9   : > { %v4719_v24 = vmax.f32 %v4717_v19, %v4718_v55  ;;  %v4725_v15 = vrot.slane %v4724_v50, 2  ;;  %v4733_v8 = vmax.f32 %v4731_v56, %v4732_v25  ;;  %v4739_v41 = vrot.slane %v4738_v45, 2  ;;  %v4828_v19 = vld [vmem:[#allocation6 + $0xe8] sm:$0xff] }
 0x4ea   : > { %v4714_v4 = vmax.f32 %v4712_v43, %v4713_v9  ;;  %v4888_v28 = vsel %vm3921_vm9, %v4700_v51, %v4693_v29  ;;  %v4637_v20 = vcombine.high %v4595_v2, %v4595_v2  ;;  %v4644_v60 = vrot.slane %v4595_v2, %v10142_v11  ;;  %v4811_v43 = vld [vmem:[#allocation6 + $0x60] sm:$0xff] }
 0x4eb   : > { %v4889_v44 = vsel %vm3923_vm10, %v4707_v13, %v4888_v28  ;;  %v4720_v48 = vrot.slane %v4719_v24, 1  ;;  %v4726_v34 = vmax.f32 %v4724_v50, %v4725_v15  ;;  %v4734_v49 = vrot.slane %v4733_v8, 1  ;;  %v4914_v51 = vld [vmem:[#allocation4 + $0x1] sm:$0xf] }
 0x4ec   : > { %v4890_v47 = vsel %vm3925_vm11, %v4714_v4, %v4889_v44  ;;  %v4740_v21 = vmax.f32 %v4738_v45, %v4739_v41  ;;  %v4651_v22 = vrot.slane %v4637_v20, %v10142_v11  ;;  %v4652_v37 = vcombine.high %v4644_v60, %v4644_v60  ;;  %v4839_v13 = vld [vmem:[#allocation6 + $0x140] sm:$0xff]  ;;  %v4829_v41 = vld [vmem:[#allocation6 + $0xf0] sm:$0xff]  ;;  %v4830_v4 = vld [vmem:[#allocation6 + $0xf8] sm:$0xff] }
 0x4ed   : > { %4906 = vst.msk [vmem:[#allocation4 + $0x9] sm:$0xf] %vm4905_vm0, %v4890_v47  ;;  %v4721_v39 = vmax.f32 %v4719_v24, %v4720_v48  ;;  %v4727_v33 = vrot.slane %v4726_v34, 1  ;;  %v4735_v23 = vmax.f32 %v4733_v8, %v4734_v49  ;;  %v4743_v63 = vsel %vm3335_vm8, %v4644_v60, -inf  ;;  %v4840_v8 = vld [vmem:[#allocation6 + $0x148] sm:$0xff]  ;;  %v4857_v48 = vld [vmem:[#allocation6 + $0x1d0] sm:$0xff] }
 0x4ee   : > { %v4741_v26 = vrot.slane %v4740_v21, 1  ;;  %v4653_v59 = vcombine.high %v4651_v22, %v4651_v22  ;;  %v4744_v30 = vrot.slane %v4743_v63, 4  ;;  %v4750_v27 = vsel %vm3335_vm8, %v4652_v37, -inf  ;;  %v4813_v49 = vld [vmem:[#allocation6 + $0x70] sm:$0xff] }
 0x4ef   : > { %v4728_v36 = vmax.f32 %v4726_v34, %v4727_v33  ;;  %v4751_v40 = vrot.slane %v4750_v27, 4  ;;  %v4757_v12 = vsel %vm3335_vm8, %v4651_v22, -inf  ;;  %v4576_v5 = vadd.f32 %v9602_v42, %v9600_v54  ;;  %v4838_v42 = vld [vmem:[#allocation6 + $0x138] sm:$0xff]  ;;  %v4841_v33 = vld [vmem:[#allocation6 + $0x150] sm:$0xff] }
 0x4f0   : > { %v4742_v61 = vmax.f32 %v4740_v21, %v4741_v26  ;;  %v4745_v57 = vmax.f32 %v4743_v63, %v4744_v30  ;;  %v4758_v46 = vrot.slane %v4757_v12, 4  ;;  %v4764_v53 = vsel %vm3335_vm8, %v4653_v59, -inf  ;;  %v4858_v34 = vld [vmem:[#allocation6 + $0x1d8] sm:$0xff] }
 0x4f1   : > { %v4891_v14 = vsel %vm3921_vm9, %v4728_v36, %v4721_v39  ;;  %v4752_v18 = vmax.f32 %v4750_v27, %v4751_v40  ;;  %v4765_v6 = vrot.slane %v4764_v53, 4  ;;  %v4586_v38 = vmax.f32 %v4576_v5, 0.0  ;;  %v4814_v39 = vld [vmem:[#allocation6 + $0x78] sm:$0xff]  ;;  %v4859_v5 = vld [vmem:[#allocation6 + $0x1e0] sm:$0xff] }
 0x4f2   : > { %v4892_v16 = vsel %vm3923_vm10, %v4735_v23, %v4891_v14  ;;  %v4746_v31 = vrot.slane %v4745_v57, 2  ;;  %v4759_v17 = vmax.f32 %v4757_v12, %v4758_v46  ;;  %v4571_v54 = vadd.f32 %v9606_v32, %v9592_v58  ;;  %v4812_v32 = vld [vmem:[#allocation6 + $0x68] sm:$0xff]  ;;  %v4842_v23 = vld [vmem:[#allocation6 + $0x158] sm:$0xff] }
 0x4f3   : > { %v4893_v3 = vsel %vm3925_vm11, %v4742_v61, %v4892_v16  ;;  %v4753_v56 = vrot.slane %v4752_v18, 2  ;;  %v4766_v1 = vmax.f32 %v4764_v53, %v4765_v6  ;;  %v4597_v29 = vsel %vm2934_vm7, %v4586_v38, -inf  ;;  %v4860_v61 = vld [vmem:[#allocation6 + $0x1e8] sm:$0xff] }
 0x4f4   : > { %4907 = vst.msk [vmem:[#allocation4 + $0x11] sm:$0xf] %vm4905_vm0, %v4893_v3  ;;  %v4747_v55 = vmax.f32 %v4745_v57, %v4746_v31  ;;  %v4760_v50 = vrot.slane %v4759_v17, 2  ;;  %v4585_v25 = vmax.f32 %v4571_v54, 0.0  ;;  %v4922_v45 = vld [vmem:[#allocation4 + $0x8] sm:$0xf]  ;;  %v6439_v58 = vpack.c.bf16 %v4810_v7, %v4809_v52 }
 0x4f5   : > { %v4754_v9 = vmax.f32 %v4752_v18, %v4753_v56  ;;  %v4767_v2 = vrot.slane %v4766_v1, 2  ;;  %4967 = vrot.lane.b32.xlu0 %v4922_v45, %s6868_s24  ;;  %v6463_v24 = vpack.c.bf16 %v4838_v42, %v4837_v10  ;;  %v6441_v15 = vpack.c.bf16 %v4828_v19, %v4827_v0  ;;  %v4843_v10 = vld [vmem:[#allocation6 + $0x160] sm:$0xff]  ;;  %v4844_v42 = vld [vmem:[#allocation6 + $0x168] sm:$0xff]  ;;  %v4861_v0 = vld [vmem:[#allocation6 + $0x1f0] sm:$0xff] }
 0x4f6   : > { %v4748_v28 = vrot.slane %v4747_v55, 1  ;;  %v4761_v20 = vmax.f32 %v4759_v17, %v4760_v50  ;;  %v4596_v60 = vsel %vm2934_vm7, %v4585_v25, -inf  ;;  %6440 = vmatpush3.bf16.msra.mxu1 %v6439_v58  ;;  %v6465_v44 = vpack.c.bf16 %v4856_v62, %v4855_v35  ;;  %v4863_v35 = vld [vmem:[#allocation6 + $0x200] sm:$0xff]  ;;  %v4864_v62 = vld [vmem:[#allocation6 + $0x208] sm:$0xff] }
 0x4f7   : > { %v4755_v47 = vrot.slane %v4754_v9, 1  ;;  %v4768_v21 = vmax.f32 %v4766_v1, %v4767_v2  ;;  %v4598_v22 = vmax.f32 %v4596_v60, %v4597_v29  ;;  %6464 = vmatpush3.bf16.msra.mxu0 %v6463_v24  ;;  %6442 = vmatprep.subr.bf16.mxu1 %v6441_v15  ;;  %v6443_v37 = vpack.c.bf16 %v4812_v32, %v4811_v43  ;;  %v4862_v29 = vld [vmem:[#allocation6 + $0x1f8] sm:$0xff]  ;;  %v4915_v58 = vld [vmem:[#allocation4 + $0x9] sm:$0xf]  ;;  %v4845_v15 = vld [vmem:[#allocation6 + $0x170] sm:$0xff] }
 0x4f8   : > { %v4749_v63 = vmax.f32 %v4747_v55, %v4748_v28  ;;  %v4762_v26 = vrot.slane %v4761_v20, 1  ;;  %6466 = vmatprep.subr.bf16.mxu0 %v6465_v44  ;;  %v6467_v59 = vpack.c.bf16 %v4840_v8, %v4839_v13  ;;  %v6445_v30 = vpack.c.bf16 %v4830_v4, %v4829_v41  ;;  %v4930_v2 = vld [vmem:[#allocation4 + $0xa] sm:$0xf]  ;;  %v4846_v8 = vld [vmem:[#allocation6 + $0x178] sm:$0xff] }
 0x4f9   : > { %v4756_v27 = vmax.f32 %v4754_v9, %v4755_v47  ;;  %v4769_v36 = vrot.slane %v4768_v21, 1  ;;  %v4654_v40 = vcombine.high %v4598_v22, %v4598_v22  ;;  %v4661_v12 = vrot.slane %v4598_v22, %v10142_v11  ;;  %4951 = vrot.lane.b32.xlu0 %v4914_v51, %s6868_s24 }
 0x4fa   : > { %v4763_v57 = vmax.f32 %v4761_v20, %v4762_v26  ;;  %6444 = vmatpush3.bf16.msra.mxu1 %v6443_v37  ;;  %v6469_v46 = vpack.c.bf16 %v4858_v34, %v4857_v48  ;;  %v6447_v53 = vpack.c.bf16 %v4814_v39, %v4813_v49  ;;  %v6471_v14 = vpack.c.bf16 %v4842_v23, %v4841_v33 }
 0x4fb   : > { %v4770_v18 = vmax.f32 %v4768_v21, %v4769_v36  ;;  %v4894_v6 = vsel %vm3921_vm9, %v4756_v27, %v4749_v63  ;;  %v4668_v38 = vrot.slane %v4654_v40, %v10142_v11  ;;  %v4669_v52 = vcombine.high %v4661_v12, %v4661_v12  ;;  %v4923_v7 = vld [vmem:[#allocation4 + $0x10] sm:$0xf]  ;;  %6468 = vmatpush3.bf16.msra.mxu0 %v6467_v59 }
 0x4fc   : > { %v4895_v16 = vsel %vm3923_vm10, %v4763_v57, %v4894_v6  ;;  %v4771_v31 = vsel %vm3335_vm8, %v4661_v12, -inf  ;;  %4969 = vrot.lane.b32.xlu1 %v4923_v7, %s6868_s24  ;;  %v4939_v17 = vld [vmem:[#allocation4 + $0x11] sm:$0xf]  ;;  %6446 = vmatprep.subr.bf16.mxu1 %v6445_v30  ;;  %v6473_v54 = vpack.c.bf16 %v4860_v61, %v4859_v5  ;;  %v9650_v50 = vpack.c.bf16 %v4864_v62, %v4863_v35 }
 0x4fd   : > { %v4896_v19 = vsel %vm3925_vm11, %v4770_v18, %v4895_v16  ;;  %v4670_v3 = vcombine.high %v4668_v38, %v4668_v38  ;;  %v4772_v56 = vrot.slane %v4771_v31, 4  ;;  %v4778_v1 = vsel %vm3335_vm8, %v4669_v52, -inf  ;;  %4999 = vrot.lane.b32.xlu0 %v4939_v17, %s6868_s24  ;;  %6470 = vmatprep.subr.bf16.mxu0 %v6469_v46  ;;  %v4931_v27 = vld [vmem:[#allocation4 + $0x12] sm:$0xf]  ;;  %v4942_v18 = vld [vmem:[#allocation4 + $0x29] sm:$0xf] }
 0x4fe   : > { %4908 = vst.msk [vmem:[#allocation4 + $0x19] sm:$0xf] %vm4905_vm0, %v4896_v19  ;;  %v4779_v43 = vrot.slane %v4778_v1, 4  ;;  %v4785_v55 = vsel %vm3335_vm8, %v4668_v38, -inf  ;;  %6448 = vmatpush3.bf16.msra.mxu1 %v6447_v53  ;;  %v6475_v32 = vpack.c.bf16 %v4844_v42, %v4843_v10  ;;  %v6477_v24 = vpack.c.bf16 %v4862_v29, %v4861_v0  ;;  %v4916_v36 = vld [vmem:[#allocation4 + $0x11] sm:$0xf] }
 0x4ff   : > { %v4773_v25 = vmax.f32 %v4771_v31, %v4772_v56  ;;  %v4786_v45 = vrot.slane %v4785_v55, 4  ;;  %v4792_v51 = vsel %vm3335_vm8, %v4670_v3, -inf  ;;  %6472 = vmatpush3.bf16.msra.mxu0 %v6471_v14  ;;  %6482 = vmatprep.subr.bf16.mxu1 %v9650_v50  ;;  %v6479_v48 = vpack.c.bf16 %v4846_v8, %v4845_v15  ;;  %v4918_v52 = vld [vmem:[#allocation4 + $0x2] sm:$0xf]  ;;  %v4919_v16 = vld [vmem:[#allocation4 + $0xa] sm:$0xf] }
 0x500   : > { %v4780_v13 = vmax.f32 %v4778_v1, %v4779_v43  ;;  %v4793_v9 = vrot.slane %v4792_v51, 4  ;;  %4953 = vrot.lane.b32.xlu1 %v4915_v58, %s6868_s24  ;;  %6474 = vmatprep.subr.bf16.mxu0 %v6473_v54  ;;  %v4910_v31 = vld [vmem:[#allocation4] sm:$0xf]  ;;  %v4865_v19 = vld [vmem:[#allocation6 + $0x210] sm:$0xff]  ;;  %v4866_v3 = vld [vmem:[#allocation6 + $0x218] sm:$0xff] }
 0x501   : > { %v4774_v41 = vrot.slane %v4773_v25, 2  ;;  %v4787_v4 = vmax.f32 %v4785_v55, %v4786_v45  ;;  %4983 = vrot.lane.b32.xlu0 %v4930_v2, %s6868_s24  ;;  %v4911_v1 = vld [vmem:[#allocation4 + $0x8] sm:$0xf]  ;;  %v6485_v43 = vpack.c.bf16 %v4866_v3, %v4865_v19  ;;  %v4867_v55 = vld [vmem:[#allocation6 + $0x220] sm:$0xff]  ;;  %v4935_v45 = vld [vmem:[#allocation4 + $0x10] sm:$0xf] }
 0x502   : > { %v4781_v28 = vrot.slane %v4780_v13, 2  ;;  %v4794_v20 = vmax.f32 %v4792_v51, %v4793_v9  ;;  %v4870_v15 = vld [vmem:[#allocation6 + $0x238] sm:$0xff]  ;;  %v5390_v19 = vld [vmem:[#allocation9 + $0x90] sm:$0xff] }
 0x503   : > { %v4775_v60 = vmax.f32 %v4773_v25, %v4774_v41  ;;  %v4788_v44 = vrot.slane %v4787_v4, 2  ;;  %6476 = vmatpush3.bf16.msra.mxu0 %v6475_v32  ;;  %v4868_v25 = vld [vmem:[#allocation6 + $0x228] sm:$0xff]  ;;  %v5391_v3 = vld [vmem:[#allocation9 + $0x98] sm:$0xff] }
 0x504   : > { %v4782_v34 = vmax.f32 %v4780_v13, %v4781_v28  ;;  %v4795_v49 = vrot.slane %v4794_v20, 2  ;;  %6478 = vmatprep.subr.bf16.mxu0 %v6477_v24  ;;  %v6489_v32 = vpack.c.bf16 %v4868_v25, %v4867_v55  ;;  %v4869_v24 = vld [vmem:[#allocation6 + $0x230] sm:$0xff]  ;;  %v4926_v41 = vld [vmem:[#allocation4 + $0x9] sm:$0xf]  ;;  %v5376_v25 = vld [vmem:[#allocation9 + $0x20] sm:$0xff] }
 0x505   : > { %v4776_v47 = vrot.slane %v4775_v60, 1  ;;  %v4789_v21 = vmax.f32 %v4787_v4, %v4788_v44  ;;  %v4940_v22 = vld [vmem:[#allocation4 + $0x19] sm:$0xf]  ;;  %v4927_v4 = vld [vmem:[#allocation4 + $0x11] sm:$0xf] }
 0x506   : > { %v4924_v37 = vld [vmem:[#allocation4 + $0x18] sm:$0xf]  ;;  %v4783_v39 = vrot.slane %v4782_v34, 1  ;;  %v4796_v33 = vmax.f32 %v4794_v20, %v4795_v49  ;;  %5001 = vrot.lane.b32.xlu1 %v4940_v22, %s6868_s24  ;;  %v4920_v49 = vld [vmem:[#allocation4 + $0x12] sm:$0xf] }
 0x507   : > { %4971 = vrot.lane.b32.xlu0 %v4924_v37, %s6868_s24  ;;  %v4790_v23 = vrot.slane %v4789_v21, 1  ;;  %6480 = vmatpush3.bf16.msra.mxu0 %v6479_v48  ;;  %v4777_v63 = vmax.f32 %v4775_v60, %v4776_v47  ;;  %v4917_v53 = vld [vmem:[#allocation4 + $0x19] sm:$0xf] }
 0x508   : > { %v4784_v26 = vmax.f32 %v4782_v34, %v4783_v39  ;;  %v4797_v59 = vrot.slane %v4796_v33, 1  ;;  %v4932_v14 = vld [vmem:[#allocation4 + $0x1a] sm:$0xf] }
 0x509   : > { %v4791_v30 = vmax.f32 %v4789_v21, %v4790_v23  ;;  %v4936_v51 = vld [vmem:[#allocation4 + $0x18] sm:$0xf] }
 0x50a   : > { %v4798_v40 = vmax.f32 %v4796_v33, %v4797_v59  ;;  %v4897_v12 = vsel %vm3921_vm9, %v4784_v26, %v4777_v63  ;;  %4985 = vrot.lane.b32.xlu1 %v4931_v27, %s6868_s24  ;;  %v4921_v47 = vld [vmem:[#allocation4 + $0x1a] sm:$0xf]  ;;  %v4912_v33 = vld [vmem:[#allocation4 + $0x10] sm:$0xf] }
 0x50b   : > { %4955 = vrot.lane.b32.xlu0 %v4916_v36, %s6868_s24  ;;  %v4898_v5 = vsel %vm3923_vm10, %v4791_v30, %v4897_v12  ;;  %v4913_v63 = vld [vmem:[#allocation4 + $0x18] sm:$0xf]  ;;  %v4938_v36 = vld [vmem:[#allocation4 + $0x28] sm:$0xf] }
 0x50c   : > { %v4899_v61 = vsel %vm3925_vm11, %v4798_v40, %v4898_v5  ;;  %v6724_v40 = vld [vmem:[#allocation4 + $0x12] ss:$8 sps:$4 sm:$0xff]  }
 0x50d   : > { %4909 = vst.msk [vmem:[#allocation4 + $0x21] sm:$0xf] %vm4905_vm0, %v4899_v61 }
 0x514   : > { %v4925_v57 = vld [vmem:[#allocation4 + $0x20] sm:$0xf] }
 0x515   : > { %v4941_v46 = vld [vmem:[#allocation4 + $0x21] sm:$0xf]  ;;  %4973 = vrot.lane.b32.xlu1 %v4925_v57, %s6868_s24 }
 0x516   : > { %5003 = vrot.lane.b32.xlu0 %v4941_v46, %s6868_s24  ;;  %v4933_v6 = vld [vmem:[#allocation4 + $0x22] sm:$0xf] }
 0x517   : > { %v4937_v12 = vld [vmem:[#allocation4 + $0x20] sm:$0xf] }
 0x519   : > { %4957 = vrot.lane.b32.xlu1 %v4917_v53, %s6868_s24 }
 0x51a   : > { %4987 = vrot.lane.b32.xlu0 %v4932_v14, %s6868_s24  ;;  %v6725_v14 = vld [vmem:[#allocation4 + $0x22] ss:$8 sps:$4 sm:$0xff]  }
 0x51d   : > { %5005 = vrot.lane.b32.xlu1 %v4942_v18, %s6868_s24  ;;  %v4928_v18 = vld [vmem:[#allocation4 + $0x19] sm:$0xf] }
 0x521   : > { %4989 = vrot.lane.b32.xlu1 %v4933_v6, %s6868_s24  ;;  %v4929_v6 = vld [vmem:[#allocation4 + $0x21] sm:$0xf] }
 0x567   : > { %v4968_v38 = vpop.permute.xlu0 %4967 }
 0x568   : > { %v5015_v17 = vsel %vm2934_vm7, %v4918_v52, %v4968_v38 }
 0x56b   : > { %v4952_v7 = vpop.permute.xlu0 %4951 }
 0x56c   : > { %v5011_v0 = vsel %vm2934_vm7, %v4910_v31, %v4952_v7  ;;  %v5388_v31 = vld [vmem:[#allocation9 + $0x80] sm:$0xff] }
 0x56e   : > { %v4970_v10 = vpop.permute.xlu1 %4969 }
 0x56f   : > { %v5016_v54 = vsel %vm2934_vm7, %v4919_v16, %v4970_v10  ;;  %v5000_v29 = vpop.permute.xlu0 %4999  ;;  %v5458_v16 = vld [vmem:[#allocation5 + $0x1] sm:$0x3] }
 0x570   : > { %v5959_v42 = vcombine.low %v5015_v17, %v5016_v54  ;;  %v5023_v13 = vsel %vm2934_vm7, %v4935_v45, %v5000_v29  ;;  %5477 = vrot.lane.b32.xlu0 %v5458_v16, %s6868_s24  ;;  %v5389_v17 = vld [vmem:[#allocation9 + $0x88] sm:$0xff]  ;;  %v5372_v54 = vld [vmem:[#allocation9] sm:$0xff]  ;;  %v5374_v29 = vld [vmem:[#allocation9 + $0x10] sm:$0xff] }
 0x571   : > { %v5420_v45 = vld [vmem:[#allocation9 + $0x180] sm:$0xff] }
 0x572   : > { %5147 = vmatprep.mubr.f32.mxu1 %v5959_v42  ;;  %v4954_v56 = vpop.permute.xlu1 %4953  ;;  %v6497_v42 = vpack.c.bf16 %v5389_v17, %v5388_v31 }
 0x573   : > { %v5012_v35 = vsel %vm2934_vm7, %v4911_v1, %v4954_v56  ;;  %v4984_v9 = vpop.permute.xlu0 %4983  ;;  %v6501_v1 = vpack.c.bf16 %v5391_v3, %v5390_v19 }
 0x574   : > { %v5958_v62 = vcombine.low %v5011_v0, %v5012_v35  ;;  %v5019_v20 = vsel %vm2934_vm7, %v4926_v41, %v4984_v9  ;;  %v5373_v0 = vld [vmem:[#allocation9 + $0x8] sm:$0xff]  ;;  %v5375_v35 = vld [vmem:[#allocation9 + $0x18] sm:$0xff]  ;;  %v5404_v9 = vld [vmem:[#allocation9 + $0x100] sm:$0xff] }
 0x575   : > { %v6499_v56 = vpack.c.bf16 %v5373_v0, %v5372_v54  ;;  %v6503_v55 = vpack.c.bf16 %v5375_v35, %v5374_v29 }
 0x576   : > { %5148 = vmatmul.mubr.f32.vlgmr.msra.gmra.mrb[16].mxu1 %v5958_v62  ;;  %v5392_v62 = vld [vmem:[#allocation9 + $0xa0] sm:$0xff] }
 0x577   : > { %6484 = vmatpush3.bf16.msra.mxu1 %v9650_v50  ;;  %v6493_v50 = vpack.c.bf16 %v4870_v15, %v4869_v24  ;;  %v5394_v15 = vld [vmem:[#allocation9 + $0xb0] sm:$0xff] }
 0x578   : > { %v5002_v58 = vpop.permute.xlu1 %5001  ;;  %6486 = vmatprep.subr.bf16.mxu1 %v6485_v43 }
 0x579   : > { %v5024_v2 = vsel %vm2934_vm7, %v4936_v51, %v5002_v58  ;;  %v4972_v48 = vpop.permute.xlu0 %4971  ;;  %v5421_v51 = vld [vmem:[#allocation9 + $0x188] sm:$0xff] }
 0x57a   : > { %v5961_v8 = vcombine.low %v5023_v13, %v5024_v2  ;;  %v5017_v22 = vsel %vm2934_vm7, %v4920_v49, %v4972_v48  ;;  %v6529_v13 = vpack.c.bf16 %v5421_v51, %v5420_v45  ;;  %v5405_v2 = vld [vmem:[#allocation9 + $0x108] sm:$0xff] }
 0x57b   : > { %6488 = vmatpush3.bf16.msra.mxu1 %v6485_v43  ;;  %v5393_v43 = vld [vmem:[#allocation9 + $0xa8] sm:$0xff]  ;;  %v6531_v24 = vpack.c.bf16 %v5405_v2, %v5404_v9  ;;  %v5378_v9 = vld [vmem:[#allocation9 + $0x30] sm:$0xff]  ;;  %v5379_v2 = vld [vmem:[#allocation9 + $0x38] sm:$0xff] }
 0x57c   : > { %5222 = vmatprep.mubr.f32.mxu0 %v5961_v8  ;;  %v4986_v28 = vpop.permute.xlu1 %4985  ;;  %6490 = vmatprep.subr.bf16.mxu1 %v6489_v32  ;;  %v6505_v58 = vpack.c.bf16 %v5393_v43, %v5392_v62  ;;  %v5395_v8 = vld [vmem:[#allocation9 + $0xb8] sm:$0xff] }
 0x57d   : > { %v5020_v60 = vsel %vm2934_vm7, %v4927_v4, %v4986_v28  ;;  %v4956_v34 = vpop.permute.xlu0 %4955  ;;  %6530 = vmatprep.subr.bf16.mxu0 %v6529_v13  ;;  %v6509_v4 = vpack.c.bf16 %v5395_v8, %v5394_v15 }
 0x57e   : > { %v5960_v44 = vcombine.low %v5019_v20, %v5020_v60  ;;  %v5013_v59 = vsel %vm2934_vm7, %v4912_v33, %v4956_v34  ;;  %v5957_v60 = vld [vmem:[%s9797_s6] ss:$0 sm:$0xff] }
 0x57f   : > { %6492 = vmatpush3.bf16.msra.mxu1 %v6489_v32  ;;  %v5377_v32 = vld [vmem:[#allocation9 + $0x28] sm:$0xff] }
 0x580   : > { %5223 = vmatmul.mubr.f32.vlgmr.msra.gmra.mrb[24].mxu0 %v5960_v44  ;;  %6494 = vmatprep.subr.bf16.mxu1 %v6493_v50  ;;  %v6507_v41 = vpack.c.bf16 %v5377_v32, %v5376_v25 }
 0x581   : > { %6532 = vmatpush3.bf16.msra.mxu0 %v6531_v24  ;;  %v5422_v24 = vld [vmem:[#allocation9 + $0x190] sm:$0xff] }
 0x583   : > { %6496 = vmatpush3.bf16.msra.mxu1 %v6493_v50 }
 0x584   : > { %6498 = vmatprep.subr.bf16.mxu1 %v6497_v42 }
 0x587   : > { %v4974_v21 = vpop.permute.xlu1 %4973 }
 0x588   : > { %v5018_v37 = vsel %vm2934_vm7, %v4921_v47, %v4974_v21  ;;  %v5004_v23 = vpop.permute.xlu0 %5003 }
 0x589   : > { %v5963_v39 = vcombine.low %v5017_v22, %v5018_v37  ;;  %v5025_v61 = vsel %vm2934_vm7, %v4937_v12, %v5004_v23 }
 0x58b   : > { %v4958_v26 = vpop.permute.xlu1 %4957  ;;  %5152 = vmatprep.mubr.f32.mxu1 %v5963_v39 }
 0x58c   : > { %v5014_v30 = vsel %vm2934_vm7, %v4913_v63, %v4958_v26  ;;  %v4988_v46 = vpop.permute.xlu0 %4987 }
 0x58d   : > { %v5962_v27 = vcombine.low %v5013_v59, %v5014_v30  ;;  %v5021_v52 = vsel %vm2934_vm7, %v4928_v18, %v4988_v46 }
 0x58f   : > { %v5006_v5 = vpop.permute.xlu1 %5005  ;;  %5153 = vmatmul.mubr.f32.gmra.mrb[18].mxu1 %v5962_v27 }
 0x590   : > { %v5026_v57 = vsel %vm2934_vm7, %v4938_v36, %v5006_v5  ;;  %6315 = vmatprep.mubr.msk.f32.mxu1 %vm2934_vm7, %v6724_v40 }
 0x591   : > { %v5965_v53 = vcombine.low %v5025_v61, %v5026_v57 }
 0x593   : > { %5227 = vmatprep.mubr.f32.mxu0 %v5965_v53  ;;  %v4990_v38 = vpop.permute.xlu1 %4989  ;;  %6316 = vmatmul.mubr.msk.f32.vlgmr.msra.gmra.mrb[20].mxu1 %vm2934_vm7, %v6725_v14 }
 0x594   : > { %v5022_v7 = vsel %vm2934_vm7, %v4929_v6, %v4990_v38  ;;  %6500 = vmatpush3.bf16.msra.mxu1 %v6499_v56 }
 0x595   : > { %v5964_v10 = vcombine.low %v5021_v52, %v5022_v7  ;;  %6502 = vmatprep.subr.bf16.mxu1 %v6501_v1 }
 0x597   : > { %5228 = vmatmul.mubr.f32.gmra.mrb[26].mxu0 %v5964_v10 }
 0x598   : > { %6504 = vmatpush3.bf16.msra.mxu1 %v6503_v55 }
 0x599   : > { %6506 = vmatprep.subr.bf16.mxu1 %v6505_v58 }
 0x59c   : > { %6508 = vmatpush3.bf16.msra.mxu1 %v6507_v41 }
 0x59d   : > { %6510 = vmatprep.subr.bf16.mxu1 %v6509_v4  ;;  %v6511_v4 = vpack.c.bf16 %v5379_v2, %v5378_v9  ;;  %v5387_v9 = vld [vmem:[#allocation9 + $0x78] sm:$0xff]  ;;  %v5430_v2 = vld [vmem:[#allocation9 + $0x1d0] sm:$0xff] }
 0x5a0   : > { %6512 = vmatpush3.bf16.msra.mxu1 %v6511_v4  ;;  %v5415_v4 = vld [vmem:[#allocation9 + $0x158] sm:$0xff] }
 0x649   : > { %v6138_v28 = vpop.f32.mrb[16].mxu1 }
 0x64a   : > { %v6139_v50 = vpop.f32.mrb[17].mxu1 }
 0x64b   : > { %v6140_v20 = vadd.f32 %v6139_v50, %v6138_v28  ;;  %v5423_v28 = vld [vmem:[#allocation9 + $0x198] sm:$0xff]  ;;  %v5406_v50 = vld [vmem:[#allocation9 + $0x110] sm:$0xff] }
 0x64d   : > { %v5150_v34 = vadd.f32 %v6140_v20, %v5957_v60  ;;  %v5407_v20 = vld [vmem:[#allocation9 + $0x118] sm:$0xff] }
 0x653   : > { %v6176_v44 = vpop.f32.mrb[24].mxu0 }
 0x654   : > { %v6177_v48 = vpop.f32.mrb[25].mxu0 }
 0x655   : > { %v6178_v49 = vadd.f32 %v6177_v48, %v6176_v44  ;;  %v6535_v44 = vpack.c.bf16 %v5407_v20, %v5406_v50  ;;  %v5396_v48 = vld [vmem:[#allocation9 + $0xc0] sm:$0xff] }
 0x657   : > { %v5225_v47 = vadd.f32 %v6178_v49, %v5150_v34  ;;  %v5397_v34 = vld [vmem:[#allocation9 + $0xc8] sm:$0xff]  ;;  %v5380_v49 = vld [vmem:[#allocation9 + $0x40] sm:$0xff] }
 0x662   : > { %v6141_v21 = vpop.f32.mrb[18].mxu1 }
 0x663   : > { %v6142_v22 = vpop.f32.mrb[19].mxu1 }
 0x664   : > { %v6143_v37 = vadd.f32 %v6142_v22, %v6141_v21  ;;  %v6513_v22 = vpack.c.bf16 %v5397_v34, %v5396_v48  ;;  %v5416_v48 = vld [vmem:[#allocation9 + $0x160] sm:$0xff]  ;;  %v5417_v34 = vld [vmem:[#allocation9 + $0x168] sm:$0xff] }
 0x666   : > { %v6317_v39 = vpop.f32.mrb[20].mxu1  ;;  %v5155_v30 = vadd.f32 %v6143_v37, %v5957_v60  ;;  %v6533_v60 = vpack.c.bf16 %v5423_v28, %v5422_v24  ;;  %v5381_v37 = vld [vmem:[#allocation9 + $0x48] sm:$0xff]  ;;  %6514 = vmatprep.subr.bf16.mxu1 %v6513_v22  ;;  %v5431_v24 = vld [vmem:[#allocation9 + $0x1d8] sm:$0xff]  ;;  %v5432_v28 = vld [vmem:[#allocation9 + $0x1e0] sm:$0xff]  ;;  %v6869_v22 = vmov 0.0|0.0  }
 0x667   : > { %v5299_v33 = vpop.f32.mrb[21].mxu1 }
 0x668   : > { %v5300_v23 = vadd.f32 %v5299_v33, %v5225_v47  ;;  %v5425_v33 = vld [vmem:[#allocation9 + $0x1a8] sm:$0xff]  ;;  %6534 = vmatprep.subr.bf16.mxu0 %v6533_v60 }
 0x669   : > { %6536 = vmatpush3.bf16.msra.mxu0 %v6535_v44  ;;  %v5433_v60 = vld [vmem:[#allocation9 + $0x1e8] sm:$0xff] }
 0x66a   : > { %v5308_v63 = vmax.f32 %v5300_v23, 0.0  ;;  %v6179_v26 = vpop.f32.mrb[26].mxu0  ;;  %v6515_v23 = vpack.c.bf16 %v5381_v37, %v5380_v49  ;;  %v6553_v44 = vpack.c.bf16 %v5433_v60, %v5432_v28  ;;  %v5434_v49 = vld [vmem:[#allocation9 + $0x1f0] sm:$0xff]  ;;  %v6555_v37 = vpack.c.bf16 %v5417_v34, %v5416_v48 }
 0x66b   : > { %v6180_v59 = vpop.f32.mrb[27].mxu0  ;;  %v5969_v60 = vld.sshfl [vmem:[#allocation5 + $0xe] sm:$0x3 pattern:$0x76325410] }
 0x66c   : > { %v5312_v27 = vcombine.high %v5308_v63, %v5308_v63  ;;  %v6181_v36 = vadd.f32 %v6180_v59, %v6179_v26  ;;  %v5316_v40 = vsel %vm4905_vm0, %v5308_v63, -inf  ;;  %v5408_v26 = vld [vmem:[#allocation9 + $0x120] sm:$0xff]  ;;  %v5409_v59 = vld [vmem:[#allocation9 + $0x128] sm:$0xff]  ;;  %6516 = vmatpush3.bf16.msra.mxu1 %v6515_v23  ;;  %v5419_v23 = vld [vmem:[#allocation9 + $0x178] sm:$0xff] }
 0x66e   : > { %v5317_v12 = vsel %vm4905_vm0, %v5312_v27, -inf  ;;  %v5230_v5 = vadd.f32 %v6181_v36, %v5155_v30  ;;  %v5398_v30 = vld [vmem:[#allocation9 + $0xd0] sm:$0xff]  ;;  %v6539_v36 = vpack.c.bf16 %v5409_v59, %v5408_v26  ;;  %v5478_v26 = vpop.permute.xlu0 %5477 }
 0x66f   : > { %v5318_v61 = vmax.f32 %v5316_v40, %v5317_v12  ;;  %v5399_v40 = vld [vmem:[#allocation9 + $0xd8] sm:$0xff] }
 0x670   : > { %v5305_v57 = vadd.f32 %v6317_v39, %v5230_v5  ;;  %v5424_v39 = vld [vmem:[#allocation9 + $0x1a0] sm:$0xff]  ;;  %v6517_v12 = vpack.c.bf16 %v5399_v40, %v5398_v30  ;;  %v5456_v30 = vld [vmem:[#allocation5] sm:$0x3] }
 0x671   : > { %v5330_v46 = vrot.slane %v5318_v61, %v10142_v11  ;;  %v6537_v63 = vpack.c.bf16 %v5425_v33, %v5424_v39  ;;  %v5418_v33 = vld [vmem:[#allocation9 + $0x170] sm:$0xff] }
 0x672   : > { %v5309_v53 = vmax.f32 %v5305_v57, 0.0  ;;  %6518 = vmatprep.subr.bf16.mxu1 %v6517_v12  ;;  %v5507_v12 = vsel %vm2934_vm7, %v5456_v30, %v5478_v26 }
 0x673   : > { %v5331_v14 = vcombine.high %v5330_v46, %v5330_v46  ;;  %v5344_v18 = vsel %vm3335_vm8, %v5330_v46, -inf  ;;  %6538 = vmatprep.subr.bf16.mxu0 %v6537_v63  ;;  %v6559_v63 = vpack.c.bf16 %v5419_v23, %v5418_v33 }
 0x674   : > { %v5345_v6 = vrot.slane %v5344_v18, 4  ;;  %v5313_v38 = vcombine.high %v5309_v53, %v5309_v53  ;;  %v5319_v16 = vsel %vm4905_vm0, %v5309_v53, -inf  ;;  %6540 = vmatpush3.bf16.msra.mxu0 %v6539_v36 }
 0x675   : > { %v5351_v52 = vsel %vm3335_vm8, %v5331_v14, -inf }
 0x676   : > { %v5346_v7 = vmax.f32 %v5344_v18, %v5345_v6  ;;  %v5352_v10 = vrot.slane %v5351_v52, 4  ;;  %v5320_v31 = vsel %vm4905_vm0, %v5313_v38, -inf  ;;  %v5382_v18 = vld [vmem:[#allocation9 + $0x50] sm:$0xff]  ;;  %v5383_v6 = vld [vmem:[#allocation9 + $0x58] sm:$0xff] }
 0x677   : > { %v5321_v17 = vmax.f32 %v5319_v16, %v5320_v31  ;;  %v5426_v38 = vld [vmem:[#allocation9 + $0x1b0] sm:$0xff]  ;;  %v5411_v16 = vld [vmem:[#allocation9 + $0x138] sm:$0xff] }
 0x678   : > { %v5347_v54 = vrot.slane %v5346_v7, 2  ;;  %v5353_v42 = vmax.f32 %v5351_v52, %v5352_v10  ;;  %v6519_v52 = vpack.c.bf16 %v5383_v6, %v5382_v18  ;;  %v5410_v10 = vld [vmem:[#allocation9 + $0x130] sm:$0xff] }
 0x679   : > { %v5338_v0 = vrot.slane %v5321_v17, %v10142_v11  ;;  %v6543_v17 = vpack.c.bf16 %v5411_v16, %v5410_v10 }
 0x67a   : > { %v5348_v19 = vmax.f32 %v5346_v7, %v5347_v54  ;;  %v5354_v3 = vrot.slane %v5353_v42, 2  ;;  %v5427_v7 = vld [vmem:[#allocation9 + $0x1b8] sm:$0xff]  ;;  %v5400_v54 = vld [vmem:[#allocation9 + $0xe0] sm:$0xff]  ;;  %6520 = vmatpush3.bf16.msra.mxu1 %v6519_v52 }
 0x67b   : > { %v5339_v56 = vcombine.high %v5338_v0, %v5338_v0  ;;  %v5358_v1 = vsel %vm3335_vm8, %v5338_v0, -inf  ;;  %v6541_v31 = vpack.c.bf16 %v5427_v7, %v5426_v38  ;;  %v5384_v0 = vld [vmem:[#allocation9 + $0x60] sm:$0xff] }
 0x67c   : > { %v5349_v29 = vrot.slane %v5348_v19, 1  ;;  %v5355_v35 = vmax.f32 %v5353_v42, %v5354_v3  ;;  %v5359_v62 = vrot.slane %v5358_v1, 4  ;;  %v5401_v42 = vld [vmem:[#allocation9 + $0xe8] sm:$0xff] }
 0x67d   : > { %v5365_v43 = vsel %vm3335_vm8, %v5339_v56, -inf  ;;  %v5385_v3 = vld [vmem:[#allocation9 + $0x68] sm:$0xff]  ;;  %v5428_v56 = vld [vmem:[#allocation9 + $0x1c0] sm:$0xff]  ;;  %6542 = vmatprep.subr.bf16.mxu0 %v6541_v31 }
 0x67e   : > { %v5356_v55 = vrot.slane %v5355_v35, 1  ;;  %v5360_v25 = vmax.f32 %v5358_v1, %v5359_v62  ;;  %v5366_v45 = vrot.slane %v5365_v43, 4  ;;  %v5350_v51 = vmax.f32 %v5348_v19, %v5349_v29  ;;  %v5429_v1 = vld [vmem:[#allocation9 + $0x1c8] sm:$0xff]  ;;  %v5412_v62 = vld [vmem:[#allocation9 + $0x140] sm:$0xff]  ;;  %6544 = vmatpush3.bf16.msra.mxu0 %v6543_v17 }
 0x67f   : > { %v6521_v19 = vpack.c.bf16 %v5401_v42, %v5400_v54  ;;  %v6523_v29 = vpack.c.bf16 %v5385_v3, %v5384_v0  ;;  %v5470_v42 = vld [vmem:[#allocation5 + $0xc] sm:$0x3]  ;;  %v5437_v3 = vld [vmem:[#allocation9 + $0x208] sm:$0xff] }
 0x680   : > { %v5357_v58 = vmax.f32 %v5355_v35, %v5356_v55  ;;  %v5361_v32 = vrot.slane %v5360_v25, 2  ;;  %v5367_v13 = vmax.f32 %v5365_v43, %v5366_v45  ;;  %v6545_v35 = vpack.c.bf16 %v5429_v1, %v5428_v56  ;;  %v5413_v43 = vld [vmem:[#allocation9 + $0x148] sm:$0xff]  ;;  %v5402_v55 = vld [vmem:[#allocation9 + $0xf0] sm:$0xff]  ;;  %v5403_v45 = vld [vmem:[#allocation9 + $0xf8] sm:$0xff] }
 0x681   : > { %6522 = vmatprep.subr.bf16.mxu1 %v6521_v19  ;;  %v5436_v19 = vld [vmem:[#allocation9 + $0x200] sm:$0xff] }
 0x682   : > { %v5449_v15 = vsel %vm3921_vm9, %v5357_v58, %v5350_v51  ;;  %v5362_v8 = vmax.f32 %v5360_v25, %v5361_v32  ;;  %v5368_v41 = vrot.slane %v5367_v13, 2  ;;  %v6547_v25 = vpack.c.bf16 %v5413_v43, %v5412_v62  ;;  %6546 = vmatprep.subr.bf16.mxu0 %v6545_v35  ;;  %6524 = vmatpush3.bf16.msra.mxu1 %v6523_v29 }
 0x683   : > { %5454 = vst.msk [vmem:[#allocation5 + $0x5] sm:$0x3] %vm3335_vm8, %v5449_v15  ;;  %v6525_v32 = vpack.c.bf16 %v5403_v45, %v5402_v55  ;;  %v6562_v45 = vpack.c.bf16 %v5437_v3, %v5436_v19 }
 0x684   : > { %v5363_v47 = vrot.slane %v5362_v8, 1  ;;  %v5369_v21 = vmax.f32 %v5367_v13, %v5368_v41  ;;  %v5386_v13 = vld [vmem:[#allocation9 + $0x70] sm:$0xff]  ;;  %6548 = vmatpush3.bf16.msra.mxu0 %v6547_v25 }
 0x685   : > { %6526 = vmatprep.subr.bf16.mxu1 %v6525_v32  ;;  %v6527_v15 = vpack.c.bf16 %v5387_v9, %v5386_v13  ;;  %v5414_v41 = vld [vmem:[#allocation9 + $0x150] sm:$0xff] }
 0x686   : > { %v5370_v27 = vrot.slane %v5369_v21, 1  ;;  %v5364_v5 = vmax.f32 %v5362_v8, %v5363_v47  ;;  %v6549_v8 = vpack.c.bf16 %v5431_v24, %v5430_v2  ;;  %v6551_v20 = vpack.c.bf16 %v5415_v4, %v5414_v41  ;;  %v5472_v47 = vld [vmem:[#allocation5 + $0xd] sm:$0x3] }
 0x687   : > { %6528 = vmatpush3.bf16.msra.mxu1 %v6527_v15  ;;  %v6871_v24 = vmov 0.0   ;;  %v5440_v15 = vld [vmem:[#allocation9 + $0x220] sm:$0xff] }
 0x688   : > { %v5371_v61 = vmax.f32 %v5369_v21, %v5370_v27  ;;  %6550 = vmatprep.subr.bf16.mxu0 %v6549_v8  ;;  %v5435_v21 = vld [vmem:[#allocation9 + $0x1f8] sm:$0xff]  ;;  %6561 = vmatprep.subr.bf16.mxu1 %v6869_v22  ;;  %v5460_v27 = vld [vmem:[#allocation5 + $0x2] sm:$0x3]  ;;  %v5441_v8 = vld [vmem:[#allocation9 + $0x228] sm:$0xff] }
 0x689   : > { %6552 = vmatpush3.bf16.msra.mxu0 %v6551_v20  ;;  %v6557_v39 = vpack.c.bf16 %v5435_v21, %v5434_v49  ;;  %v6568_v28 = vpack.c.bf16 %v5441_v8, %v5440_v15  ;;  %v5443_v20 = vld [vmem:[#allocation9 + $0x238] sm:$0xff] }
 0x68a   : > { %v5450_v57 = vsel %vm3921_vm9, %v5371_v61, %v5364_v5  ;;  %v5462_v46 = vld [vmem:[#allocation5 + $0x4] sm:$0x3]  ;;  %v5466_v14 = vld [vmem:[#allocation5 + $0x6] sm:$0x3]  ;;  %6554 = vmatprep.subr.bf16.mxu0 %v6553_v44 }
 0x68b   : > { %v5459_v53 = vld [vmem:[#allocation5 + $0x5] sm:$0x3]  ;;  %5455 = vst.msk [vmem:[#allocation5 + $0x9] sm:$0x3] %vm3335_vm8, %v5450_v57  ;;  %5485 = vrot.lane.b32.xlu0 %v5462_v46, %s6868_s24 }
 0x68c   : > { %5479 = vrot.lane.b32.xlu1 %v5459_v53, %s6868_s24  ;;  %v5457_v57 = vld [vmem:[#allocation5 + $0x4] sm:$0x3]  ;;  %v5461_v46 = vld [vmem:[#allocation5 + $0x6] sm:$0x3] }
 0x68d   : > { %6556 = vmatpush3.bf16.msra.mxu0 %v6555_v37  ;;  %v5464_v17 = vld [vmem:[#allocation5 + $0x5] sm:$0x3] }
 0x68e   : > { %6558 = vmatprep.subr.bf16.mxu0 %v6557_v39  ;;  %v5970_v39 = vld [vmem:[%s9799_s8] ss:$0 sm:$0xff] }
 0x68f   : > { %5493 = vrot.lane.b32.xlu0 %v5466_v14, %s6868_s24 }
 0x691   : > { %6560 = vmatpush3.bf16.msra.mxu0 %v6559_v63 }
 0x692   : > { %v5471_v51 = vld [vmem:[#allocation5 + $0x9] sm:$0x3] }
 0x693   : > { %v5463_v58 = vld [vmem:[#allocation5 + $0x8] sm:$0x3]  ;;  %5501 = vrot.lane.b32.xlu0 %v5471_v51, %s6868_s24  ;;  %v5467_v50 = vld [vmem:[#allocation5 + $0xa] sm:$0x3]  ;;  %v5438_v51 = vld [vmem:[#allocation9 + $0x210] sm:$0xff] }
 0x694   : > { %5487 = vrot.lane.b32.xlu1 %v5463_v58, %s6868_s24  ;;  %v5469_v7 = vld [vmem:[#allocation5 + $0x8] sm:$0x3]  ;;  %v5968_v44 = vld.sshfl [vmem:[#allocation5 + $0xa] sm:$0x3 pattern:$0x76325410] }
 0x695   : > { %v5465_v1 = vld [vmem:[#allocation5 + $0x9] sm:$0x3]  ;;  %v5597_v34 = vcombine.low %v5968_v44, %v5969_v60 }
 0x696   : > { %v5439_v58 = vld [vmem:[#allocation9 + $0x218] sm:$0xff] }
 0x697   : > { %v6565_v2 = vpack.c.bf16 %v5439_v58, %v5438_v51  ;;  %v5604_v49 = vrot.slane %v5597_v34, %v10142_v11 }
 0x698   : > { %5495 = vrot.lane.b32.xlu1 %v5467_v50, %s6868_s24  ;;  %v5442_v50 = vld [vmem:[#allocation9 + $0x230] sm:$0xff] }
 0x699   : > { %v6571_v48 = vpack.c.bf16 %v5443_v20, %v5442_v50 }
 0x69c   : > { %5503 = vrot.lane.b32.xlu1 %v5472_v47, %s6868_s24 }
 0x6fd   : > { %v5486_v59 = vpop.permute.xlu0 %5485 }
 0x6fe   : > { %v5480_v36 = vpop.permute.xlu1 %5479  ;;  %v5509_v5 = vsel %vm2934_vm7, %v5460_v27, %v5486_v59 }
 0x6ff   : > { %v5525_v61 = vcombine.low %v5507_v12, %v5509_v5  ;;  %v5508_v14 = vsel %vm2934_vm7, %v5457_v57, %v5480_v36 }
 0x701   : > { %v5494_v40 = vpop.permute.xlu0 %5493  ;;  %v5533_v52 = vrot.slane %v5525_v61, %v10142_v11 }
 0x702   : > { %v5511_v0 = vsel %vm2934_vm7, %v5464_v17, %v5494_v40 }
 0x705   : > { %v5502_v6 = vpop.permute.xlu0 %5501 }
 0x706   : > { %v5488_v53 = vpop.permute.xlu1 %5487  ;;  %v5513_v31 = vsel %vm2934_vm7, %v5469_v7, %v5502_v6 }
 0x707   : > { %v5510_v18 = vsel %vm2934_vm7, %v5461_v46, %v5488_v53  ;;  %v5526_v56 = vcombine.low %v5511_v0, %v5513_v31 }
 0x708   : > { %v5549_v38 = vcombine.low %v5508_v14, %v5510_v18 }
 0x709   : > { %v5540_v32 = vrot.slane %v5526_v56, %v10142_v11 }
 0x70a   : > { %v5557_v10 = vrot.slane %v5549_v38, %v10142_v11  ;;  %v5496_v16 = vpop.permute.xlu1 %5495 }
 0x70b   : > { %v5512_v62 = vsel %vm2934_vm7, %v5465_v1, %v5496_v16 }
 0x70c   : > { %v5971_v54 = vcombine.low %v5533_v52, %v5557_v10 }
 0x70e   : > { %v5504_v29 = vpop.permute.xlu1 %5503  ;;  %v5587_v35 = vrot.slane %v5971_v54, %v10142_v11 }
 0x70f   : > { %v5514_v43 = vsel %vm2934_vm7, %v5470_v42, %v5504_v29 }
 0x710   : > { %v5550_v55 = vcombine.low %v5512_v62, %v5514_v43  ;;  %v5595_v25 = vcombine.high %v5587_v35, %v5587_v35 }
 0x712   : > { %v5564_v13 = vrot.slane %v5550_v55, %v10142_v11  ;;  %5675 = vmatprep.mubr.f32.mxu1 %v5595_v25 }
 0x713   : > { %5676 = vmatmul.mubr.f32.vlgmr.msra.gmra.mrb[22].mxu1 %v5587_v35 }
 0x714   : > { %v5972_v9 = vcombine.low %v5540_v32, %v5564_v13  ;;  %6563 = vmatpush3.bf16.msra.mxu1 %v6562_v45  ;;  %6334 = vmatprep.mubr.msk.f32.mxu1 %vm6870_vm1, %v6871_v24 }
 0x715   : > { %6564 = vmatprep.subr.bf16.mxu1 %v6869_v22 }
 0x716   : > { %v5594_v41 = vrot.slane %v5972_v9, %v10142_v11 }
 0x718   : > { %6566 = vmatpush3.bf16.msra.mxu1 %v6565_v2  ;;  %v5596_v4 = vcombine.high %v5594_v41, %v5594_v41 }
 0x719   : > { %6567 = vmatprep.subr.bf16.mxu1 %v6869_v22 }
 0x71a   : > { %5745 = vmatprep.mubr.f32.mxu0 %v5596_v4 }
 0x71b   : > { %5746 = vmatmul.mubr.f32.vlgmr.msra.gmra.mrb[28].mxu0 %v5594_v41 }
 0x71c   : > { %6569 = vmatpush3.bf16.msra.mxu1 %v6568_v28 }
 0x71d   : > { %6570 = vmatprep.subr.bf16.mxu1 %v6869_v22 }
 0x720   : > { %6572 = vmatpush3.bf16.msra.mxu1 %v6571_v48 }
 0x723   : > { %6335 = vmatmul.mubr.msk.f32.vlgmr.msra.gmra.mrb[24].mxu1 %vm2934_vm7, %v5604_v49 }
 0x7e6   : > { %v6224_v47 = vpop.f32.mrb[22].mxu1 }
 0x7e7   : > { %v6225_v21 = vpop.f32.mrb[23].mxu1 }
 0x7e8   : > { %v6226_v37 = vadd.f32 %v6225_v21, %v6224_v47 }
 0x7ea   : > { %v5678_v63 = vadd.f32 %v6226_v37, %v5970_v39 }
 0x7ee   : > { %v6259_v33 = vpop.f32.mrb[28].mxu0 }
 0x7ef   : > { %v6260_v23 = vpop.f32.mrb[29].mxu0 }
 0x7f0   : > { %v6261_v26 = vadd.f32 %v6260_v23, %v6259_v33 }
 0x7f2   : > { %v5748_v59 = vadd.f32 %v6261_v26, %v5678_v63 }
 0x7f6   : > { %v5817_v22 = vpop.f32.mrb[24].mxu1 }
 0x7f7   : > { %v5818_v30 = vadd.f32 %v5817_v22, %v5748_v59  ;;  %v6336_v27 = vpop.f32.mrb[25].mxu1 }
 0x7f9   : > { %v5821_v36 = vmax.f32 %v5818_v30, 0.0 }
 0x7fb   : > { %v5829_v40 = vrot.slane %v5821_v36, %v10142_v11 }
 0x7fd   : > { %v5830_v12 = vcombine.high %v5829_v40, %v5829_v40  ;;  %v5833_v5 = vsel %vm3335_vm8, %v5829_v40, -inf }
 0x7ff   : > { %v5834_v61 = vsel %vm3335_vm8, %v5830_v12, -inf }
 0x800   : > { %v5835_v57 = vmax.f32 %v5833_v5, %v5834_v61 }
 0x802   : > { %v5836_v46 = vsel %vm3335_vm8, %v5835_v57, -inf }
 0x803   : > { %v5837_v53 = vrot.slane %v5836_v46, 4 }
 0x805   : > { %v5838_v14 = vmax.f32 %v5836_v46, %v5837_v53 }
 0x807   : > { %v5839_v18 = vrot.slane %v5838_v14, 2 }
 0x809   : > { %v5840_v6 = vmax.f32 %v5838_v14, %v5839_v18 }
 0x80b   : > { %v5841_v38 = vrot.slane %v5840_v6, 1 }
 0x80d   : > { %v5842_v11 = vmax.f32 %v5840_v6, %v5841_v38 }
 0x80f   : > { %5844 = vst.msk [vmem:[%s7054_s29] sm:$0x1] %vm5843_vm2, %v5842_v11 }
 0x810   : > { %6802 = shalt.err (!%p6799_p0)
}
 0x811   : > { %s6803_s18 = scalar_lea.hbm %s9746_s11, 16  ;;  %s6807_s14 = scalar_lea.hbm %s9800_s9, 32 }
 0x812   : > { %p6804_p5 = scmp.ne.s32.totalorder %s9746_s11, %s6803_s18  ;;  %p6808_p9 = scmp.lt.u32.totalorder %s9746_s11, %s9800_s9 }
 0x813   : > { %p6809_p13 = scmp.lt.u32.totalorder %s6807_s14, %s6803_s18  ;;  %p6811_p11 = scmp.lt.u32.totalorder %s6803_s18, %s9746_s11 }
 0x814   : > { %p6805_p1 = pnand %p6804_p5, %p10151_p2 }
 0x815   : > { %p6810_p10 = por %p6809_p13, %p6808_p9 }
 0x816   : > { %p6806_p6 = pneg %p6805_p1 }
 0x817   : > { %p6812_p3 = por %p6811_p11, %p6810_p10 }
 0x819   : > { %p6813_p4 = pnand %p6812_p3, %p6806_p6 }
 0x81b   : > { %6816 = shalt.err (!%p6813_p4)
}
 0x81c   : > { %6581 = dma.vmem_to_hbm [thread:$0]  (%p10151_p2), %s9748_s22, 16, %s9746_s11, %s5846_s15  }
 0x81d PF: > { %p6598_p7 = scmp.ge.s32.totalorder %s6859_s12, 2  ;;  %s5870_s17 = sand.u32 1, %s6847_s30  }
 0x81e   : > { %p10152_p8 = scmp.ne.s32.totalorder %s9821_s20, 0  ;;  %s5871_s25 = scalar_lea.sflag [#allocation8], %s5870_s17 }
 0x820   : > { %p6591_p12 = pnand %p6598_p7, %p10152_p8 }
 0x822   : > { %6842 = dma.done.wait (!%p6591_p12), %s5871_s25, 16  }
 0x823   : > { %6844 = vsyncadd (!%p6591_p12), %s5871_s25, 4294967280  ;;  %s10153_s12 = sld [smem:[#allocation16_spill]]  ;;  %s10154_s23 = sld [smem:[#allocation15_spill]] }
 0x824   : > { %s10155_s11 = sld [smem:[#allocation17_spill]]  ;;  %s10156_s30 = smov %s6851_s10 }
 0x829   : > { %p21_p0 = scmp.ge.s32.totalorder %s10153_s12, 4   ;;  %s10157_s10 = smov %s10154_s23 }
 0x82b   :  { %23 = sbr.rel (!%p21_p0) target bundleno = 5 (0x5), region = 112 }
 0x832   :  { %5875 = vsyncpa [#allocation7], 1 }
 0x833   :  { %5877 = vsyncpa [#allocation7 + $0x1], 1 }
 0x834   :  { %5878 = vsyncpa [#allocation10], 1 }
 0x835   :  { %5879 = vsyncpa [#allocation8], 1 }
 0x836   :  { %5881 = vsyncpa [#allocation8 + $0x1], 1 }

</bundles_post_ra>
